<compile_context>
chip_gen: v7x
topology: tpu7x:2x2x1
jax: 0.10.0
libtpu: 0.0.40
codegen_flags: <defaults>
</compile_context>

<pallas_src>
import functools

import jax
import jax.numpy as jnp
from jax import lax
from jax.experimental import pallas as pl
from jax.experimental.pallas import tpu as pltpu


def _vmem_limit_bytes():
    """Generation-aware scoped-VMEM limit (~45% of capacity, conservative fallback)."""
    try:
        cap = int(pltpu.get_tpu_info().vmem_capacity_bytes)
    except Exception:                       # no TPU visible / interpret mode / old API
        cap = 64 * 1024 * 1024              # assume the smallest (v7x per-TC) size
    return max(16 * 1024 * 1024, min(int(cap * 0.45), 96 * 1024 * 1024))


def _pick_group(BH, Nh, C, vmem_limit):
    """Heads per grid step.

    Keep the per-step live footprint within ~1/2 of the scoped VMEM limit and keep
    the grid length >= 2 (preferably even) so both v7x TensorCores get work and
    input/output DMA double-buffering overlaps.
    """
    per_head = 48 * Nh * C + 16 * Nh * Nh        # rough bytes of live intermediates
    cap = max(1, (vmem_limit // 2) // per_head)
    divs = [g for g in range(1, BH + 1) if BH % g == 0 and g <= cap]
    if not divs:
        return 1
    multi = [g for g in divs if BH // g >= 2]
    if multi:
        even = [g for g in multi if (BH // g) % 2 == 0]
        return max(even) if even else max(multi)
    return max(divs)


# ---------------------------------------------------------------------------
# Fused kernel: fc1 + shared EdgeConv projections + KNN + EdgeConv + fc2 + residual
# (one grid step handles G heads of Nh nodes each)
# ---------------------------------------------------------------------------
def _grapher_kernel(x_ref, w1_ref, s1_ref, t1_ref, wi_ref, wd_ref, b2_ref,
                    w3_ref, s3_ref, t3_ref, o_ref, *, k):
    x = x_ref[...]                                   # (G, Nh, C) f32, residual source
    G, Nh, C = x.shape

    # --- fc1: 1x1 conv (bf16 MXU, f32 acc) + folded inference BatchNorm ---
    xb = x.reshape(G * Nh, C).astype(jnp.bfloat16)
    h = jnp.dot(xb, w1_ref[...], preferred_element_type=jnp.float32)
    h = h * s1_ref[...] + t1_ref[...]
    hb = h.astype(jnp.bfloat16)

    # --- shared EdgeConv projections, computed once per node ---
    # TODO(synk): when C % 128 == 0, do one (C, 2C) concatenated [Wi|Wd] matmul and
    # slice on a lane boundary (better MXU N-fill); kept as two dots for small C.
    xwi = jnp.dot(hb, wi_ref[...], preferred_element_type=jnp.float32) + b2_ref[...]
    xwd = jnp.dot(hb, wd_ref[...], preferred_element_type=jnp.float32)

    h3 = h.reshape(G, Nh, C)
    xwi3 = xwi.reshape(G, Nh, C)
    xwd3 = xwd.reshape(G, Nh, C)

    # --- KNN graph: cosine similarity of L2-normalized h (norm in f32 pre-cast) ---
    ss = jnp.sum(h3 * h3, axis=-1, keepdims=True)
    xn = (h3 * lax.rsqrt(jnp.maximum(ss, 1e-24))).astype(jnp.bfloat16)
    gram = jnp.einsum("gnc,gmc->gnm", xn, xn,
                      preferred_element_type=jnp.float32)        # (G, Nh, Nh)

    # hi/lo bf16 split of xwd: the one-hot row gather becomes a single bf16 MXU
    # matmul per step (no Precision.HIGHEST multi-pass) yet stays exact to ~2^-17.
    xwd_hi = xwd3.astype(jnp.bfloat16)
    xwd_lo = (xwd3 - xwd_hi.astype(jnp.float32)).astype(jnp.bfloat16)
    xwd_cat = jnp.concatenate([xwd_hi, xwd_lo], axis=-1)         # (G, Nh, 2C) bf16

    # --- top-k (k nearest == k largest cosine on unit vectors), running max over
    #     gathered neighbors: no k-stacked one-hot / gather tensors kept live. ---
    # TODO(synk): pack (value, ~index) into one sortable 32-bit key -> single XLU
    # reduction per step; kept as max + min-index for exact lax.top_k tie-breaking.
    col = lax.broadcasted_iota(jnp.int32, (G, Nh, Nh), 2)
    g_cur = gram
    nb_max = None
    for _ in range(k):                                           # static, unrolled
        m = jnp.max(g_cur, axis=-1, keepdims=True)
        sel = jnp.min(jnp.where(g_cur >= m, col, Nh), axis=-1, keepdims=True)
        oh = col == sel
        g_cur = jnp.where(oh, -1e30, g_cur)                      # mask selected column
        ohb = oh.astype(jnp.bfloat16)                            # exact 0/1 in bf16
        gcat = jnp.einsum("gnm,gmc->gnc", ohb, xwd_cat,
                          preferred_element_type=jnp.float32)    # (G, Nh, 2C)
        g = gcat[..., :C] + gcat[..., C:]                        # hi + lo  == row gather
        nb_max = g if nb_max is None else jnp.maximum(nb_max, g)

    # --- EdgeConv: max_j relu(x_i@Wi + b + (x_j - x_i)@Wd)  (relu monotone) ---
    edge = jnp.maximum(xwi3 - xwd3 + nb_max, 0.0)

    # --- fc2 (1x1 conv + folded BN) + drop_path(Identity) + residual ---
    e2 = edge.reshape(G * Nh, C).astype(jnp.bfloat16)
    y = jnp.dot(e2, w3_ref[...], preferred_element_type=jnp.float32)
    y = y * s3_ref[...] + t3_ref[...]
    o_ref[...] = y.reshape(G, Nh, C) + x


# ---------------------------------------------------------------------------
# Grapher forward (glue: layout reshapes + one pallas_call)
# ---------------------------------------------------------------------------
def grapher_forward(x, params, heads, k):
    B, C, H, W = x.shape
    N = H * W
    assert N % heads == 0
    Nh = N // heads
    assert k <= Nh
    BH = B * heads

    # node-major, channel-last layout (channels on the 128-lane axis)
    # TODO(synk): for tiny C (< 128 lanes) stores are lane-masked; production ViG
    # channel counts (>= 128) are naturally lane-dense.
    x3 = jnp.transpose(x, (0, 2, 3, 1)).reshape(BH, Nh, C)       # f32

    vmem = _vmem_limit_bytes()
    G = _pick_group(BH, Nh, C, vmem)

    blk = lambda g: (g, 0, 0)
    full2 = lambda g: (0, 0)
    kernel = functools.partial(_grapher_kernel, k=k)
    y3 = pl.pallas_call(
        kernel,
        out_shape=jax.ShapeDtypeStruct((BH, Nh, C), jnp.float32),
        grid=(BH // G,),
        in_specs=[
            pl.BlockSpec((G, Nh, C), blk),     # x (residual + fc1 input)
            pl.BlockSpec((C, C), full2),       # W1 (bf16)
            pl.BlockSpec((1, C), full2),       # BN1 scale
            pl.BlockSpec((1, C), full2),       # BN1 shift
            pl.BlockSpec((C, C), full2),       # Wi (bf16)
            pl.BlockSpec((C, C), full2),       # Wd (bf16)
            pl.BlockSpec((1, C), full2),       # b2
            pl.BlockSpec((C, C), full2),       # W3 (bf16)
            pl.BlockSpec((1, C), full2),       # BN2 scale
            pl.BlockSpec((1, C), full2),       # BN2 shift
        ],
        out_specs=pl.BlockSpec((G, Nh, C), blk),
        compiler_params=pltpu.CompilerParams(
            dimension_semantics=("parallel",),
            vmem_limit_bytes=vmem),
    )(x3, params["w1"], params["scale1"], params["shift1"],
      params["w2i"], params["w2d"], params["b2"],
      params["w3"], params["scale3"], params["shift3"])

    return y3.reshape(B, H, W, C).transpose(0, 3, 1, 2)


# ---------------------------------------------------------------------------
# Deterministic parameter initialization (shapes from Grapher.__init__)
# ---------------------------------------------------------------------------
def init_params(key, C):
    ks = jax.random.split(key, 12)

    def rnd(k_, shape, s=0.1):
        return s * jax.random.normal(k_, shape, jnp.float32)

    eps = 1e-5
    # fc1: Conv2d(C,C,1) weight (C,C), bias (C,); BN(C)
    w1, b1 = rnd(ks[0], (C, C)), rnd(ks[1], (C,))
    g1, be1 = 1.0 + rnd(ks[2], (C,)), rnd(ks[3], (C,))
    m1 = rnd(ks[4], (C,))
    v1 = 1.0 + 0.1 * jnp.abs(jax.random.normal(ks[5], (C,)))
    # EdgeConv BasicConv([2C, C]): Conv2d(2C,C,1) weight (C,2C), bias (C,)
    w2, b2 = rnd(ks[6], (C, 2 * C)), rnd(ks[7], (C,))
    # fc2: Conv2d(C,C,1) + BN(C)
    w3, b3 = rnd(ks[8], (C, C)), rnd(ks[9], (C,))
    g3, be3 = 1.0 + rnd(ks[10], (C,)), rnd(ks[11], (C,))
    m3, v3 = jnp.zeros((C,), jnp.float32), jnp.ones((C,), jnp.float32)

    scale1 = g1 / jnp.sqrt(v1 + eps)
    shift1 = (b1 - m1) * scale1 + be1
    scale3 = g3 / jnp.sqrt(v3 + eps)
    shift3 = (b3 - m3) * scale3 + be3
    return dict(
        w1=w1.T.astype(jnp.bfloat16),
        scale1=scale1.reshape(1, C), shift1=shift1.reshape(1, C),
        w2i=w2[:, :C].T.astype(jnp.bfloat16),
        w2d=w2[:, C:].T.astype(jnp.bfloat16),
        b2=b2.reshape(1, C),
        w3=w3.T.astype(jnp.bfloat16),
        scale3=scale3.reshape(1, C), shift3=shift3.reshape(1, C),
    )


# ---------------------------------------------------------------------------
# Pure-JAX reference (standard XLA ops, same bf16 MXU quantization, exact gather)
# ---------------------------------------------------------------------------
def grapher_reference(x, params, heads, k):
    B, C, H, W = x.shape
    N = H * W
    Nh = N // heads
    M = B * N
    BH = B * heads
    xn2d = jnp.transpose(x, (0, 2, 3, 1)).reshape(M, C)           # f32 residual
    xb = xn2d.astype(jnp.bfloat16)

    h = jnp.dot(xb, params["w1"], preferred_element_type=jnp.float32)
    h = h * params["scale1"] + params["shift1"]
    hb = h.astype(jnp.bfloat16)
    xwi = jnp.dot(hb, params["w2i"], preferred_element_type=jnp.float32) + params["b2"]
    xwd = jnp.dot(hb, params["w2d"], preferred_element_type=jnp.float32)

    h3 = h.reshape(BH, Nh, C)
    xwi3 = xwi.reshape(BH, Nh, C)
    xwd3 = xwd.reshape(BH, Nh, C)

    ss = jnp.sum(h3 * h3, axis=-1, keepdims=True)
    xn = (h3 * lax.rsqrt(jnp.maximum(ss, 1e-24))).astype(jnp.bfloat16)
    gram = jnp.einsum("gnc,gmc->gnm", xn, xn, preferred_element_type=jnp.float32)
    _, idx = lax.top_k(gram, k)                                   # nearest = largest cosine

    xwd_j = jax.vmap(lambda a, i: a[i])(xwd3, idx)                # (BH, Nh, k, C) exact gather
    # (x_j - x_i)@Wd hoisted as x_j@Wd - x_i@Wd (algebraically equal to the module)
    e = jax.nn.relu(xwi3[:, :, None, :] - xwd3[:, :, None, :] + xwd_j)
    o = jnp.max(e, axis=2)                                        # max over k neighbors

    o2 = o.reshape(M, C).astype(jnp.bfloat16)
    y = jnp.dot(o2, params["w3"], preferred_element_type=jnp.float32)
    y = y * params["scale3"] + params["shift3"] + xn2d
    return y.reshape(B, H, W, C).transpose(0, 3, 1, 2)


if __name__ == "__main__":
    B, C, H, W = 2, 16, 8, 8          # in_channels=16, spatial 8x8 -> N=64 nodes
    heads, k = 4, 9                   # GrapherConfig defaults
    key = jax.random.PRNGKey(0)
    kx, kp = jax.random.split(key)
    x = jax.random.normal(kx, (B, C, H, W), jnp.float32)
    params = init_params(kp, C)

    y = jax.block_until_ready(grapher_forward(x, params, heads, k))
    y_ref = grapher_reference(x, params, heads, k)

    assert y.shape == (B, C, H, W)
    assert bool(jnp.all(jnp.isfinite(y)))
    err = float(jnp.max(jnp.abs(y - y_ref)))
    assert err < 2e-3, f"max abs err {err}"
    print("KERNEL_OK")
</pallas_src>

<mosaic_0001>
module attributes {stable_mosaic.version = 11 : i64} {
  func.func @_grapher_kernel(%arg0: i32, %arg1: memref<4x16x16xf32, #tpu.memory_space<vmem>>, %arg2: memref<16x16xbf16, #tpu.memory_space<vmem>>, %arg3: memref<1x16xf32, #tpu.memory_space<vmem>>, %arg4: memref<1x16xf32, #tpu.memory_space<vmem>>, %arg5: memref<16x16xbf16, #tpu.memory_space<vmem>>, %arg6: memref<16x16xbf16, #tpu.memory_space<vmem>>, %arg7: memref<1x16xf32, #tpu.memory_space<vmem>>, %arg8: memref<16x16xbf16, #tpu.memory_space<vmem>>, %arg9: memref<1x16xf32, #tpu.memory_space<vmem>>, %arg10: memref<1x16xf32, #tpu.memory_space<vmem>>, %arg11: memref<4x16x16xf32, #tpu.memory_space<vmem>>) attributes {dimension_semantics = [#tpu.dimension_semantics<parallel>], iteration_bounds = array<i64: 2>, scalar_prefetch = 0 : i64, scratch_operands = 0 : i64, tpu.core_type = #tpu.core_type<tc>, window_params = [{transform_indices = @transform_0, window_bounds = array<i64: 4, 16, 16>}, {pipeline_mode = #tpu.pipeline_mode<synchronous>, transform_indices = @transform_1, window_bounds = array<i64: 16, 16>}, {pipeline_mode = #tpu.pipeline_mode<synchronous>, transform_indices = @transform_2, window_bounds = array<i64: 1, 16>}, {pipeline_mode = #tpu.pipeline_mode<synchronous>, transform_indices = @transform_3, window_bounds = array<i64: 1, 16>}, {pipeline_mode = #tpu.pipeline_mode<synchronous>, transform_indices = @transform_4, window_bounds = array<i64: 16, 16>}, {pipeline_mode = #tpu.pipeline_mode<synchronous>, transform_indices = @transform_5, window_bounds = array<i64: 16, 16>}, {pipeline_mode = #tpu.pipeline_mode<synchronous>, transform_indices = @transform_6, window_bounds = array<i64: 1, 16>}, {pipeline_mode = #tpu.pipeline_mode<synchronous>, transform_indices = @transform_7, window_bounds = array<i64: 16, 16>}, {pipeline_mode = #tpu.pipeline_mode<synchronous>, transform_indices = @transform_8, window_bounds = array<i64: 1, 16>}, {pipeline_mode = #tpu.pipeline_mode<synchronous>, transform_indices = @transform_9, window_bounds = array<i64: 1, 16>}, {transform_indices = @transform_10, window_bounds = array<i64: 4, 16, 16>}]} {
    %c0 = arith.constant 0 : index
    %c0_0 = arith.constant 0 : index
    %c0_1 = arith.constant 0 : index
    %0 = vector.load %arg1[%c0, %c0_0, %c0_1] : memref<4x16x16xf32, #tpu.memory_space<vmem>>, vector<4x16x16xf32>
    %1 = vector.shape_cast %0 : vector<4x16x16xf32> to vector<64x16xf32>
    %2 = arith.truncf %1 : vector<64x16xf32> to vector<64x16xbf16>
    %c0_2 = arith.constant 0 : index
    %c0_3 = arith.constant 0 : index
    %3 = vector.load %arg2[%c0_2, %c0_3] : memref<16x16xbf16, #tpu.memory_space<vmem>>, vector<16x16xbf16>
    %cst = arith.constant dense<0.000000e+00> : vector<64x16xf32>
    %4 = tpu.matmul %2, %3, %cst {dimension_numbers = #tpu.dot_dimension_numbers<[1], [0], [0], [1], [0, 0, 1, 1], [], []>} : vector<64x16xbf16>, vector<16x16xbf16>, vector<64x16xf32> -> vector<64x16xf32>
    %c0_4 = arith.constant 0 : index
    %c0_5 = arith.constant 0 : index
    %5 = vector.load %arg3[%c0_4, %c0_5] : memref<1x16xf32, #tpu.memory_space<vmem>>, vector<1x16xf32>
    %6 = vector.broadcast %5 : vector<1x16xf32> to vector<64x16xf32>
    %7 = arith.mulf %4, %6 : vector<64x16xf32>
    %c0_6 = arith.constant 0 : index
    %c0_7 = arith.constant 0 : index
    %8 = vector.load %arg4[%c0_6, %c0_7] : memref<1x16xf32, #tpu.memory_space<vmem>>, vector<1x16xf32>
    %9 = vector.broadcast %8 : vector<1x16xf32> to vector<64x16xf32>
    %10 = arith.addf %7, %9 : vector<64x16xf32>
    %11 = arith.truncf %10 : vector<64x16xf32> to vector<64x16xbf16>
    %c0_8 = arith.constant 0 : index
    %c0_9 = arith.constant 0 : index
    %12 = vector.load %arg5[%c0_8, %c0_9] : memref<16x16xbf16, #tpu.memory_space<vmem>>, vector<16x16xbf16>
    %cst_10 = arith.constant dense<0.000000e+00> : vector<64x16xf32>
    %13 = tpu.matmul %11, %12, %cst_10 {dimension_numbers = #tpu.dot_dimension_numbers<[1], [0], [0], [1], [0, 0, 1, 1], [], []>} : vector<64x16xbf16>, vector<16x16xbf16>, vector<64x16xf32> -> vector<64x16xf32>
    %c0_11 = arith.constant 0 : index
    %c0_12 = arith.constant 0 : index
    %14 = vector.load %arg7[%c0_11, %c0_12] : memref<1x16xf32, #tpu.memory_space<vmem>>, vector<1x16xf32>
    %15 = vector.broadcast %14 : vector<1x16xf32> to vector<64x16xf32>
    %16 = arith.addf %13, %15 : vector<64x16xf32>
    %c0_13 = arith.constant 0 : index
    %c0_14 = arith.constant 0 : index
    %17 = vector.load %arg6[%c0_13, %c0_14] : memref<16x16xbf16, #tpu.memory_space<vmem>>, vector<16x16xbf16>
    %cst_15 = arith.constant dense<0.000000e+00> : vector<64x16xf32>
    %18 = tpu.matmul %11, %17, %cst_15 {dimension_numbers = #tpu.dot_dimension_numbers<[1], [0], [0], [1], [0, 0, 1, 1], [], []>} : vector<64x16xbf16>, vector<16x16xbf16>, vector<64x16xf32> -> vector<64x16xf32>
    %19 = vector.shape_cast %10 : vector<64x16xf32> to vector<4x16x16xf32>
    %20 = vector.shape_cast %16 : vector<64x16xf32> to vector<4x16x16xf32>
    %21 = vector.shape_cast %18 : vector<64x16xf32> to vector<4x16x16xf32>
    %22 = arith.mulf %19, %19 : vector<4x16x16xf32>
    %cst_16 = arith.constant dense<0.000000e+00> : vector<4x16xf32>
    %23 = vector.multi_reduction <add>, %22, %cst_16 [2] : vector<4x16x16xf32> to vector<4x16xf32>
    %24 = vector.shape_cast %23 : vector<4x16xf32> to vector<4x16x1xf32>
    %cst_17 = arith.constant 1.000000e-24 : f32
    %25 = vector.broadcast %cst_17 : f32 to vector<4x16x1xf32>
    %26 = arith.maximumf %24, %25 : vector<4x16x1xf32>
    %27 = math.rsqrt %26 : vector<4x16x1xf32>
    %28 = vector.broadcast %27 : vector<4x16x1xf32> to vector<4x16x16xf32>
    %29 = arith.mulf %19, %28 : vector<4x16x16xf32>
    %30 = arith.truncf %29 : vector<4x16x16xf32> to vector<4x16x16xbf16>
    "tpu.trace_start"() <{level = 10 : i32, message = "gnc,gmc->gnm"}> : () -> ()
    %cst_18 = arith.constant dense<0.000000e+00> : vector<4x16x16xf32>
    %31 = tpu.matmul %30, %30, %cst_18 {dimension_numbers = #tpu.dot_dimension_numbers<[2], [2], [1], [1], [0, 0, 0, 1, 1, 1], [0], [0]>} : vector<4x16x16xbf16>, vector<4x16x16xbf16>, vector<4x16x16xf32> -> vector<4x16x16xf32>
    "tpu.trace_stop"() : () -> ()
    %32 = arith.truncf %21 : vector<4x16x16xf32> to vector<4x16x16xbf16>
    %33 = arith.extf %32 : vector<4x16x16xbf16> to vector<4x16x16xf32>
    %34 = arith.subf %21, %33 : vector<4x16x16xf32>
    %35 = arith.truncf %34 : vector<4x16x16xf32> to vector<4x16x16xbf16>
    %36 = tpu.concatenate %32, %35 in 2 : vector<4x16x16xbf16>, vector<4x16x16xbf16> -> vector<4x16x32xbf16>
    %37 = tpu.iota {dimensions = array<i32: 2>} : vector<4x16x16xi32>
    %cst_19 = arith.constant dense<0xFF800000> : vector<4x16xf32>
    %38 = vector.multi_reduction <maximumf>, %31, %cst_19 [2] : vector<4x16x16xf32> to vector<4x16xf32>
    %39 = vector.shape_cast %38 : vector<4x16xf32> to vector<4x16x1xf32>
    %40 = vector.broadcast %39 : vector<4x16x1xf32> to vector<4x16x16xf32>
    %41 = arith.cmpf oge, %31, %40 : vector<4x16x16xf32>
    %c16_i32 = arith.constant 16 : i32
    %42 = vector.broadcast %c16_i32 : i32 to vector<4x16x16xi32>
    %43 = arith.select %41, %37, %42 : vector<4x16x16xi1>, vector<4x16x16xi32>
    %cst_20 = arith.constant dense<2147483647> : vector<4x16xi32>
    %44 = vector.multi_reduction <minsi>, %43, %cst_20 [2] : vector<4x16x16xi32> to vector<4x16xi32>
    %45 = vector.shape_cast %44 : vector<4x16xi32> to vector<4x16x1xi32>
    %46 = vector.broadcast %45 : vector<4x16x1xi32> to vector<4x16x16xi32>
    %47 = arith.cmpi eq, %37, %46 : vector<4x16x16xi32>
    %cst_21 = arith.constant -1.000000e+30 : f32
    %48 = vector.broadcast %cst_21 : f32 to vector<4x16x16xf32>
    %49 = arith.select %47, %48, %31 : vector<4x16x16xi1>, vector<4x16x16xf32>
    %50 = arith.extui %47 : vector<4x16x16xi1> to vector<4x16x16xi32>
    %51 = arith.sitofp %50 : vector<4x16x16xi32> to vector<4x16x16xf32>
    %52 = arith.truncf %51 : vector<4x16x16xf32> to vector<4x16x16xbf16>
    "tpu.trace_start"() <{level = 10 : i32, message = "gnm,gmc->gnc"}> : () -> ()
    %cst_22 = arith.constant dense<0.000000e+00> : vector<4x16x32xf32>
    %53 = tpu.matmul %52, %36, %cst_22 {dimension_numbers = #tpu.dot_dimension_numbers<[2], [1], [1], [2], [0, 0, 0, 1, 1, 2], [0], [0]>} : vector<4x16x16xbf16>, vector<4x16x32xbf16>, vector<4x16x32xf32> -> vector<4x16x32xf32>
    "tpu.trace_stop"() : () -> ()
    %54 = vector.extract_strided_slice %53 {offsets = [0, 0, 0], sizes = [4, 16, 16], strides = [1, 1, 1]} : vector<4x16x32xf32> to vector<4x16x16xf32>
    %55 = vector.extract_strided_slice %53 {offsets = [0, 0, 16], sizes = [4, 16, 16], strides = [1, 1, 1]} : vector<4x16x32xf32> to vector<4x16x16xf32>
    %56 = arith.addf %54, %55 : vector<4x16x16xf32>
    %cst_23 = arith.constant dense<0xFF800000> : vector<4x16xf32>
    %57 = vector.multi_reduction <maximumf>, %49, %cst_23 [2] : vector<4x16x16xf32> to vector<4x16xf32>
    %58 = vector.shape_cast %57 : vector<4x16xf32> to vector<4x16x1xf32>
    %59 = vector.broadcast %58 : vector<4x16x1xf32> to vector<4x16x16xf32>
    %60 = arith.cmpf oge, %49, %59 : vector<4x16x16xf32>
    %c16_i32_24 = arith.constant 16 : i32
    %61 = vector.broadcast %c16_i32_24 : i32 to vector<4x16x16xi32>
    %62 = arith.select %60, %37, %61 : vector<4x16x16xi1>, vector<4x16x16xi32>
    %cst_25 = arith.constant dense<2147483647> : vector<4x16xi32>
    %63 = vector.multi_reduction <minsi>, %62, %cst_25 [2] : vector<4x16x16xi32> to vector<4x16xi32>
    %64 = vector.shape_cast %63 : vector<4x16xi32> to vector<4x16x1xi32>
    %65 = vector.broadcast %64 : vector<4x16x1xi32> to vector<4x16x16xi32>
    %66 = arith.cmpi eq, %37, %65 : vector<4x16x16xi32>
    %cst_26 = arith.constant -1.000000e+30 : f32
    %67 = vector.broadcast %cst_26 : f32 to vector<4x16x16xf32>
    %68 = arith.select %66, %67, %49 : vector<4x16x16xi1>, vector<4x16x16xf32>
    %69 = arith.extui %66 : vector<4x16x16xi1> to vector<4x16x16xi32>
    %70 = arith.sitofp %69 : vector<4x16x16xi32> to vector<4x16x16xf32>
    %71 = arith.truncf %70 : vector<4x16x16xf32> to vector<4x16x16xbf16>
    "tpu.trace_start"() <{level = 10 : i32, message = "gnm,gmc->gnc"}> : () -> ()
    %cst_27 = arith.constant dense<0.000000e+00> : vector<4x16x32xf32>
    %72 = tpu.matmul %71, %36, %cst_27 {dimension_numbers = #tpu.dot_dimension_numbers<[2], [1], [1], [2], [0, 0, 0, 1, 1, 2], [0], [0]>} : vector<4x16x16xbf16>, vector<4x16x32xbf16>, vector<4x16x32xf32> -> vector<4x16x32xf32>
    "tpu.trace_stop"() : () -> ()
    %73 = vector.extract_strided_slice %72 {offsets = [0, 0, 0], sizes = [4, 16, 16], strides = [1, 1, 1]} : vector<4x16x32xf32> to vector<4x16x16xf32>
    %74 = vector.extract_strided_slice %72 {offsets = [0, 0, 16], sizes = [4, 16, 16], strides = [1, 1, 1]} : vector<4x16x32xf32> to vector<4x16x16xf32>
    %75 = arith.addf %73, %74 : vector<4x16x16xf32>
    %76 = arith.maximumf %56, %75 : vector<4x16x16xf32>
    %cst_28 = arith.constant dense<0xFF800000> : vector<4x16xf32>
    %77 = vector.multi_reduction <maximumf>, %68, %cst_28 [2] : vector<4x16x16xf32> to vector<4x16xf32>
    %78 = vector.shape_cast %77 : vector<4x16xf32> to vector<4x16x1xf32>
    %79 = vector.broadcast %78 : vector<4x16x1xf32> to vector<4x16x16xf32>
    %80 = arith.cmpf oge, %68, %79 : vector<4x16x16xf32>
    %c16_i32_29 = arith.constant 16 : i32
    %81 = vector.broadcast %c16_i32_29 : i32 to vector<4x16x16xi32>
    %82 = arith.select %80, %37, %81 : vector<4x16x16xi1>, vector<4x16x16xi32>
    %cst_30 = arith.constant dense<2147483647> : vector<4x16xi32>
    %83 = vector.multi_reduction <minsi>, %82, %cst_30 [2] : vector<4x16x16xi32> to vector<4x16xi32>
    %84 = vector.shape_cast %83 : vector<4x16xi32> to vector<4x16x1xi32>
    %85 = vector.broadcast %84 : vector<4x16x1xi32> to vector<4x16x16xi32>
    %86 = arith.cmpi eq, %37, %85 : vector<4x16x16xi32>
    %cst_31 = arith.constant -1.000000e+30 : f32
    %87 = vector.broadcast %cst_31 : f32 to vector<4x16x16xf32>
    %88 = arith.select %86, %87, %68 : vector<4x16x16xi1>, vector<4x16x16xf32>
    %89 = arith.extui %86 : vector<4x16x16xi1> to vector<4x16x16xi32>
    %90 = arith.sitofp %89 : vector<4x16x16xi32> to vector<4x16x16xf32>
    %91 = arith.truncf %90 : vector<4x16x16xf32> to vector<4x16x16xbf16>
    "tpu.trace_start"() <{level = 10 : i32, message = "gnm,gmc->gnc"}> : () -> ()
    %cst_32 = arith.constant dense<0.000000e+00> : vector<4x16x32xf32>
    %92 = tpu.matmul %91, %36, %cst_32 {dimension_numbers = #tpu.dot_dimension_numbers<[2], [1], [1], [2], [0, 0, 0, 1, 1, 2], [0], [0]>} : vector<4x16x16xbf16>, vector<4x16x32xbf16>, vector<4x16x32xf32> -> vector<4x16x32xf32>
    "tpu.trace_stop"() : () -> ()
    %93 = vector.extract_strided_slice %92 {offsets = [0, 0, 0], sizes = [4, 16, 16], strides = [1, 1, 1]} : vector<4x16x32xf32> to vector<4x16x16xf32>
    %94 = vector.extract_strided_slice %92 {offsets = [0, 0, 16], sizes = [4, 16, 16], strides = [1, 1, 1]} : vector<4x16x32xf32> to vector<4x16x16xf32>
    %95 = arith.addf %93, %94 : vector<4x16x16xf32>
    %96 = arith.maximumf %76, %95 : vector<4x16x16xf32>
    %cst_33 = arith.constant dense<0xFF800000> : vector<4x16xf32>
    %97 = vector.multi_reduction <maximumf>, %88, %cst_33 [2] : vector<4x16x16xf32> to vector<4x16xf32>
    %98 = vector.shape_cast %97 : vector<4x16xf32> to vector<4x16x1xf32>
    %99 = vector.broadcast %98 : vector<4x16x1xf32> to vector<4x16x16xf32>
    %100 = arith.cmpf oge, %88, %99 : vector<4x16x16xf32>
    %c16_i32_34 = arith.constant 16 : i32
    %101 = vector.broadcast %c16_i32_34 : i32 to vector<4x16x16xi32>
    %102 = arith.select %100, %37, %101 : vector<4x16x16xi1>, vector<4x16x16xi32>
    %cst_35 = arith.constant dense<2147483647> : vector<4x16xi32>
    %103 = vector.multi_reduction <minsi>, %102, %cst_35 [2] : vector<4x16x16xi32> to vector<4x16xi32>
    %104 = vector.shape_cast %103 : vector<4x16xi32> to vector<4x16x1xi32>
    %105 = vector.broadcast %104 : vector<4x16x1xi32> to vector<4x16x16xi32>
    %106 = arith.cmpi eq, %37, %105 : vector<4x16x16xi32>
    %cst_36 = arith.constant -1.000000e+30 : f32
    %107 = vector.broadcast %cst_36 : f32 to vector<4x16x16xf32>
    %108 = arith.select %106, %107, %88 : vector<4x16x16xi1>, vector<4x16x16xf32>
    %109 = arith.extui %106 : vector<4x16x16xi1> to vector<4x16x16xi32>
    %110 = arith.sitofp %109 : vector<4x16x16xi32> to vector<4x16x16xf32>
    %111 = arith.truncf %110 : vector<4x16x16xf32> to vector<4x16x16xbf16>
    "tpu.trace_start"() <{level = 10 : i32, message = "gnm,gmc->gnc"}> : () -> ()
    %cst_37 = arith.constant dense<0.000000e+00> : vector<4x16x32xf32>
    %112 = tpu.matmul %111, %36, %cst_37 {dimension_numbers = #tpu.dot_dimension_numbers<[2], [1], [1], [2], [0, 0, 0, 1, 1, 2], [0], [0]>} : vector<4x16x16xbf16>, vector<4x16x32xbf16>, vector<4x16x32xf32> -> vector<4x16x32xf32>
    "tpu.trace_stop"() : () -> ()
    %113 = vector.extract_strided_slice %112 {offsets = [0, 0, 0], sizes = [4, 16, 16], strides = [1, 1, 1]} : vector<4x16x32xf32> to vector<4x16x16xf32>
    %114 = vector.extract_strided_slice %112 {offsets = [0, 0, 16], sizes = [4, 16, 16], strides = [1, 1, 1]} : vector<4x16x32xf32> to vector<4x16x16xf32>
    %115 = arith.addf %113, %114 : vector<4x16x16xf32>
    %116 = arith.maximumf %96, %115 : vector<4x16x16xf32>
    %cst_38 = arith.constant dense<0xFF800000> : vector<4x16xf32>
    %117 = vector.multi_reduction <maximumf>, %108, %cst_38 [2] : vector<4x16x16xf32> to vector<4x16xf32>
    %118 = vector.shape_cast %117 : vector<4x16xf32> to vector<4x16x1xf32>
    %119 = vector.broadcast %118 : vector<4x16x1xf32> to vector<4x16x16xf32>
    %120 = arith.cmpf oge, %108, %119 : vector<4x16x16xf32>
    %c16_i32_39 = arith.constant 16 : i32
    %121 = vector.broadcast %c16_i32_39 : i32 to vector<4x16x16xi32>
    %122 = arith.select %120, %37, %121 : vector<4x16x16xi1>, vector<4x16x16xi32>
    %cst_40 = arith.constant dense<2147483647> : vector<4x16xi32>
    %123 = vector.multi_reduction <minsi>, %122, %cst_40 [2] : vector<4x16x16xi32> to vector<4x16xi32>
    %124 = vector.shape_cast %123 : vector<4x16xi32> to vector<4x16x1xi32>
    %125 = vector.broadcast %124 : vector<4x16x1xi32> to vector<4x16x16xi32>
    %126 = arith.cmpi eq, %37, %125 : vector<4x16x16xi32>
    %cst_41 = arith.constant -1.000000e+30 : f32
    %127 = vector.broadcast %cst_41 : f32 to vector<4x16x16xf32>
    %128 = arith.select %126, %127, %108 : vector<4x16x16xi1>, vector<4x16x16xf32>
    %129 = arith.extui %126 : vector<4x16x16xi1> to vector<4x16x16xi32>
    %130 = arith.sitofp %129 : vector<4x16x16xi32> to vector<4x16x16xf32>
    %131 = arith.truncf %130 : vector<4x16x16xf32> to vector<4x16x16xbf16>
    "tpu.trace_start"() <{level = 10 : i32, message = "gnm,gmc->gnc"}> : () -> ()
    %cst_42 = arith.constant dense<0.000000e+00> : vector<4x16x32xf32>
    %132 = tpu.matmul %131, %36, %cst_42 {dimension_numbers = #tpu.dot_dimension_numbers<[2], [1], [1], [2], [0, 0, 0, 1, 1, 2], [0], [0]>} : vector<4x16x16xbf16>, vector<4x16x32xbf16>, vector<4x16x32xf32> -> vector<4x16x32xf32>
    "tpu.trace_stop"() : () -> ()
    %133 = vector.extract_strided_slice %132 {offsets = [0, 0, 0], sizes = [4, 16, 16], strides = [1, 1, 1]} : vector<4x16x32xf32> to vector<4x16x16xf32>
    %134 = vector.extract_strided_slice %132 {offsets = [0, 0, 16], sizes = [4, 16, 16], strides = [1, 1, 1]} : vector<4x16x32xf32> to vector<4x16x16xf32>
    %135 = arith.addf %133, %134 : vector<4x16x16xf32>
    %136 = arith.maximumf %116, %135 : vector<4x16x16xf32>
    %cst_43 = arith.constant dense<0xFF800000> : vector<4x16xf32>
    %137 = vector.multi_reduction <maximumf>, %128, %cst_43 [2] : vector<4x16x16xf32> to vector<4x16xf32>
    %138 = vector.shape_cast %137 : vector<4x16xf32> to vector<4x16x1xf32>
    %139 = vector.broadcast %138 : vector<4x16x1xf32> to vector<4x16x16xf32>
    %140 = arith.cmpf oge, %128, %139 : vector<4x16x16xf32>
    %c16_i32_44 = arith.constant 16 : i32
    %141 = vector.broadcast %c16_i32_44 : i32 to vector<4x16x16xi32>
    %142 = arith.select %140, %37, %141 : vector<4x16x16xi1>, vector<4x16x16xi32>
    %cst_45 = arith.constant dense<2147483647> : vector<4x16xi32>
    %143 = vector.multi_reduction <minsi>, %142, %cst_45 [2] : vector<4x16x16xi32> to vector<4x16xi32>
    %144 = vector.shape_cast %143 : vector<4x16xi32> to vector<4x16x1xi32>
    %145 = vector.broadcast %144 : vector<4x16x1xi32> to vector<4x16x16xi32>
    %146 = arith.cmpi eq, %37, %145 : vector<4x16x16xi32>
    %cst_46 = arith.constant -1.000000e+30 : f32
    %147 = vector.broadcast %cst_46 : f32 to vector<4x16x16xf32>
    %148 = arith.select %146, %147, %128 : vector<4x16x16xi1>, vector<4x16x16xf32>
    %149 = arith.extui %146 : vector<4x16x16xi1> to vector<4x16x16xi32>
    %150 = arith.sitofp %149 : vector<4x16x16xi32> to vector<4x16x16xf32>
    %151 = arith.truncf %150 : vector<4x16x16xf32> to vector<4x16x16xbf16>
    "tpu.trace_start"() <{level = 10 : i32, message = "gnm,gmc->gnc"}> : () -> ()
    %cst_47 = arith.constant dense<0.000000e+00> : vector<4x16x32xf32>
    %152 = tpu.matmul %151, %36, %cst_47 {dimension_numbers = #tpu.dot_dimension_numbers<[2], [1], [1], [2], [0, 0, 0, 1, 1, 2], [0], [0]>} : vector<4x16x16xbf16>, vector<4x16x32xbf16>, vector<4x16x32xf32> -> vector<4x16x32xf32>
    "tpu.trace_stop"() : () -> ()
    %153 = vector.extract_strided_slice %152 {offsets = [0, 0, 0], sizes = [4, 16, 16], strides = [1, 1, 1]} : vector<4x16x32xf32> to vector<4x16x16xf32>
    %154 = vector.extract_strided_slice %152 {offsets = [0, 0, 16], sizes = [4, 16, 16], strides = [1, 1, 1]} : vector<4x16x32xf32> to vector<4x16x16xf32>
    %155 = arith.addf %153, %154 : vector<4x16x16xf32>
    %156 = arith.maximumf %136, %155 : vector<4x16x16xf32>
    %cst_48 = arith.constant dense<0xFF800000> : vector<4x16xf32>
    %157 = vector.multi_reduction <maximumf>, %148, %cst_48 [2] : vector<4x16x16xf32> to vector<4x16xf32>
    %158 = vector.shape_cast %157 : vector<4x16xf32> to vector<4x16x1xf32>
    %159 = vector.broadcast %158 : vector<4x16x1xf32> to vector<4x16x16xf32>
    %160 = arith.cmpf oge, %148, %159 : vector<4x16x16xf32>
    %c16_i32_49 = arith.constant 16 : i32
    %161 = vector.broadcast %c16_i32_49 : i32 to vector<4x16x16xi32>
    %162 = arith.select %160, %37, %161 : vector<4x16x16xi1>, vector<4x16x16xi32>
    %cst_50 = arith.constant dense<2147483647> : vector<4x16xi32>
    %163 = vector.multi_reduction <minsi>, %162, %cst_50 [2] : vector<4x16x16xi32> to vector<4x16xi32>
    %164 = vector.shape_cast %163 : vector<4x16xi32> to vector<4x16x1xi32>
    %165 = vector.broadcast %164 : vector<4x16x1xi32> to vector<4x16x16xi32>
    %166 = arith.cmpi eq, %37, %165 : vector<4x16x16xi32>
    %cst_51 = arith.constant -1.000000e+30 : f32
    %167 = vector.broadcast %cst_51 : f32 to vector<4x16x16xf32>
    %168 = arith.select %166, %167, %148 : vector<4x16x16xi1>, vector<4x16x16xf32>
    %169 = arith.extui %166 : vector<4x16x16xi1> to vector<4x16x16xi32>
    %170 = arith.sitofp %169 : vector<4x16x16xi32> to vector<4x16x16xf32>
    %171 = arith.truncf %170 : vector<4x16x16xf32> to vector<4x16x16xbf16>
    "tpu.trace_start"() <{level = 10 : i32, message = "gnm,gmc->gnc"}> : () -> ()
    %cst_52 = arith.constant dense<0.000000e+00> : vector<4x16x32xf32>
    %172 = tpu.matmul %171, %36, %cst_52 {dimension_numbers = #tpu.dot_dimension_numbers<[2], [1], [1], [2], [0, 0, 0, 1, 1, 2], [0], [0]>} : vector<4x16x16xbf16>, vector<4x16x32xbf16>, vector<4x16x32xf32> -> vector<4x16x32xf32>
    "tpu.trace_stop"() : () -> ()
    %173 = vector.extract_strided_slice %172 {offsets = [0, 0, 0], sizes = [4, 16, 16], strides = [1, 1, 1]} : vector<4x16x32xf32> to vector<4x16x16xf32>
    %174 = vector.extract_strided_slice %172 {offsets = [0, 0, 16], sizes = [4, 16, 16], strides = [1, 1, 1]} : vector<4x16x32xf32> to vector<4x16x16xf32>
    %175 = arith.addf %173, %174 : vector<4x16x16xf32>
    %176 = arith.maximumf %156, %175 : vector<4x16x16xf32>
    %cst_53 = arith.constant dense<0xFF800000> : vector<4x16xf32>
    %177 = vector.multi_reduction <maximumf>, %168, %cst_53 [2] : vector<4x16x16xf32> to vector<4x16xf32>
    %178 = vector.shape_cast %177 : vector<4x16xf32> to vector<4x16x1xf32>
    %179 = vector.broadcast %178 : vector<4x16x1xf32> to vector<4x16x16xf32>
    %180 = arith.cmpf oge, %168, %179 : vector<4x16x16xf32>
    %c16_i32_54 = arith.constant 16 : i32
    %181 = vector.broadcast %c16_i32_54 : i32 to vector<4x16x16xi32>
    %182 = arith.select %180, %37, %181 : vector<4x16x16xi1>, vector<4x16x16xi32>
    %cst_55 = arith.constant dense<2147483647> : vector<4x16xi32>
    %183 = vector.multi_reduction <minsi>, %182, %cst_55 [2] : vector<4x16x16xi32> to vector<4x16xi32>
    %184 = vector.shape_cast %183 : vector<4x16xi32> to vector<4x16x1xi32>
    %185 = vector.broadcast %184 : vector<4x16x1xi32> to vector<4x16x16xi32>
    %186 = arith.cmpi eq, %37, %185 : vector<4x16x16xi32>
    %cst_56 = arith.constant -1.000000e+30 : f32
    %187 = vector.broadcast %cst_56 : f32 to vector<4x16x16xf32>
    %188 = arith.select %186, %187, %168 : vector<4x16x16xi1>, vector<4x16x16xf32>
    %189 = arith.extui %186 : vector<4x16x16xi1> to vector<4x16x16xi32>
    %190 = arith.sitofp %189 : vector<4x16x16xi32> to vector<4x16x16xf32>
    %191 = arith.truncf %190 : vector<4x16x16xf32> to vector<4x16x16xbf16>
    "tpu.trace_start"() <{level = 10 : i32, message = "gnm,gmc->gnc"}> : () -> ()
    %cst_57 = arith.constant dense<0.000000e+00> : vector<4x16x32xf32>
    %192 = tpu.matmul %191, %36, %cst_57 {dimension_numbers = #tpu.dot_dimension_numbers<[2], [1], [1], [2], [0, 0, 0, 1, 1, 2], [0], [0]>} : vector<4x16x16xbf16>, vector<4x16x32xbf16>, vector<4x16x32xf32> -> vector<4x16x32xf32>
    "tpu.trace_stop"() : () -> ()
    %193 = vector.extract_strided_slice %192 {offsets = [0, 0, 0], sizes = [4, 16, 16], strides = [1, 1, 1]} : vector<4x16x32xf32> to vector<4x16x16xf32>
    %194 = vector.extract_strided_slice %192 {offsets = [0, 0, 16], sizes = [4, 16, 16], strides = [1, 1, 1]} : vector<4x16x32xf32> to vector<4x16x16xf32>
    %195 = arith.addf %193, %194 : vector<4x16x16xf32>
    %196 = arith.maximumf %176, %195 : vector<4x16x16xf32>
    %cst_58 = arith.constant dense<0xFF800000> : vector<4x16xf32>
    %197 = vector.multi_reduction <maximumf>, %188, %cst_58 [2] : vector<4x16x16xf32> to vector<4x16xf32>
    %198 = vector.shape_cast %197 : vector<4x16xf32> to vector<4x16x1xf32>
    %199 = vector.broadcast %198 : vector<4x16x1xf32> to vector<4x16x16xf32>
    %200 = arith.cmpf oge, %188, %199 : vector<4x16x16xf32>
    %c16_i32_59 = arith.constant 16 : i32
    %201 = vector.broadcast %c16_i32_59 : i32 to vector<4x16x16xi32>
    %202 = arith.select %200, %37, %201 : vector<4x16x16xi1>, vector<4x16x16xi32>
    %cst_60 = arith.constant dense<2147483647> : vector<4x16xi32>
    %203 = vector.multi_reduction <minsi>, %202, %cst_60 [2] : vector<4x16x16xi32> to vector<4x16xi32>
    %204 = vector.shape_cast %203 : vector<4x16xi32> to vector<4x16x1xi32>
    %205 = vector.broadcast %204 : vector<4x16x1xi32> to vector<4x16x16xi32>
    %206 = arith.cmpi eq, %37, %205 : vector<4x16x16xi32>
    %207 = arith.extui %206 : vector<4x16x16xi1> to vector<4x16x16xi32>
    %208 = arith.sitofp %207 : vector<4x16x16xi32> to vector<4x16x16xf32>
    %209 = arith.truncf %208 : vector<4x16x16xf32> to vector<4x16x16xbf16>
    "tpu.trace_start"() <{level = 10 : i32, message = "gnm,gmc->gnc"}> : () -> ()
    %cst_61 = arith.constant dense<0.000000e+00> : vector<4x16x32xf32>
    %210 = tpu.matmul %209, %36, %cst_61 {dimension_numbers = #tpu.dot_dimension_numbers<[2], [1], [1], [2], [0, 0, 0, 1, 1, 2], [0], [0]>} : vector<4x16x16xbf16>, vector<4x16x32xbf16>, vector<4x16x32xf32> -> vector<4x16x32xf32>
    "tpu.trace_stop"() : () -> ()
    %211 = vector.extract_strided_slice %210 {offsets = [0, 0, 0], sizes = [4, 16, 16], strides = [1, 1, 1]} : vector<4x16x32xf32> to vector<4x16x16xf32>
    %212 = vector.extract_strided_slice %210 {offsets = [0, 0, 16], sizes = [4, 16, 16], strides = [1, 1, 1]} : vector<4x16x32xf32> to vector<4x16x16xf32>
    %213 = arith.addf %211, %212 : vector<4x16x16xf32>
    %214 = arith.maximumf %196, %213 : vector<4x16x16xf32>
    %215 = arith.subf %20, %21 : vector<4x16x16xf32>
    %216 = arith.addf %215, %214 : vector<4x16x16xf32>
    %cst_62 = arith.constant 0.000000e+00 : f32
    %217 = vector.broadcast %cst_62 : f32 to vector<4x16x16xf32>
    %218 = arith.maximumf %216, %217 : vector<4x16x16xf32>
    %219 = vector.shape_cast %218 : vector<4x16x16xf32> to vector<64x16xf32>
    %220 = arith.truncf %219 : vector<64x16xf32> to vector<64x16xbf16>
    %c0_63 = arith.constant 0 : index
    %c0_64 = arith.constant 0 : index
    %221 = vector.load %arg8[%c0_63, %c0_64] : memref<16x16xbf16, #tpu.memory_space<vmem>>, vector<16x16xbf16>
    %cst_65 = arith.constant dense<0.000000e+00> : vector<64x16xf32>
    %222 = tpu.matmul %220, %221, %cst_65 {dimension_numbers = #tpu.dot_dimension_numbers<[1], [0], [0], [1], [0, 0, 1, 1], [], []>} : vector<64x16xbf16>, vector<16x16xbf16>, vector<64x16xf32> -> vector<64x16xf32>
    %c0_66 = arith.constant 0 : index
    %c0_67 = arith.constant 0 : index
    %223 = vector.load %arg9[%c0_66, %c0_67] : memref<1x16xf32, #tpu.memory_space<vmem>>, vector<1x16xf32>
    %224 = vector.broadcast %223 : vector<1x16xf32> to vector<64x16xf32>
    %225 = arith.mulf %222, %224 : vector<64x16xf32>
    %c0_68 = arith.constant 0 : index
    %c0_69 = arith.constant 0 : index
    %226 = vector.load %arg10[%c0_68, %c0_69] : memref<1x16xf32, #tpu.memory_space<vmem>>, vector<1x16xf32>
    %227 = vector.broadcast %226 : vector<1x16xf32> to vector<64x16xf32>
    %228 = arith.addf %225, %227 : vector<64x16xf32>
    %229 = vector.shape_cast %228 : vector<64x16xf32> to vector<4x16x16xf32>
    %230 = arith.addf %229, %0 : vector<4x16x16xf32>
    %c0_70 = arith.constant 0 : index
    %c0_71 = arith.constant 0 : index
    %c0_72 = arith.constant 0 : index
    %231 = vector.load %arg11[%c0_70, %c0_71, %c0_72] : memref<4x16x16xf32, #tpu.memory_space<vmem>>, vector<4x16x16xf32>
    tpu.vector_store %arg11[%c0_70, %c0_71, %c0_72], %230 {strides = array<i32>} : memref<4x16x16xf32, #tpu.memory_space<vmem>>, vector<4x16x16xf32>,
    return
  }
  func.func @transform_0(%arg0: i32) -> (i32, i32, i32) {
    %c0_i32 = arith.constant 0 : i32
    %c0_i32_0 = arith.constant 0 : i32
    %c0_i32_1 = arith.constant 0 : i32
    return %arg0, %c0_i32, %c0_i32_0 : i32, i32, i32
  }
  func.func @transform_1(%arg0: i32) -> (i32, i32) {
    %c0_i32 = arith.constant 0 : i32
    %c0_i32_0 = arith.constant 0 : i32
    %c0_i32_1 = arith.constant 0 : i32
    return %c0_i32, %c0_i32_0 : i32, i32
  }
  func.func @transform_2(%arg0: i32) -> (i32, i32) {
    %c0_i32 = arith.constant 0 : i32
    %c0_i32_0 = arith.constant 0 : i32
    %c0_i32_1 = arith.constant 0 : i32
    return %c0_i32, %c0_i32_0 : i32, i32
  }
  func.func @transform_3(%arg0: i32) -> (i32, i32) {
    %c0_i32 = arith.constant 0 : i32
    %c0_i32_0 = arith.constant 0 : i32
    %c0_i32_1 = arith.constant 0 : i32
    return %c0_i32, %c0_i32_0 : i32, i32
  }
  func.func @transform_4(%arg0: i32) -> (i32, i32) {
    %c0_i32 = arith.constant 0 : i32
    %c0_i32_0 = arith.constant 0 : i32
    %c0_i32_1 = arith.constant 0 : i32
    return %c0_i32, %c0_i32_0 : i32, i32
  }
  func.func @transform_5(%arg0: i32) -> (i32, i32) {
    %c0_i32 = arith.constant 0 : i32
    %c0_i32_0 = arith.constant 0 : i32
    %c0_i32_1 = arith.constant 0 : i32
    return %c0_i32, %c0_i32_0 : i32, i32
  }
  func.func @transform_6(%arg0: i32) -> (i32, i32) {
    %c0_i32 = arith.constant 0 : i32
    %c0_i32_0 = arith.constant 0 : i32
    %c0_i32_1 = arith.constant 0 : i32
    return %c0_i32, %c0_i32_0 : i32, i32
  }
  func.func @transform_7(%arg0: i32) -> (i32, i32) {
    %c0_i32 = arith.constant 0 : i32
    %c0_i32_0 = arith.constant 0 : i32
    %c0_i32_1 = arith.constant 0 : i32
    return %c0_i32, %c0_i32_0 : i32, i32
  }
  func.func @transform_8(%arg0: i32) -> (i32, i32) {
    %c0_i32 = arith.constant 0 : i32
    %c0_i32_0 = arith.constant 0 : i32
    %c0_i32_1 = arith.constant 0 : i32
    return %c0_i32, %c0_i32_0 : i32, i32
  }
  func.func @transform_9(%arg0: i32) -> (i32, i32) {
    %c0_i32 = arith.constant 0 : i32
    %c0_i32_0 = arith.constant 0 : i32
    %c0_i32_1 = arith.constant 0 : i32
    return %c0_i32, %c0_i32_0 : i32, i32
  }
  func.func @transform_10(%arg0: i32) -> (i32, i32, i32) {
    %c0_i32 = arith.constant 0 : i32
    %c0_i32_0 = arith.constant 0 : i32
    %c0_i32_1 = arith.constant 0 : i32
    return %arg0, %c0_i32, %c0_i32_0 : i32, i32, i32
  }
}

</mosaic_0001>

<bundles_post_ra>
// kernel: tpu_custom_call.1
= control target key start
LH: loop header
LB: loop body
LE: loop exit
PB: predicated region body
PF: predicated region fallthrough
CT: control target
= control target key end

     0   :  { %15 = vsyncpa [#allocation3], 0  ;;  %s8171_s0 = inlined_call_operand.hbm [shape: f32[8,16,16], index: 0, kind: input, shape index: {}]   ;;  %s8172_s1 = inlined_call_operand.hbm [shape: bf16[16,16], index: 1, kind: input, shape index: {}]   ;;  %s8173_s2 = inlined_call_operand.vmem [shape: f32[1,16], index: 2, kind: input, shape index: {}]   ;;  %s8174_s3 = inlined_call_operand.vmem [shape: f32[1,16], index: 3, kind: input, shape index: {}]   ;;  %s8175_s4 = inlined_call_operand.vmem [shape: bf16[16,16], index: 4, kind: input, shape index: {}]   ;;  %s8176_s5 = inlined_call_operand.vmem [shape: bf16[16,16], index: 5, kind: input, shape index: {}]   ;;  %s8177_s6 = inlined_call_operand.hbm [shape: f32[1,16], index: 6, kind: input, shape index: {}]   ;;  %s8178_s7 = inlined_call_operand.vmem [shape: bf16[16,16], index: 7, kind: input, shape index: {}]   ;;  %s8179_s8 = inlined_call_operand.vmem [shape: f32[1,16], index: 8, kind: input, shape index: {}]   ;;  %s8180_s9 = inlined_call_operand.vmem [shape: f32[1,16], index: 9, kind: input, shape index: {}]   ;;  %s8181_s10 = inlined_call_operand.hbm [shape: f32[8,16,16], index: 10, kind: output, shape index: {}]  }
   0x1   :  { %17 = vsyncpa [#allocation3 + $0x1], 0 }
   0x2   :  { %18 = vsyncpa [#allocation6], 0 }
   0x3   :  { %19 = vsyncpa [#allocation4], 0 }
   0x4   :  { %21 = vsyncpa [#allocation4 + $0x1], 0  ;;  %s5901_s13 = smov 0   ;;  %s5903_s14 = smov 0  }
   0x5   :  { %s5905_s15 = smov 0   ;;  %s5907_s16 = smov 0  }
   0x6 LB: > { %8259 = sst [smem:[#allocation12_spill]] %s5818_s13  ;;  %s5922_s17 = sadd.s32 4294967295, %s5830_s16   ;;  %s5830_s16 = sphi %s5907_s16, %s8460_s16   ;;  %s5826_s15 = sphi %s5905_s15, %s8459_s15   ;;  %s5822_s14 = sphi %s5903_s14, %s8458_s14   ;;  %s5818_s13 = sphi %s5901_s13, %s8457_s13  }
   0x7   : > { %s5026_s18 = sadd.s32 4294967294, %s5830_s16   ;;  %p47_p0 = scmp.ne.s32.totalorder %s5822_s14, %s5818_s13 }
   0x8   : > { %p8182_p1 = scmp.eq.s32.totalorder %s5922_s17, 0  ;;  %p266_p3 = scmp.eq.s32.totalorder %s5026_s18, 1 }
   0x9   : > { %p5027_p5 = scmp.ge.s32.totalorder %s5830_s16, 1  ;;  %p273_p7 = scmp.lt.s32.totalorder %s5830_s16, 3 }
   0xa   : > { %p5931_p4 = por %p8182_p1, %p47_p0  ;;  %p5936_p6 = por %p266_p3, %p47_p0 }
   0xb   : > { %p5941_p8 = pnand %p5027_p5, %p273_p7  ;;  %s5832_s22 = smov [#allocation5]  }
   0xc   : > { %s8260_s19 = scalar_select %p5931_p4, 1, 0 }
   0xd   : > { %s8261_s20 = scalar_select %p5936_p6, 1, 0 }
   0xe   : > { %s285_s23 = sshll.u32 %s5832_s22, 4  ;;  %p5581_p9 = pneg %p5941_p8  ;;  %s5945_s23 = int_to_ptr.vmem [resolvable:$true] %s285_s23 }
   0xf   : > { %8262 = sst [smem:[#allocation13_spill]] %s8261_s20  ;;  %s5833_s25 = smov [#allocation7]  }
  0x10   : > { %p5952_p11 = pnand %p5581_p9, %p8182_p1  ;;  %s311_s26 = sshll.u32 %s5833_s25, 4  ;;  %s5956_s26 = int_to_ptr.vmem [resolvable:$true] %s311_s26 }
  0x11   : > { %s5674_s29 = scalar_lea.hbm %s8172_s1, 128 }
  0x12   : > { %p5675_p12 = scmp.ne.s32.totalorder %s8172_s1, %s5674_s29  ;;  %p5676_p13 = pneg %p5952_p11 }
  0x13   : > { %p5681_p5 = scmp.lt.u32.totalorder %s5674_s29, %s8172_s1 }
  0x14   : > { %p5677_p0 = pnand %p5676_p13, %p5675_p12 }
  0x16   : > { %p5678_p3 = pneg %p5677_p0 }
  0x18   : > { %p5683_p7 = pnand %p5681_p5, %p5678_p3 }
  0x1a   : > { %5686 = shalt.err (!%p5683_p7)
}
  0x1b   : > { %s5687_s22 = scalar_lea.vmem %s5945_s23, 128  ;;  %p5695_p2 = scmp.lt.s32.totalorder %s5945_s23, %s5945_s23 }
  0x1c   : > { %p5688_p9 = scmp.ne.s32.totalorder %s5945_s23, %s5687_s22  ;;  %p5696_p12 = scmp.lt.s32.totalorder %s5687_s22, %s5687_s22 }
  0x1e   : > { %p5690_p10 = pnand %p5688_p9, %p5676_p13  ;;  %p5697_p0 = por %p5696_p12, %p5695_p2 }
  0x20   : > { %p5691_p1 = pneg %p5690_p10 }
  0x22   : > { %p5698_p6 = pnand %p5697_p0, %p5691_p1 }
  0x24   : > { %5701 = shalt.err (!%p5698_p6)
}
  0x25   : > { %s5834_s25 = smov 64   ;;  %s5835_s27 = smov 4  }
  0x26   : > { %5584 = dma.hbm_to_vmem [thread:$0]  (!%p5952_p11), %s8172_s1, 128, %s5945_s23, [#allocation6], %s5834_s25, %s5834_s25, %s5835_s27  }
  0x27   : > { %s5702_s12 = scalar_lea.hbm %s8177_s6, 16 }
  0x28   : > { %p5703_p2 = scmp.ne.s32.totalorder %s8177_s6, %s5702_s12  ;;  %p5709_p10 = scmp.lt.u32.totalorder %s5702_s12, %s8177_s6 }
  0x2a   : > { %p5705_p1 = pnand %p5703_p2, %p5676_p13 }
  0x2c   : > { %p5706_p6 = pneg %p5705_p1 }
  0x2e   : > { %p5711_p3 = pnand %p5709_p10, %p5706_p6 }
  0x30   : > { %5714 = shalt.err (!%p5711_p3)
}
  0x31   : > { %s5715_s23 = scalar_lea.vmem %s5956_s26, 16  ;;  %s5722_s20 = scalar_lea.vmem %s5956_s26, 32 }
  0x32   : > { %p5716_p5 = scmp.ne.s32.totalorder %s5956_s26, %s5715_s23  ;;  %p5723_p12 = scmp.lt.s32.totalorder %s5956_s26, %s5956_s26 }
  0x33   : > { %p5724_p0 = scmp.lt.s32.totalorder %s5722_s20, %s5715_s23 }
  0x34   : > { %p5718_p7 = pnand %p5716_p5, %p5676_p13 }
  0x35   : > { %p5725_p2 = por %p5724_p0, %p5723_p12 }
  0x36   : > { %p5719_p9 = pneg %p5718_p7 }
  0x38   : > { %p5726_p1 = pnand %p5725_p2, %p5719_p9 }
  0x3a   : > { %5729 = shalt.err (!%p5726_p1)
}
  0x3b   : > { %5587 = dma.hbm_to_vmem [thread:$0]  (!%p5952_p11), %s8177_s6, 16, %s5956_s26, [#allocation6]  }
  0x3c   : > { %s6012_s27 = sadd.s32 1, %s5830_s16   ;;  %s34_s24 = sadd.s32 1, %s5826_s15 }
  0x3d   : > { %s31_s28 = ssub.s32 %s5830_s16, %s6012_s27  ;;  %p41_p13 = scmp.ne.s32.totalorder %s5826_s15, %s5822_s14 }
  0x3e   : > { %p32_p6 = scmp.eq.s32.totalorder %s31_s28, 0  ;;  %p42_p10 = scmp.eq.s32.totalorder %s5830_s16, 0 }
  0x3f   : > { %p8265_p3 = scmp.eq.s32.totalorder %s5922_s17, 1  ;;  %p5598_p7 = scmp.lt.s32.totalorder %s5830_s16, 2 }
  0x40   : > { %s6028_s30 = scalar_select %p32_p6, %s5826_s15, %s34_s24  }
  0x41   : > { %p6022_p5 = por %p8265_p3, %p41_p13  ;;  %p43_p9 = por %p42_p10, %p41_p13 }
  0x42   : > { %s331_s11 = sand.u32 1, %s5826_s15   ;;  %s5184_s26 = sshll.u32 %s5830_s16, 10 }
  0x43   : > { %s8266_s29 = scalar_select %p6022_p5, 1, 0 }
  0x44   : > { %s5031_s12 = sshll.u32 %s331_s11, 6  ;;  %s6035_s23 = scalar_lea.hbm %s8171_s0, %s5184_s26 }
  0x45   : > { %s335_s20 = scalar_lea.vmem [#allocation2], %s5031_s12  ;;  %p6039_p11 = pnand %p5598_p7, %p43_p9 }
  0x46   : > { %s343_s13 = sshll.u32 %s335_s20, 4  ;;  %s6043_s24 = scalar_lea.sflag [#allocation3], %s331_s11  ;;  %s6037_s13 = int_to_ptr.vmem [resolvable:$true] %s343_s13 }
  0x47   : > { %s5730_s28 = scalar_lea.hbm %s6035_s23, 1024  ;;  %p5732_p0 = pneg %p6039_p11 }
  0x48   : > { %p5731_p12 = scmp.ne.s32.totalorder %s6035_s23, %s5730_s28  ;;  %s5735_s18 = scalar_lea.hbm %s8171_s0, 2048 }
  0x49   : > { %p5736_p13 = scmp.lt.u32.totalorder %s6035_s23, %s8171_s0  ;;  %p5737_p6 = scmp.lt.u32.totalorder %s5735_s18, %s5730_s28 }
  0x4a   : > { %p5733_p2 = pnand %p5732_p0, %p5731_p12  ;;  %p5739_p3 = scmp.lt.u32.totalorder %s5730_s28, %s6035_s23 }
  0x4b   : > { %p5738_p10 = por %p5737_p6, %p5736_p13 }
  0x4c   : > { %p5734_p1 = pneg %p5733_p2 }
  0x4d   : > { %p5740_p7 = por %p5739_p3, %p5738_p10 }
  0x4f   : > { %p5741_p9 = pnand %p5740_p7, %p5734_p1 }
  0x51   : > { %5744 = shalt.err (!%p5741_p9)
}
  0x52   : > { %s5745_s11 = scalar_lea.vmem %s6037_s13, 1024  ;;  %s5836_s12 = smov [#allocation2]  }
  0x53   : > { %p5746_p12 = scmp.ne.s32.totalorder %s6037_s13, %s5745_s11  ;;  %s5750_s26 = sshll.u32 %s5836_s12, 4  ;;  %s5751_s26 = int_to_ptr.vmem [resolvable:$false] %s5750_s26 }
  0x54   : > { %s5752_s22 = scalar_lea.vmem %s5751_s26, 2048  ;;  %p5753_p4 = scmp.lt.s32.totalorder %s6037_s13, %s5751_s26 }
  0x55   : > { %p5748_p2 = pnand %p5746_p12, %p5732_p0  ;;  %p5754_p13 = scmp.lt.s32.totalorder %s5752_s22, %s5745_s11 }
  0x57   : > { %p5749_p5 = pneg %p5748_p2  ;;  %p5755_p6 = por %p5754_p13, %p5753_p4 }
  0x59   : > { %p5756_p10 = pnand %p5755_p6, %p5749_p5 }
  0x5b   : > { %5759 = shalt.err (!%p5756_p10)
}
  0x5c   : > { %s5837_s28 = smov 128   ;;  %s5838_s18 = smov 8  }
  0x5d   : > { %5591 = dma.hbm_to_vmem [thread:$0]  (!%p6039_p11), %s6035_s23, 1024, %s6037_s13, %s6043_s24, %s5837_s28, %s5837_s28, %s5838_s18  }
  0x5e   : > { %355 = sbr.rel (%p5941_p8) target bundleno = 5292 (0x14ac), region = 60 }
  0x65   : > { %s6074_s20 = sand.u32 1, %s5822_s14   ;;  %p8268_p4 = scmp.ne.s32.totalorder %s8260_s19, 0 }
  0x66   : > { %s5036_s11 = sshll.u32 %s6074_s20, 6  ;;  %s358_s12 = scalar_lea.sflag [#allocation3], %s6074_s20 }
  0x67   : > { %s6080_s26 = scalar_lea.vmem [#allocation2], %s5036_s11 }
  0x68   : > { %5805 = dma.done.wait (%p8268_p4), %s358_s12, 1024  }
  0x69   : > { %5807 = vsyncadd (%p8268_p4), %s358_s12, 4294966272  ;;  %p8269_p5 = scmp.eq.s32.totalorder %s5922_s17, 0 }
  0x6b   : > { %5809 = dma.done.wait (%p8269_p5), [#allocation6], 144   ;;  %p8270_p8 = pmov %p8269_p5 }
  0x6c   : > { %v5646_v0 = vld [vmem:[#allocation5] sm:$0xff]   ;;  %v410_v2 = vld [vmem:[%s6080_s26 + $0x8] sm:$0xff]  ;;  %vm429_vm0 = vcmask 130048   ;;  %v411_v3 = vld [vmem:[%s6080_s26 + $0x10] sm:$0xff]  ;;  %v8187_v61 = vmov 0.0   ;;  %vm5840_vm1 = vmmov 0  }
  0x6d   : > { %5811 = vsyncadd (%p8270_p8), [#allocation6], 4294967152  ;;  %v409_v1 = vld [vmem:[%s6080_s26] sm:$0xff]  ;;  %5287 = vmatprep.subr.bf16.mxu0 %v5646_v0  ;;  %v412_v5 = vld [vmem:[%s6080_s26 + $0x18] sm:$0xff]  ;;  %5567 = vmatprep.subr.bf16.mxu1 %v5646_v0  ;;  %s5841_s18 = smov 16   ;;  %s5842_s12 = smov 112  }
  0x6e   : > { %v417_v4 = vpack.c.bf16 %v410_v2, %v409_v1  ;;  %v413_v6 = vld [vmem:[%s6080_s26 + $0x20] sm:$0xff]  ;;  %v414_v7 = vld [vmem:[%s6080_s26 + $0x28] sm:$0xff]  ;;  %5288 = vmatpush3.bf16.msra.mxu0 %v5646_v0  ;;  %v418_v8 = vpack.c.bf16 %v412_v5, %v411_v3  ;;  %5568 = vmatpush3.bf16.msra.mxu1 %v5646_v0  ;;  %v415_v10 = vld [vmem:[%s6080_s26 + $0x30] sm:$0xff]  ;;  %s8096_s22 = scalar_lea.vmem [#allocation8], %s5036_s11  ;;  %s5186_s11 = sshll.u32 %s5922_s17, 10 }
  0x6f   : > { %v419_v9 = vpack.c.bf16 %v414_v7, %v413_v6  ;;  %v416_v11 = vld [vmem:[%s6080_s26 + $0x38] sm:$0xff]  ;;  %v5647_v13 = vld [vmem:[%s8175_s4] sm:$0xff]   ;;  %s4934_s28 = sshll.u32 %s8096_s22, 4  ;;  %s8118_s19 = scalar_lea.hbm %s8181_s10, %s5186_s11  ;;  %s8120_s28 = int_to_ptr.vmem [resolvable:$true] %s4934_s28 }
  0x70   : > { %5289 = vmatprep.mubr.msk.bf16.mxu0 %vm429_vm0, %v417_v4  ;;  %v420_v12 = vpack.c.bf16 %v416_v11, %v415_v10  ;;  %v5648_v14 = vld [vmem:[%s8176_s5] sm:$0xff]   ;;  %5297 = vmatprep.subr.bf16.mxu1 %v5647_v13  ;;  %s4920_s17 = scalar_lea.sflag [#allocation4], %s6074_s20  ;;  %s5760_s21 = scalar_lea.vmem %s8120_s28, 1024 }
  0x71   : > { %5293 = vmatprep.mubr.msk.bf16.mxu1 %vm429_vm0, %v419_v9  ;;  %5290 = vmatmul.mubr.msk.bf16.vlgmr.msra.gmra.mrb[0].mxu0 %vm429_vm0, %v418_v8  ;;  %v5045_v15 = vld [vmem:[%s8173_s2] ss:$0 sm:$0xff]  ;;  %p5761_p11 = scmp.ne.s32.totalorder %s8120_s28, %s5760_s21  ;;  %p8452_p0 = scmp.ne.s32.totalorder %s8266_s29, 0 }
  0x72   : > { %5294 = vmatmul.mubr.msk.bf16.vlgmr.msra.gmra.mrb[0].mxu1 %vm429_vm0, %v420_v12  ;;  %5307 = vmatprep.subr.bf16.mxu0 %v5648_v14  ;;  %v5046_v17 = vld [vmem:[%s8174_s3] ss:$0 sm:$0xff]  ;;  %s5843_s23 = smov [#allocation8]  }
  0x73   : > { %5298 = vmatpush3.bf16.msra.mxu1 %v5647_v13  ;;  %5308 = vmatpush3.bf16.msra.mxu0 %v5648_v14  ;;  %p5762_p1 = pnand %p5761_p11, %p8452_p0  ;;  %s5764_s13 = sshll.u32 %s5843_s23, 4  ;;  %s5765_s13 = int_to_ptr.vmem [resolvable:$false] %s5764_s13 }
  0x74   : > { %5317 = vmatprep.subr.bf16.mxu1 %v8187_v61  ;;  %5329 = vmatprep.subr.bf16.mxu0 %v8187_v61  ;;  %s5766_s25 = scalar_lea.vmem %s5765_s13, 2048  ;;  %p5767_p7 = scmp.lt.s32.totalorder %s8120_s28, %s5765_s13 }
  0x75   : > { %p5763_p3 = pneg %p5762_p1  ;;  %p5768_p9 = scmp.lt.s32.totalorder %s5766_s25, %s5760_s21 }
  0x77   : > { %p5769_p12 = por %p5768_p9, %p5767_p7 }
  0x79   : > { %p5770_p2 = pnand %p5769_p12, %p5763_p3 }
 0x144   : > { %v5291_v16 = vpop.f32.mrb[0].mxu0 }
 0x145   : > { %v5295_v18 = vpop.f32.mrb[0].mxu1  ;;  %v516_v19 = vmul.f32 %v5291_v16, %v5045_v15  ;;  %v476_v20 = vpop.f32.mrb[1].mxu0 }
 0x146   : > { %v492_v21 = vpop.f32.mrb[1].mxu1  ;;  %v514_v22 = vmul.f32 %v5045_v15, %v476_v20  ;;  %v5292_v23 = vpop.f32.mrb[2].mxu0  ;;  %v520_v34 = vmul.f32 %v5295_v18, %v5045_v15 }
 0x147   : > { %v518_v24 = vmul.f32 %v5045_v15, %v492_v21  ;;  %v5296_v25 = vpop.f32.mrb[2].mxu1  ;;  %v6114_v26 = vadd.f32 %v5046_v17, %v516_v19  ;;  %v517_v27 = vmul.f32 %v5292_v23, %v5045_v15  ;;  %v479_v28 = vpop.f32.mrb[3].mxu0 }
 0x148   : > { %v495_v29 = vpop.f32.mrb[3].mxu1  ;;  %v6116_v30 = vadd.f32 %v5046_v17, %v514_v22  ;;  %v515_v31 = vmul.f32 %v5045_v15, %v479_v28  ;;  %v521_v35 = vmul.f32 %v5296_v25, %v5045_v15  ;;  %v6146_v50 = vadd.f32 %v5046_v17, %v520_v34 }
 0x149   : > { %v519_v32 = vmul.f32 %v5045_v15, %v495_v29  ;;  %v6118_v33 = vadd.f32 %v5046_v17, %v517_v27  ;;  %v708_v36 = vmul.f32 %v6114_v26, %v6114_v26  ;;  %v6124_v38 = vadd.f32 %v5046_v17, %v518_v24 }
 0x14a   : > { %v6122_v37 = vadd.f32 %v5046_v17, %v515_v31  ;;  %v706_v40 = vmul.f32 %v6116_v30, %v6116_v30  ;;  %v6142_v48 = vadd.f32 %v5046_v17, %v521_v35  ;;  %v712_v57 = vmul.f32 %v6146_v50, %v6146_v50 }
 0x14b   : > { %v6126_v39 = vadd.f32 %v5046_v17, %v519_v32  ;;  %v720_v41 = vsel %vm429_vm0, %v708_v36, 0.0  ;;  %v709_v42 = vmul.f32 %v6118_v33, %v6118_v33  ;;  %v538_v47 = vpack.c.bf16 %v6118_v33, %v6114_v26 }
 0x14c   : > { %v537_v43 = vpack.c.bf16 %v6122_v37, %v6116_v30  ;;  %721 = vadd.xlane.f32.xlu1 %v720_v41  ;;  %v714_v45 = vsel %vm429_vm0, %v706_v40, 0.0  ;;  %v707_v46 = vmul.f32 %v6122_v37, %v6122_v37  ;;  %v710_v51 = vmul.f32 %v6124_v38, %v6124_v38 }
 0x14d   : > { %v539_v44 = vpack.c.bf16 %v6126_v39, %v6124_v38  ;;  %715 = vadd.xlane.f32.xlu0 %v714_v45  ;;  %v711_v49 = vmul.f32 %v6126_v39, %v6126_v39  ;;  %v723_v52 = vsel %vm429_vm0, %v709_v42, 0.0  ;;  %v713_v55 = vmul.f32 %v6142_v48, %v6142_v48 }
 0x14e   : > { %5299 = vmatprep.mubr.msk.bf16.mxu1 %vm429_vm0, %v537_v43  ;;  %5309 = vmatprep.mubr.msk.bf16.mxu0 %vm429_vm0, %v537_v43  ;;  %v717_v53 = vsel %vm429_vm0, %v707_v46, 0.0  ;;  %v726_v56 = vsel %vm429_vm0, %v710_v51, 0.0  ;;  %v540_v58 = vpack.c.bf16 %v6142_v48, %v6146_v50  ;;  %v732_v60 = vsel %vm429_vm0, %v712_v57, 0.0 }
 0x14f   : > { %5300 = vmatmul.mubr.msk.bf16.vlgmr.msra.gmra.mrb[4].mxu1 %vm429_vm0, %v538_v47  ;;  %5310 = vmatmul.mubr.msk.bf16.vlgmr.msra.gmra.mrb[4].mxu0 %vm429_vm0, %v538_v47  ;;  %v729_v54 = vsel %vm429_vm0, %v711_v49, 0.0  ;;  %v735_v59 = vsel %vm429_vm0, %v713_v55, 0.0 }
 0x150   : > { %724 = vadd.xlane.f32.xlu1 %v723_v52  ;;  %5303 = vmatprep.mubr.msk.bf16.mxu1 %vm429_vm0, %v539_v44 }
 0x151   : > { %718 = vadd.xlane.f32.xlu0 %v717_v53  ;;  %5313 = vmatprep.mubr.msk.bf16.mxu0 %vm429_vm0, %v539_v44 }
 0x154   : > { %730 = vadd.xlane.f32.xlu1 %v729_v54 }
 0x155   : > { %727 = vadd.xlane.f32.xlu0 %v726_v56 }
 0x157   : > { %5304 = vmatmul.mubr.msk.bf16.gmra.mrb[8].mxu1 %vm429_vm0, %v540_v58  ;;  %5314 = vmatmul.mubr.msk.bf16.gmra.mrb[8].mxu0 %vm429_vm0, %v540_v58 }
 0x158   : > { %736 = vadd.xlane.f32.xlu1 %v735_v59  ;;  %5319 = vmatprep.mubr.msk.bf16.mxu1 %vm5840_vm1, %v8187_v61 }
 0x159   : > { %733 = vadd.xlane.f32.xlu0 %v732_v60  ;;  %5331 = vmatprep.mubr.msk.bf16.mxu0 %vm5840_vm1, %v8187_v61 }
 0x1d9   : > { %v722_v62 = vpop.xlane.xlu1 %721 }
 0x1da   : > { %v716_v63 = vpop.xlane.xlu0 %715  ;;  %v740_v2 = vmax.f32 %v722_v62, 1e-24 }
 0x1db   : > { %v738_v0 = vmax.f32 %v716_v63, 1e-24 }
 0x1dd   : > { %v725_v1 = vpop.xlane.xlu1 %724  ;;  %5650 = vrsqrt.f32 %v738_v0 }
 0x1de   : > { %v719_v3 = vpop.xlane.xlu0 %718  ;;  %v741_v4 = vmax.f32 %v725_v1, 1e-24 }
 0x1df   : > { %v739_v5 = vmax.f32 %v719_v3, 1e-24 }
 0x1e1   : > { %5652 = vrsqrt.f32 %v739_v5  ;;  %v731_v6 = vpop.xlane.xlu1 %730 }
 0x1e2   : > { %5654 = vrsqrt.f32 %v740_v2  ;;  %v743_v7 = vmax.f32 %v731_v6, 1e-24  ;;  %v728_v8 = vpop.xlane.xlu0 %727 }
 0x1e3   : > { %5656 = vrsqrt.f32 %v741_v4  ;;  %v742_v9 = vmax.f32 %v728_v8, 1e-24 }
 0x1e4   : > { %5658 = vrsqrt.f32 %v743_v7 }
 0x1e5   : > { %5660 = vrsqrt.f32 %v742_v9  ;;  %v737_v10 = vpop.xlane.xlu1 %736 }
 0x1e6   : > { %v745_v11 = vmax.f32 %v737_v10, 1e-24  ;;  %v734_v12 = vpop.xlane.xlu0 %733 }
 0x1e7   : > { %v744_v13 = vmax.f32 %v734_v12, 1e-24  ;;  %v5651_v14 = vpop.eup %5650 }
 0x1e8   : > { %5662 = vrsqrt.f32 %v745_v11  ;;  %v754_v17 = vmul.f32 %v5651_v14, %v6116_v30 }
 0x1e9   : > { %5664 = vrsqrt.f32 %v744_v13 }
 0x1eb   : > { %v5653_v15 = vpop.eup %5652 }
 0x1ec   : > { %v5655_v16 = vpop.eup %5654  ;;  %v755_v18 = vmul.f32 %v5653_v15, %v6122_v37 }
 0x1ed   : > { %v5657_v19 = vpop.eup %5656  ;;  %v756_v29 = vmul.f32 %v5655_v16, %v6114_v26 }
 0x1ee   : > { %v5659_v20 = vpop.eup %5658  ;;  %v762_v21 = vpack.c.bf16 %v755_v18, %v754_v17  ;;  %v757_v27 = vmul.f32 %v5657_v19, %v6118_v33 }
 0x1ef   : > { %v5661_v22 = vpop.eup %5660  ;;  %v759_v23 = vmul.f32 %v5659_v20, %v6126_v39 }
 0x1f0   : > { %v767_v24 = vsel %vm429_vm0, %v762_v21, 0  ;;  %v758_v25 = vmul.f32 %v5661_v22, %v6124_v38  ;;  %v763_v32 = vpack.c.bf16 %v757_v27, %v756_v29  ;;  %v5047_v38 = vld [vmem:[#allocation7] ss:$0 sm:$0xff] }
 0x1f1   : > { %5318 = vmatpush3.bf16.xpose.msra.mxu1 %v767_v24 }
 0x1f2   : > { %v764_v28 = vpack.c.bf16 %v759_v23, %v758_v25  ;;  %5323 = vmatprep.subr.bf16.mxu1 %v8187_v61  ;;  %v5663_v30 = vpop.eup %5662  ;;  %v811_v35 = vsel %vm429_vm0, %v763_v32, 0 }
 0x1f3   : > { %v5665_v34 = vpop.eup %5664  ;;  %v761_v36 = vmul.f32 %v5663_v30, %v6142_v48 }
 0x1f4   : > { %v855_v31 = vsel %vm429_vm0, %v764_v28, 0  ;;  %v760_v33 = vmul.f32 %v5665_v34, %v6146_v50 }
 0x1f5   : > { %5330 = vmatpush3.bf16.xpose.msra.mxu0 %v855_v31 }
 0x1f6   : > { %5341 = vmatprep.subr.bf16.mxu0 %v8187_v61  ;;  %v765_v26 = vpack.c.bf16 %v761_v36, %v760_v33 }
 0x1f8   : > { %5320 = vmatmul.mubr.msk.bf16.vlgmr.msra.gmra.mrb[12].mxu1 %vm429_vm0, %v762_v21  ;;  %v899_v37 = vsel %vm429_vm0, %v765_v26, 0 }
 0x1f9   : > { %5324 = vmatpush3.bf16.xpose.msra.mxu1 %v811_v35  ;;  %5325 = vmatprep.mubr.msk.bf16.mxu1 %vm5840_vm1, %v8187_v61 }
 0x1fa   : > { %5335 = vmatprep.subr.bf16.mxu1 %v8187_v61 }
 0x1fc   : > { %5332 = vmatmul.mubr.msk.bf16.vlgmr.msra.gmra.mrb[12].mxu0 %vm429_vm0, %v764_v28 }
 0x1fd   : > { %5343 = vmatprep.mubr.msk.bf16.mxu0 %vm5840_vm1, %v8187_v61 }
 0x200   : > { %5326 = vmatmul.mubr.msk.bf16.vlgmr.msra.gmra.mrb[16].mxu1 %vm429_vm0, %v763_v32 }
 0x201   : > { %5336 = vmatpush3.bf16.xpose.msra.mxu1 %v899_v37  ;;  %5337 = vmatprep.mubr.msk.bf16.mxu1 %vm5840_vm1, %v8187_v61 }
 0x202   : > { %5347 = vmatprep.subr.bf16.mxu1 %v8187_v61 }
 0x208   : > { %5338 = vmatmul.mubr.msk.bf16.vlgmr.msra.gmra.mrb[20].mxu1 %vm429_vm0, %v765_v26 }
 0x209   : > { %5349 = vmatprep.mubr.msk.bf16.mxu1 %vm5840_vm1, %v8187_v61 }
 0x222   : > { %v5301_v39 = vpop.f32.mrb[4].mxu1  ;;  %v6204_v40 = vpop.f32.mrb[4].mxu0 }
 0x223   : > { %8271 = vst [vmem:[#allocation14_spill] sm:$0xff] %v6204_v40  ;;  %v6206_v41 = vadd.f32 %v5301_v39, %v5047_v38  ;;  %v602_v42 = vpop.f32.mrb[5].mxu1  ;;  %v6208_v43 = vpop.f32.mrb[5].mxu0 }
 0x224   : > { %8273 = vst [vmem:[#allocation16_spill] sm:$0xff] %v6208_v43  ;;  %v6210_v44 = vadd.f32 %v5047_v38, %v602_v42  ;;  %v5302_v45 = vpop.f32.mrb[6].mxu1  ;;  %v6212_v46 = vpop.f32.mrb[6].mxu0 }
 0x225   : > { %8272 = vst [vmem:[#allocation15_spill] sm:$0xff] %v6206_v41  ;;  %8275 = vst [vmem:[#allocation18_spill] sm:$0xff] %v6212_v46  ;;  %v6216_v48 = vadd.f32 %v5302_v45, %v5047_v38  ;;  %v6220_v49 = vpack.c.bf16 %v6212_v46, %v6204_v40  ;;  %v605_v50 = vpop.f32.mrb[7].mxu1  ;;  %v6222_v51 = vpop.f32.mrb[7].mxu0 }
 0x226   : > { %8274 = vst [vmem:[#allocation17_spill] sm:$0xff] %v6210_v44  ;;  %8277 = vst [vmem:[#allocation20_spill] sm:$0xff] %v6222_v51  ;;  %v6226_v53 = vadd.f32 %v5047_v38, %v605_v50  ;;  %v6230_v54 = vpack.c.bf16 %v6222_v51, %v6208_v43 }
 0x227   : > { %8276 = vst [vmem:[#allocation19_spill] sm:$0xff] %v6216_v48  ;;  %v948_v55 = vunpack.c.l.bf16 %v6220_v49  ;;  %v949_v56 = vunpack.c.h.bf16 %v6220_v49 }
 0x228   : > { %8278 = vst [vmem:[#allocation21_spill] sm:$0xff] %v6226_v53  ;;  %v946_v58 = vunpack.c.l.bf16 %v6230_v54  ;;  %v947_v59 = vunpack.c.h.bf16 %v6230_v54 }
 0x229   : > { %v6241_v62 = vsub.f32 %v6204_v40, %v948_v55  ;;  %v6244_v63 = vsub.f32 %v6212_v46, %v949_v56 }
 0x22a   : > { %v6247_v0 = vsub.f32 %v6208_v43, %v946_v58  ;;  %v6250_v1 = vsub.f32 %v6222_v51, %v947_v59  ;;  %v5305_v2 = vpop.f32.mrb[8].mxu1  ;;  %v6252_v3 = vpop.f32.mrb[8].mxu0 }
 0x22b   : > { %8279 = vst [vmem:[#allocation22_spill] sm:$0xff] %v6252_v3  ;;  %v6256_v5 = vadd.f32 %v5305_v2, %v5047_v38  ;;  %v618_v6 = vpop.f32.mrb[9].mxu1  ;;  %v6258_v7 = vpop.f32.mrb[9].mxu0 }
 0x22c   : > { %8281 = vst [vmem:[#allocation24_spill] sm:$0xff] %v6258_v7  ;;  %v6262_v9 = vadd.f32 %v5047_v38, %v618_v6  ;;  %v5306_v10 = vpop.f32.mrb[10].mxu1  ;;  %v6264_v11 = vpop.f32.mrb[10].mxu0 }
 0x22d   : > { %8280 = vst [vmem:[#allocation23_spill] sm:$0xff] %v6256_v5  ;;  %8283 = vst [vmem:[#allocation26_spill] sm:$0xff] %v6264_v11  ;;  %v6268_v13 = vadd.f32 %v5306_v10, %v5047_v38  ;;  %v6272_v14 = vpack.c.bf16 %v6264_v11, %v6252_v3  ;;  %v621_v15 = vpop.f32.mrb[11].mxu1  ;;  %v6274_v16 = vpop.f32.mrb[11].mxu0 }
 0x22e   : > { %8282 = vst [vmem:[#allocation25_spill] sm:$0xff] %v6262_v9  ;;  %8285 = vst [vmem:[#allocation28_spill] sm:$0xff] %v6274_v16  ;;  %v6278_v18 = vadd.f32 %v5047_v38, %v621_v15  ;;  %v6282_v19 = vpack.c.bf16 %v6274_v16, %v6258_v7 }
 0x22f   : > { %8284 = vst [vmem:[#allocation27_spill] sm:$0xff] %v6268_v13  ;;  %v952_v20 = vunpack.c.l.bf16 %v6272_v14  ;;  %v953_v21 = vunpack.c.h.bf16 %v6272_v14 }
 0x230   : > { %8286 = vst [vmem:[#allocation29_spill] sm:$0xff] %v6278_v18  ;;  %v950_v23 = vunpack.c.l.bf16 %v6282_v19  ;;  %v951_v24 = vunpack.c.h.bf16 %v6282_v19 }
 0x231   : > { %v6293_v27 = vsub.f32 %v6252_v3, %v952_v20  ;;  %v6296_v28 = vsub.f32 %v6264_v11, %v953_v21 }
 0x232   : > { %v6299_v29 = vsub.f32 %v6258_v7, %v950_v23  ;;  %v6302_v30 = vsub.f32 %v6274_v16, %v951_v24 }
 0x2cb   : > { %v6308_v34 = vpop.f32.mrb[12].mxu1 }
 0x2cc   : > { %v5321_v35 = vpop.f32.mrb[13].mxu1  ;;  %v996_v33 = vsel %vm429_vm0, %v6308_v34, -inf }
 0x2cd   : > { %997 = vmax.xlane.f32.xlu0 %v996_v33  ;;  %v6312_v36 = vpop.f32.mrb[14].mxu1  ;;  %v994_v33 = vlaneseq }
 0x2ce   : > { %v5322_v26 = vpop.f32.mrb[15].mxu1  ;;  %v999_v37 = vsel %vm429_vm0, %v6312_v36, -inf }
 0x2cf   : > { %v6316_v38 = vpop.f32.mrb[12].mxu0  ;;  %1000 = vmax.xlane.f32.xlu1 %v999_v37  ;;  %v6340_v26 = vand.u32 127, %v994_v33 }
 0x2d0   : > { %v5333_v39 = vpop.f32.mrb[13].mxu0  ;;  %v1008_v6 = vsel %vm429_vm0, %v6316_v38, -inf }
 0x2d1   : > { %v6318_v42 = vpop.f32.mrb[14].mxu0 }
 0x2d2   : > { %v5334_v45 = vpop.f32.mrb[15].mxu0  ;;  %v1011_v10 = vsel %vm429_vm0, %v6318_v42, -inf }
 0x2d3   : > { %v6320_v50 = vpop.f32.mrb[16].mxu1 }
 0x2d4   : > { %v5327_v55 = vpop.f32.mrb[17].mxu1  ;;  %v1002_v56 = vsel %vm429_vm0, %v6320_v50, -inf }
 0x2d5   : > { %1003 = vmax.xlane.f32.xlu0 %v1002_v56  ;;  %v6324_v58 = vpop.f32.mrb[18].mxu1 }
 0x2d6   : > { %v5328_v59 = vpop.f32.mrb[19].mxu1  ;;  %v1005_v2 = vsel %vm429_vm0, %v6324_v58, -inf }
 0x2d7   : > { %1006 = vmax.xlane.f32.xlu1 %v1005_v2 }
 0x2d9   : > { %1009 = vmax.xlane.f32.xlu0 %v1008_v6 }
 0x2db   : > { %1012 = vmax.xlane.f32.xlu1 %v1011_v10  ;;  %v6332_v15 = vpop.f32.mrb[20].mxu1 }
 0x2dc   : > { %v5339_v20 = vpop.f32.mrb[21].mxu1  ;;  %v1014_v21 = vsel %vm429_vm0, %v6332_v15, -inf }
 0x2dd   : > { %1015 = vmax.xlane.f32.xlu0 %v1014_v21  ;;  %v6336_v23 = vpop.f32.mrb[22].mxu1 }
 0x2de   : > { %v5340_v24 = vpop.f32.mrb[23].mxu1  ;;  %v1017_v35 = vsel %vm429_vm0, %v6336_v23, -inf }
 0x2df   : > { %1018 = vmax.xlane.f32.xlu1 %v1017_v35 }
 0x35a   : > { %v998_v37 = vpop.xlane.xlu0 %997 }
 0x35b   : > { %vm1020_vm2 = vcmp.ge.f32.partialorder %v6308_v34, %v998_v37 }
 0x35c   : > { %v1028_v39 = vsel %vm1020_vm2, %v6340_v26, 16  ;;  %v1001_v45 = vpop.xlane.xlu1 %1000 }
 0x35d   : > { %vm1021_vm3 = vcmp.ge.f32.partialorder %v6312_v36, %v1001_v45  ;;  %v1036_v55 = vsel %vm429_vm0, %v1028_v39, 2147483647 }
 0x35e   : > { %v1029_v56 = vsel %vm1021_vm3, %v6340_v26, 16  ;;  %v1038_v59 = vshra.s32 %v1036_v55, 16  ;;  %v1037_v32 = vand.u32 65535, %v1036_v55 }
 0x35f   : > { %v1051_v2 = vsel %vm429_vm0, %v1029_v56, 2147483647 }
 0x360   : > { %v1040_v6 = vcvt.s32.f32 %v1038_v59  ;;  %v1053_v10 = vshra.s32 %v1051_v2, 16  ;;  %v1039_v4 = vcvt.s32.f32 %v1037_v32 }
 0x362   : > { %v1004_v20 = vpop.xlane.xlu0 %1003  ;;  %1041 = vmin.xlane.f32.xlu0 %v1040_v6  ;;  %v1055_v21 = vcvt.s32.f32 %v1053_v10 }
 0x363   : > { %vm1022_vm4 = vcmp.ge.f32.partialorder %v6320_v50, %v1004_v20 }
 0x364   : > { %v1030_v24 = vsel %vm1022_vm4, %v6340_v26, 16  ;;  %v1007_v35 = vpop.xlane.xlu1 %1006  ;;  %1056 = vmin.xlane.f32.xlu1 %v1055_v21 }
 0x365   : > { %vm1023_vm5 = vcmp.ge.f32.partialorder %v6324_v58, %v1007_v35  ;;  %v1066_v33 = vsel %vm429_vm0, %v1030_v24, 2147483647 }
 0x366   : > { %v1031_v37 = vsel %vm1023_vm5, %v6340_v26, 16  ;;  %v1010_v39 = vpop.xlane.xlu0 %1009  ;;  %v1068_v45 = vshra.s32 %v1066_v33, 16  ;;  %v1067_v11 = vand.u32 65535, %v1066_v33 }
 0x367   : > { %vm1024_vm6 = vcmp.ge.f32.partialorder %v6316_v38, %v1010_v39  ;;  %v1081_v56 = vsel %vm429_vm0, %v1031_v37, 2147483647 }
 0x368   : > { %v1032_v59 = vsel %vm1024_vm6, %v6340_v26, 16  ;;  %v1013_v10 = vpop.xlane.xlu1 %1012  ;;  %v1070_v20 = vcvt.s32.f32 %v1068_v45  ;;  %v1083_v22 = vshra.s32 %v1081_v56, 16 }
 0x369   : > { %vm1025_vm7 = vcmp.ge.f32.partialorder %v6318_v42, %v1013_v10  ;;  %v1096_v12 = vsel %vm429_vm0, %v1032_v59, 2147483647 }
 0x36a   : > { %v1033_v35 = vsel %vm1025_vm7, %v6340_v26, 16  ;;  %1071 = vmin.xlane.f32.xlu0 %v1070_v20  ;;  %v1016_v24 = vpop.xlane.xlu0 %1015  ;;  %v1085_v25 = vcvt.s32.f32 %v1083_v22  ;;  %v1098_v17 = vshra.s32 %v1096_v12, 16  ;;  %v1097_v3 = vand.u32 65535, %v1096_v12 }
 0x36b   : > { %vm1026_vm8 = vcmp.ge.f32.partialorder %v6332_v15, %v1016_v24  ;;  %v1111_v39 = vsel %vm429_vm0, %v1033_v35, 2147483647 }
 0x36c   : > { %v1034_v37 = vsel %vm1026_vm8, %v6340_v26, 16  ;;  %1086 = vmin.xlane.f32.xlu1 %v1085_v25  ;;  %v1019_v57 = vpop.xlane.xlu1 %1018  ;;  %v1100_v45 = vcvt.s32.f32 %v1098_v17  ;;  %v1113_v47 = vshra.s32 %v1111_v39, 16  ;;  %v1052_v17 = vand.u32 65535, %v1051_v2 }
 0x36d   : > { %vm1027_vm9 = vcmp.ge.f32.partialorder %v6336_v23, %v1019_v57  ;;  %v1126_v59 = vsel %vm429_vm0, %v1034_v37, 2147483647  ;;  %v1112_v2 = vand.u32 65535, %v1111_v39 }
 0x36e   : > { %v1035_v10 = vsel %vm1027_vm9, %v6340_v26, 16  ;;  %1101 = vmin.xlane.f32.xlu0 %v1100_v45  ;;  %v1115_v60 = vcvt.s32.f32 %v1113_v47  ;;  %v1128_v22 = vshra.s32 %v1126_v59, 16  ;;  %v1054_v61 = vcvt.s32.f32 %v1052_v17 }
 0x36f   : > { %v1141_v52 = vsel %vm429_vm0, %v1035_v10, 2147483647  ;;  %v1082_v10 = vand.u32 65535, %v1081_v56  ;;  %v1127_v17 = vand.u32 65535, %v1126_v59  ;;  %v1114_v33 = vcvt.s32.f32 %v1112_v2 }
 0x370   : > { %1116 = vmin.xlane.f32.xlu1 %v1115_v60  ;;  %v1130_v24 = vcvt.s32.f32 %v1128_v22  ;;  %v1143_v35 = vshra.s32 %v1141_v52, 16  ;;  %v1069_v22 = vcvt.s32.f32 %v1067_v11  ;;  %v1142_v56 = vand.u32 65535, %v1141_v52 }
 0x371   : > { %v1084_v55 = vcvt.s32.f32 %v1082_v10 }
 0x372   : > { %1131 = vmin.xlane.f32.xlu0 %v1130_v24  ;;  %v1145_v31 = vcvt.s32.f32 %v1143_v35 }
 0x374   : > { %1146 = vmin.xlane.f32.xlu1 %v1145_v31 }
 0x3ef   : > { %v1042_v8 = vpop.xlane.xlu0 %1041 }
 0x3f0   : > { %vm1043_vm10 = vcmp.eq.f32.partialorder %v1040_v6, %v1042_v8 }
 0x3f1   : > { %v1057_v57 = vpop.xlane.xlu1 %1056  ;;  %v1044_v37 = vsel %vm1043_vm10, %v1039_v4, inf  ;;  %v1099_v4 = vcvt.s32.f32 %v1097_v3 }
 0x3f2   : > { %1045 = vmin.xlane.f32.xlu0 %v1044_v37  ;;  %vm1058_vm11 = vcmp.eq.f32.partialorder %v1055_v21, %v1057_v57  ;;  %v1063_v59 = vcvt.f32.s32 %v1057_v57  ;;  %v8287_v57 = vmov 0.0  }
 0x3f3   : > { %v1059_v47 = vsel %vm1058_vm11, %v1054_v61, inf }
 0x3f4   : > { %1060 = vmin.xlane.f32.xlu1 %v1059_v47  ;;  %v1064_v10 = vshll.u32 %v1063_v59, 16 }
 0x3f7   : > { %v1072_v13 = vpop.xlane.xlu0 %1071 }
 0x3f8   : > { %vm1073_vm12 = vcmp.eq.f32.partialorder %v1070_v20, %v1072_v13  ;;  %v1129_v20 = vcvt.s32.f32 %v1127_v17  ;;  %v1078_v2 = vcvt.f32.s32 %v1072_v13 }
 0x3f9   : > { %v1087_v35 = vpop.xlane.xlu1 %1086  ;;  %v1074_v5 = vsel %vm1073_vm12, %v1069_v22, inf }
 0x3fa   : > { %1075 = vmin.xlane.f32.xlu0 %v1074_v5  ;;  %vm1088_vm13 = vcmp.eq.f32.partialorder %v1085_v25, %v1087_v35  ;;  %v1144_v25 = vcvt.s32.f32 %v1142_v56 }
 0x3fb   : > { %v1102_v32 = vpop.xlane.xlu0 %1101  ;;  %v1089_v6 = vsel %vm1088_vm13, %v1084_v55, inf }
 0x3fc   : > { %1090 = vmin.xlane.f32.xlu1 %v1089_v6  ;;  %vm1103_vm14 = vcmp.eq.f32.partialorder %v1100_v45, %v1102_v32  ;;  %v1048_v45 = vcvt.f32.s32 %v1042_v8  ;;  %v1079_v8 = vshll.u32 %v1078_v2, 16 }
 0x3fd   : > { %v1117_v61 = vpop.xlane.xlu1 %1116  ;;  %v1104_v21 = vsel %vm1103_vm14, %v1099_v4, inf  ;;  %v1093_v4 = vcvt.f32.s32 %v1087_v35 }
 0x3fe   : > { %1105 = vmin.xlane.f32.xlu0 %v1104_v21  ;;  %vm1118_vm15 = vcmp.eq.f32.partialorder %v1115_v60, %v1117_v61  ;;  %v1049_v52 = vshll.u32 %v1048_v45, 16 }
 0x3ff   : > { %v1132_v11 = vpop.xlane.xlu0 %1131  ;;  %v1119_v12 = vsel %vm1118_vm15, %v1114_v33, inf }
 0x400   : > { %1120 = vmin.xlane.f32.xlu1 %v1119_v12  ;;  %vm1133_vm2 = vcmp.eq.f32.partialorder %v1130_v24, %v1132_v11  ;;  %v1138_v59 = vcvt.f32.s32 %v1132_v11 }
 0x401   : > { %v6366_v39 = vpop.xlane.xlu1 %1146  ;;  %v1134_v5 = vsel %vm1133_vm2, %v1129_v20, inf  ;;  %v1123_v20 = vcvt.f32.s32 %v1117_v61 }
 0x402   : > { %1135 = vmin.xlane.f32.xlu0 %v1134_v5  ;;  %vm1148_vm3 = vcmp.eq.f32.partialorder %v1145_v31, %v6366_v39  ;;  %v1139_v11 = vshll.u32 %v1138_v59, 16 }
 0x403   : > { %v1149_v3 = vsel %vm1148_vm3, %v1144_v25, inf  ;;  %v1094_v25 = vshll.u32 %v1093_v4, 16 }
 0x404   : > { %1150 = vmin.xlane.f32.xlu1 %v1149_v3 }
 0x47f   : > { %v1046_v37 = vpop.xlane.xlu0 %1045 }
 0x480   : > { %v1047_v47 = vcvt.f32.s32 %v1046_v37 }
 0x481   : > { %v1061_v60 = vpop.xlane.xlu1 %1060 }
 0x482   : > { %v1050_v22 = vadd.s32 %v1049_v52, %v1047_v47  ;;  %v1062_v55 = vcvt.f32.s32 %v1061_v60  ;;  %v1153_v60 = vcvt.f32.s32 %v6366_v39 }
 0x484   : > { %v1065_v24 = vadd.s32 %v1064_v10, %v1062_v55  ;;  %vm1156_vm4 = vcmp.eq.s32.totalorder %v6340_v26, %v1050_v22 }
 0x485   : > { %v6371_v6 = vsel %vm1156_vm4, -1e+30, %v6308_v34  ;;  %v6377_v17 = vsel %vm1156_vm4, 1.0, %v8287_v57  ;;  %v1108_v34 = vcvt.f32.s32 %v1102_v32  ;;  %v1124_v32 = vshll.u32 %v1123_v20, 16 }
 0x486   : > { %v1408_v31 = vsel %vm429_vm0, %v6371_v6, -inf  ;;  %vm1157_vm5 = vcmp.eq.s32.totalorder %v6340_v26, %v1065_v24 }
 0x487   : > { %1409 = vmax.xlane.f32.xlu0 %v1408_v31  ;;  %v1076_v21 = vpop.xlane.xlu0 %1075  ;;  %v6380_v13 = vsel %vm1157_vm5, -1e+30, %v6312_v36  ;;  %v6383_v33 = vsel %vm1157_vm5, 1.0, %v8287_v57  ;;  %v1109_v37 = vshll.u32 %v1108_v34, 16 }
 0x488   : > { %v1077_v56 = vcvt.f32.s32 %v1076_v21  ;;  %v1411_v12 = vsel %vm429_vm0, %v6380_v13, -inf }
 0x489   : > { %1412 = vmax.xlane.f32.xlu1 %v1411_v12  ;;  %v1091_v5 = vpop.xlane.xlu1 %1090  ;;  %v1154_v12 = vshll.u32 %v1153_v60, 16 }
 0x48a   : > { %v1080_v3 = vadd.s32 %v1079_v8, %v1077_v56  ;;  %v1092_v45 = vcvt.f32.s32 %v1091_v5 }
 0x48b   : > { %v1106_v36 = vpop.xlane.xlu0 %1105 }
 0x48c   : > { %v1095_v52 = vadd.s32 %v1094_v25, %v1092_v45  ;;  %v1107_v47 = vcvt.f32.s32 %v1106_v36  ;;  %vm1158_vm6 = vcmp.eq.s32.totalorder %v6340_v26, %v1080_v3 }
 0x48d   : > { %v1121_v10 = vpop.xlane.xlu1 %1120  ;;  %v6392_v22 = vsel %vm1158_vm6, -1e+30, %v6320_v50  ;;  %v6398_v24 = vsel %vm1158_vm6, 1.0, %v8287_v57 }
 0x48e   : > { %v1110_v61 = vadd.s32 %v1109_v37, %v1107_v47  ;;  %v1122_v55 = vcvt.f32.s32 %v1121_v10  ;;  %v1414_v2 = vsel %vm429_vm0, %v6392_v22, -inf  ;;  %vm1159_vm7 = vcmp.eq.s32.totalorder %v6340_v26, %v1095_v52 }
 0x48f   : > { %1415 = vmax.xlane.f32.xlu0 %v1414_v2  ;;  %v1136_v4 = vpop.xlane.xlu0 %1135  ;;  %v6401_v31 = vsel %vm1159_vm7, -1e+30, %v6324_v58  ;;  %v6404_v39 = vsel %vm1159_vm7, 1.0, %v8287_v57 }
 0x490   : > { %v1125_v50 = vadd.s32 %v1124_v32, %v1122_v55  ;;  %v1137_v8 = vcvt.f32.s32 %v1136_v4  ;;  %v1417_v34 = vsel %vm429_vm0, %v6401_v31, -inf  ;;  %vm1160_vm8 = vcmp.eq.s32.totalorder %v6340_v26, %v1110_v61 }
 0x491   : > { %1418 = vmax.xlane.f32.xlu1 %v1417_v34  ;;  %v1151_v56 = vpop.xlane.xlu1 %1150  ;;  %v6412_v58 = vsel %vm1160_vm8, -1e+30, %v6316_v38  ;;  %v6415_v25 = vsel %vm1160_vm8, 1.0, %v8287_v57 }
 0x492   : > { %v1140_v20 = vadd.s32 %v1139_v11, %v1137_v8  ;;  %v1152_v5 = vcvt.f32.s32 %v1151_v56  ;;  %v1420_v3 = vsel %vm429_vm0, %v6412_v58, -inf  ;;  %vm1161_vm9 = vcmp.eq.s32.totalorder %v6340_v26, %v1125_v50 }
 0x493   : > { %1421 = vmax.xlane.f32.xlu0 %v1420_v3  ;;  %v6421_v59 = vsel %vm1161_vm9, -1e+30, %v6318_v42  ;;  %v6424_v36 = vsel %vm1161_vm9, 1.0, %v8287_v57 }
 0x494   : > { %v1155_v45 = vadd.s32 %v1154_v12, %v1152_v5  ;;  %vm1162_vm10 = vcmp.eq.s32.totalorder %v6340_v26, %v1140_v20  ;;  %v1423_v37 = vsel %vm429_vm0, %v6421_v59, -inf }
 0x495   : > { %v6432_v52 = vsel %vm1162_vm10, -1e+30, %v6332_v15  ;;  %1424 = vmax.xlane.f32.xlu1 %v1423_v37  ;;  %v6438_v42 = vsel %vm1162_vm10, 1.0, %v8287_v57 }
 0x496   : > { %v1426_v47 = vsel %vm429_vm0, %v6432_v52, -inf  ;;  %vm1163_vm11 = vcmp.eq.s32.totalorder %v6340_v26, %v1155_v45 }
 0x497   : > { %v6441_v32 = vsel %vm1163_vm11, -1e+30, %v6336_v23  ;;  %v6444_v60 = vsel %vm1163_vm11, 1.0, %v8287_v57  ;;  %1427 = vmax.xlane.f32.xlu0 %v1426_v47 }
 0x498   : > { %v1429_v10 = vsel %vm429_vm0, %v6441_v32, -inf }
 0x499   : > { %1430 = vmax.xlane.f32.xlu1 %v1429_v10 }
 0x514   : > { %v1410_v61 = vpop.xlane.xlu0 %1409 }
 0x515   : > { %vm1432_vm12 = vcmp.ge.f32.partialorder %v6371_v6, %v1410_v61 }
 0x516   : > { %v1440_v55 = vsel %vm1432_vm12, %v6340_v26, 16  ;;  %v1413_v2 = vpop.xlane.xlu1 %1412 }
 0x517   : > { %vm1433_vm13 = vcmp.ge.f32.partialorder %v6380_v13, %v1413_v2  ;;  %v1448_v23 = vsel %vm429_vm0, %v1440_v55, 2147483647 }
 0x518   : > { %v1441_v11 = vsel %vm1433_vm13, %v6340_v26, 16  ;;  %v1450_v4 = vshra.s32 %v1448_v23, 16  ;;  %v1449_v18 = vand.u32 65535, %v1448_v23 }
 0x519   : > { %v1463_v50 = vsel %vm429_vm0, %v1441_v11, 2147483647 }
 0x51a   : > { %v1452_v8 = vcvt.s32.f32 %v1450_v4  ;;  %v1465_v34 = vshra.s32 %v1463_v50, 16  ;;  %v1451_v9 = vcvt.s32.f32 %v1449_v18 }
 0x51c   : > { %1453 = vmin.xlane.f32.xlu0 %v1452_v8  ;;  %v1416_v56 = vpop.xlane.xlu0 %1415  ;;  %v1467_v12 = vcvt.s32.f32 %v1465_v34 }
 0x51d   : > { %vm1434_vm14 = vcmp.ge.f32.partialorder %v6392_v22, %v1416_v56 }
 0x51e   : > { %v1442_v20 = vsel %vm1434_vm14, %v6340_v26, 16  ;;  %1468 = vmin.xlane.f32.xlu1 %v1467_v12  ;;  %v1419_v5 = vpop.xlane.xlu1 %1418 }
 0x51f   : > { %vm1435_vm15 = vcmp.ge.f32.partialorder %v6401_v31, %v1419_v5  ;;  %v1478_v3 = vsel %vm429_vm0, %v1442_v20, 2147483647 }
 0x520   : > { %v1443_v45 = vsel %vm1435_vm15, %v6340_v26, 16  ;;  %v1480_v37 = vshra.s32 %v1478_v3, 16  ;;  %v1422_v47 = vpop.xlane.xlu0 %1421  ;;  %v1479_v48 = vand.u32 65535, %v1478_v3 }
 0x521   : > { %v1493_v10 = vsel %vm429_vm0, %v1443_v45, 2147483647  ;;  %vm1436_vm2 = vcmp.ge.f32.partialorder %v6412_v58, %v1422_v47 }
 0x522   : > { %v1482_v61 = vcvt.s32.f32 %v1480_v37  ;;  %v1495_v55 = vshra.s32 %v1493_v10, 16  ;;  %v1444_v2 = vsel %vm1436_vm2, %v6340_v26, 16  ;;  %v1425_v11 = vpop.xlane.xlu1 %1424 }
 0x523   : > { %vm1437_vm3 = vcmp.ge.f32.partialorder %v6421_v59, %v1425_v11  ;;  %v1508_v34 = vsel %vm429_vm0, %v1444_v2, 2147483647 }
 0x524   : > { %1483 = vmin.xlane.f32.xlu0 %v1482_v61  ;;  %v1497_v4 = vcvt.s32.f32 %v1495_v55  ;;  %v1445_v56 = vsel %vm1437_vm3, %v6340_v26, 16  ;;  %v1428_v20 = vpop.xlane.xlu0 %1427  ;;  %v1510_v5 = vshra.s32 %v1508_v34, 16  ;;  %v1509_v41 = vand.u32 65535, %v1508_v34 }
 0x525   : > { %vm1438_vm4 = vcmp.ge.f32.partialorder %v6432_v52, %v1428_v20  ;;  %v1523_v45 = vsel %vm429_vm0, %v1445_v56, 2147483647 }
 0x526   : > { %1498 = vmin.xlane.f32.xlu1 %v1497_v4  ;;  %v1446_v37 = vsel %vm1438_vm4, %v6340_v26, 16  ;;  %v1431_v47 = vpop.xlane.xlu1 %1430  ;;  %v1512_v15 = vcvt.s32.f32 %v1510_v5  ;;  %v1525_v38 = vshra.s32 %v1523_v45, 16  ;;  %v1464_v5 = vand.u32 65535, %v1463_v50 }
 0x527   : > { %vm1439_vm5 = vcmp.ge.f32.partialorder %v6441_v32, %v1431_v47  ;;  %v1538_v55 = vsel %vm429_vm0, %v1446_v37, 2147483647  ;;  %v1524_v18 = vand.u32 65535, %v1523_v45 }
 0x528   : > { %v1447_v2 = vsel %vm1439_vm5, %v6340_v26, 16  ;;  %1513 = vmin.xlane.f32.xlu0 %v1512_v15  ;;  %v1527_v11 = vcvt.s32.f32 %v1525_v38  ;;  %v1540_v21 = vshra.s32 %v1538_v55, 16  ;;  %v1466_v46 = vcvt.s32.f32 %v1464_v5 }
 0x529   : > { %v1553_v35 = vsel %vm429_vm0, %v1447_v2, 2147483647  ;;  %v1494_v2 = vand.u32 65535, %v1493_v10  ;;  %v1539_v5 = vand.u32 65535, %v1538_v55  ;;  %v1526_v3 = vcvt.s32.f32 %v1524_v18 }
 0x52a   : > { %1528 = vmin.xlane.f32.xlu1 %v1527_v11  ;;  %v1542_v20 = vcvt.s32.f32 %v1540_v21  ;;  %v1555_v16 = vshra.s32 %v1553_v35, 16  ;;  %v1481_v21 = vcvt.s32.f32 %v1479_v48  ;;  %v1554_v10 = vand.u32 65535, %v1553_v35 }
 0x52b   : > { %v1496_v23 = vcvt.s32.f32 %v1494_v2  ;;  %v1541_v34 = vcvt.s32.f32 %v1539_v5 }
 0x52c   : > { %1543 = vmin.xlane.f32.xlu0 %v1542_v20  ;;  %v1557_v56 = vcvt.s32.f32 %v1555_v16  ;;  %v1556_v45 = vcvt.s32.f32 %v1554_v10 }
 0x52e   : > { %1558 = vmin.xlane.f32.xlu1 %v1557_v56 }
 0x5a9   : > { %v1454_v7 = vpop.xlane.xlu0 %1453 }
 0x5aa   : > { %vm1455_vm6 = vcmp.eq.f32.partialorder %v1452_v8, %v1454_v7 }
 0x5ab   : > { %v1469_v47 = vpop.xlane.xlu1 %1468  ;;  %v1456_v37 = vsel %vm1455_vm6, %v1451_v9, inf  ;;  %v1511_v9 = vcvt.s32.f32 %v1509_v41 }
 0x5ac   : > { %1457 = vmin.xlane.f32.xlu0 %v1456_v37  ;;  %vm1470_vm7 = vcmp.eq.f32.partialorder %v1467_v12, %v1469_v47  ;;  %v1475_v35 = vcvt.f32.s32 %v1469_v47 }
 0x5ad   : > { %v1471_v38 = vsel %vm1470_vm7, %v1466_v46, inf }
 0x5ae   : > { %1472 = vmin.xlane.f32.xlu1 %v1471_v38  ;;  %v1476_v2 = vshll.u32 %v1475_v35, 16 }
 0x5b1   : > { %v1484_v40 = vpop.xlane.xlu0 %1483 }
 0x5b2   : > { %vm1485_vm8 = vcmp.eq.f32.partialorder %v1482_v61, %v1484_v40  ;;  %v1490_v18 = vcvt.f32.s32 %v1484_v40 }
 0x5b3   : > { %v1499_v16 = vpop.xlane.xlu1 %1498  ;;  %v1486_v51 = vsel %vm1485_vm8, %v1481_v21, inf }
 0x5b4   : > { %1487 = vmin.xlane.f32.xlu0 %v1486_v51  ;;  %vm1500_vm9 = vcmp.eq.f32.partialorder %v1497_v4, %v1499_v16 }
 0x5b5   : > { %v1501_v50 = vsel %vm1500_vm9, %v1496_v23, inf  ;;  %v1514_v8 = vpop.xlane.xlu0 %1513 }
 0x5b6   : > { %1502 = vmin.xlane.f32.xlu1 %v1501_v50  ;;  %vm1515_vm10 = vcmp.eq.f32.partialorder %v1512_v15, %v1514_v8  ;;  %v1460_v15 = vcvt.f32.s32 %v1454_v7  ;;  %v1491_v7 = vshll.u32 %v1490_v18, 16 }
 0x5b7   : > { %v1529_v46 = vpop.xlane.xlu1 %1528  ;;  %v1516_v12 = vsel %vm1515_vm10, %v1511_v9, inf  ;;  %v1505_v9 = vcvt.f32.s32 %v1499_v16 }
 0x5b8   : > { %1517 = vmin.xlane.f32.xlu0 %v1516_v12  ;;  %vm1530_vm11 = vcmp.eq.f32.partialorder %v1527_v11, %v1529_v46  ;;  %v1461_v11 = vshll.u32 %v1460_v15, 16 }
 0x5b9   : > { %v6474_v48 = vpop.xlane.xlu0 %1543  ;;  %v1531_v61 = vsel %vm1530_vm11, %v1526_v3, inf }
 0x5ba   : > { %1532 = vmin.xlane.f32.xlu1 %v1531_v61  ;;  %vm1545_vm12 = vcmp.eq.f32.partialorder %v1542_v20, %v6474_v48  ;;  %v1535_v61 = vcvt.f32.s32 %v1529_v46 }
 0x5bb   : > { %v6477_v51 = vpop.xlane.xlu1 %1558  ;;  %v1546_v4 = vsel %vm1545_vm12, %v1541_v34, inf }
 0x5bc   : > { %1547 = vmin.xlane.f32.xlu0 %v1546_v4  ;;  %vm1560_vm13 = vcmp.eq.f32.partialorder %v1557_v56, %v6477_v51  ;;  %v1506_v4 = vshll.u32 %v1505_v9, 16 }
 0x5bd   : > { %v1561_v41 = vsel %vm1560_vm13, %v1556_v45, inf }
 0x5be   : > { %1562 = vmin.xlane.f32.xlu1 %v1561_v41 }
 0x639   : > { %v1458_v55 = vpop.xlane.xlu0 %1457 }
 0x63a   : > { %v1459_v37 = vcvt.f32.s32 %v1458_v55  ;;  %v1536_v55 = vshll.u32 %v1535_v61, 16 }
 0x63b   : > { %v1473_v38 = vpop.xlane.xlu1 %1472 }
 0x63c   : > { %v1462_v21 = vadd.s32 %v1461_v11, %v1459_v37  ;;  %v1474_v23 = vcvt.f32.s32 %v1473_v38  ;;  %v1565_v38 = vcvt.f32.s32 %v6477_v51 }
 0x63e   : > { %v1477_v20 = vadd.s32 %v1476_v2, %v1474_v23  ;;  %vm1568_vm14 = vcmp.eq.s32.totalorder %v6340_v26, %v1462_v21 }
 0x63f   : > { %v6482_v50 = vsel %vm1568_vm14, -1e+30, %v6371_v6  ;;  %v6488_v47 = vsel %vm1568_vm14, 1.0, %v8287_v57  ;;  %v1520_v6 = vcvt.f32.s32 %v1514_v8  ;;  %v1550_v8 = vcvt.f32.s32 %v6474_v48 }
 0x640   : > { %v1828_v56 = vsel %vm429_vm0, %v6482_v50, -inf  ;;  %vm1569_vm15 = vcmp.eq.s32.totalorder %v6340_v26, %v1477_v20 }
 0x641   : > { %1829 = vmax.xlane.f32.xlu0 %v1828_v56  ;;  %v1488_v5 = vpop.xlane.xlu0 %1487  ;;  %v6491_v40 = vsel %vm1569_vm15, -1e+30, %v6380_v13  ;;  %v6494_v12 = vsel %vm1569_vm15, 1.0, %v8287_v57  ;;  %v1521_v15 = vshll.u32 %v1520_v6, 16  ;;  %v1551_v56 = vshll.u32 %v1550_v8, 16 }
 0x642   : > { %v1489_v3 = vcvt.f32.s32 %v1488_v5  ;;  %v1831_v10 = vsel %vm429_vm0, %v6491_v40, -inf  ;;  %v1566_v6 = vshll.u32 %v1565_v38, 16 }
 0x643   : > { %1832 = vmax.xlane.f32.xlu1 %v1831_v10  ;;  %v1503_v34 = vpop.xlane.xlu1 %1502 }
 0x644   : > { %v1492_v45 = vadd.s32 %v1491_v7, %v1489_v3  ;;  %v1504_v41 = vcvt.f32.s32 %v1503_v34 }
 0x645   : > { %v1518_v35 = vpop.xlane.xlu0 %1517 }
 0x646   : > { %v1507_v13 = vadd.s32 %v1506_v4, %v1504_v41  ;;  %vm1570_vm2 = vcmp.eq.s32.totalorder %v6340_v26, %v1492_v45  ;;  %v1519_v11 = vcvt.f32.s32 %v1518_v35 }
 0x647   : > { %v6503_v37 = vsel %vm1570_vm2, -1e+30, %v6392_v22  ;;  %v1533_v46 = vpop.xlane.xlu1 %1532  ;;  %v6507_v2 = vsel %vm1570_vm2, 1.0, %v8287_v57 }
 0x648   : > { %8288 = vst [vmem:[#allocation30_spill] sm:$0xff] %v6507_v2  ;;  %v1834_v21 = vsel %vm429_vm0, %v6503_v37, -inf  ;;  %vm1571_vm3 = vcmp.eq.s32.totalorder %v6340_v26, %v1507_v13  ;;  %v1522_v23 = vadd.s32 %v1521_v15, %v1519_v11  ;;  %v1534_v18 = vcvt.f32.s32 %v1533_v46 }
 0x649   : > { %1835 = vmax.xlane.f32.xlu0 %v1834_v21  ;;  %v6513_v48 = vsel %vm1571_vm3, -1e+30, %v6401_v31  ;;  %v6516_v22 = vsel %vm1571_vm3, 1.0, %v8287_v57  ;;  %v1548_v20 = vpop.xlane.xlu0 %1547 }
 0x64a   : > { %v1837_v9 = vsel %vm429_vm0, %v6513_v48, -inf  ;;  %v1537_v7 = vadd.s32 %v1536_v55, %v1534_v18  ;;  %v1549_v5 = vcvt.f32.s32 %v1548_v20  ;;  %vm1572_vm4 = vcmp.eq.s32.totalorder %v6340_v26, %v1522_v23 }
 0x64b   : > { %1838 = vmax.xlane.f32.xlu1 %v1837_v9  ;;  %v1563_v3 = vpop.xlane.xlu1 %1562  ;;  %v6524_v31 = vsel %vm1572_vm4, -1e+30, %v6412_v58  ;;  %v6530_v4 = vsel %vm1572_vm4, 1.0, %v8287_v57 }
 0x64c   : > { %v1552_v10 = vadd.s32 %v1551_v56, %v1549_v5  ;;  %v1564_v61 = vcvt.f32.s32 %v1563_v3  ;;  %v1840_v34 = vsel %vm429_vm0, %v6524_v31, -inf  ;;  %vm1573_vm5 = vcmp.eq.s32.totalorder %v6340_v26, %v1537_v7  ;;  %8289 = vst [vmem:[#allocation31_spill] sm:$0xff] %v6530_v4 }
 0x64d   : > { %1841 = vmax.xlane.f32.xlu0 %v1840_v34  ;;  %v6533_v45 = vsel %vm1573_vm5, -1e+30, %v6421_v59  ;;  %v6536_v41 = vsel %vm1573_vm5, 1.0, %v8287_v57 }
 0x64e   : > { %8290 = vst [vmem:[#allocation32_spill] sm:$0xff] %v6536_v41  ;;  %v1567_v15 = vadd.s32 %v1566_v6, %v1564_v61  ;;  %v1843_v13 = vsel %vm429_vm0, %v6533_v45, -inf  ;;  %vm1574_vm6 = vcmp.eq.s32.totalorder %v6340_v26, %v1552_v10 }
 0x64f   : > { %1844 = vmax.xlane.f32.xlu1 %v1843_v13  ;;  %v6544_v35 = vsel %vm1574_vm6, -1e+30, %v6432_v52  ;;  %v6550_v55 = vsel %vm1574_vm6, 1.0, %v8287_v57 }
 0x650   : > { %v1846_v59 = vsel %vm429_vm0, %v6544_v35, -inf  ;;  %vm1575_vm7 = vcmp.eq.s32.totalorder %v6340_v26, %v1567_v15  ;;  %8291 = vst [vmem:[#allocation33_spill] sm:$0xff] %v6550_v55 }
 0x651   : > { %1847 = vmax.xlane.f32.xlu0 %v1846_v59  ;;  %v6553_v8 = vsel %vm1575_vm7, -1e+30, %v6441_v32  ;;  %v6556_v11 = vsel %vm1575_vm7, 1.0, %v8287_v57 }
 0x652   : > { %8292 = vst [vmem:[#allocation34_spill] sm:$0xff] %v6556_v11  ;;  %v1849_v52 = vsel %vm429_vm0, %v6553_v8, -inf }
 0x653   : > { %1850 = vmax.xlane.f32.xlu1 %v1849_v52 }
 0x6ce   : > { %v1830_v46 = vpop.xlane.xlu0 %1829 }
 0x6cf   : > { %vm1852_vm8 = vcmp.ge.f32.partialorder %v6482_v50, %v1830_v46 }
 0x6d0   : > { %v1860_v21 = vsel %vm1852_vm8, %v6340_v26, 16  ;;  %v1833_v23 = vpop.xlane.xlu1 %1832 }
 0x6d1   : > { %vm1853_vm9 = vcmp.ge.f32.partialorder %v6491_v40, %v1833_v23  ;;  %v1868_v32 = vsel %vm429_vm0, %v1860_v21, 2147483647 }
 0x6d2   : > { %v1861_v18 = vsel %vm1853_vm9, %v6340_v26, 16  ;;  %v1870_v20 = vshra.s32 %v1868_v32, 16  ;;  %v1869_v53 = vand.u32 65535, %v1868_v32 }
 0x6d3   : > { %v1883_v9 = vsel %vm429_vm0, %v1861_v18, 2147483647 }
 0x6d4   : > { %v1872_v56 = vcvt.s32.f32 %v1870_v20  ;;  %v1885_v7 = vshra.s32 %v1883_v9, 16  ;;  %v1871_v44 = vcvt.s32.f32 %v1869_v53 }
 0x6d6   : > { %1873 = vmin.xlane.f32.xlu0 %v1872_v56  ;;  %v1836_v5 = vpop.xlane.xlu0 %1835  ;;  %v1887_v6 = vcvt.s32.f32 %v1885_v7 }
 0x6d7   : > { %vm1854_vm10 = vcmp.ge.f32.partialorder %v6503_v37, %v1836_v5 }
 0x6d8   : > { %v1862_v3 = vsel %vm1854_vm10, %v6340_v26, 16  ;;  %1888 = vmin.xlane.f32.xlu1 %v1887_v6  ;;  %v1839_v10 = vpop.xlane.xlu1 %1838 }
 0x6d9   : > { %vm1855_vm11 = vcmp.ge.f32.partialorder %v6513_v48, %v1839_v10  ;;  %v1898_v61 = vsel %vm429_vm0, %v1862_v3, 2147483647 }
 0x6da   : > { %v1863_v34 = vsel %vm1855_vm11, %v6340_v26, 16  ;;  %v1900_v15 = vshra.s32 %v1898_v61, 16  ;;  %v1842_v13 = vpop.xlane.xlu0 %1841  ;;  %v1899_v11 = vand.u32 65535, %v1898_v61 }
 0x6db   : > { %v1913_v59 = vsel %vm429_vm0, %v1863_v34, 2147483647  ;;  %vm1856_vm12 = vcmp.ge.f32.partialorder %v6524_v31, %v1842_v13 }
 0x6dc   : > { %v1902_v52 = vcvt.s32.f32 %v1900_v15  ;;  %v1915_v46 = vshra.s32 %v1913_v59, 16  ;;  %v1864_v21 = vsel %vm1856_vm12, %v6340_v26, 16  ;;  %v1845_v23 = vpop.xlane.xlu1 %1844 }
 0x6dd   : > { %vm1857_vm13 = vcmp.ge.f32.partialorder %v6533_v45, %v1845_v23  ;;  %v1928_v20 = vsel %vm429_vm0, %v1864_v21, 2147483647 }
 0x6de   : > { %1903 = vmin.xlane.f32.xlu0 %v1902_v52  ;;  %v1917_v18 = vcvt.s32.f32 %v1915_v46  ;;  %v1865_v7 = vsel %vm1857_vm13, %v6340_v26, 16  ;;  %v1848_v5 = vpop.xlane.xlu0 %1847  ;;  %v1930_v3 = vshra.s32 %v1928_v20, 16  ;;  %v1929_v41 = vand.u32 65535, %v1928_v20 }
 0x6df   : > { %vm1858_vm14 = vcmp.ge.f32.partialorder %v6544_v35, %v1848_v5  ;;  %v1943_v10 = vsel %vm429_vm0, %v1865_v7, 2147483647 }
 0x6e0   : > { %1918 = vmin.xlane.f32.xlu1 %v1917_v18  ;;  %v1866_v34 = vsel %vm1858_vm14, %v6340_v26, 16  ;;  %v1851_v15 = vpop.xlane.xlu1 %1850  ;;  %v1932_v13 = vcvt.s32.f32 %v1930_v3  ;;  %v1945_v38 = vshra.s32 %v1943_v10, 16  ;;  %v1884_v3 = vand.u32 65535, %v1883_v9 }
 0x6e1   : > { %vm1859_vm15 = vcmp.ge.f32.partialorder %v6553_v8, %v1851_v15  ;;  %v1958_v46 = vsel %vm429_vm0, %v1866_v34, 2147483647  ;;  %v1944_v53 = vand.u32 65535, %v1943_v10 }
 0x6e2   : > { %v1867_v21 = vsel %vm1859_vm15, %v6340_v26, 16  ;;  %1933 = vmin.xlane.f32.xlu0 %v1932_v13  ;;  %v1947_v23 = vcvt.s32.f32 %v1945_v38  ;;  %v1960_v58 = vshra.s32 %v1958_v46, 16  ;;  %v1886_v55 = vcvt.s32.f32 %v1884_v3 }
 0x6e3   : > { %v1973_v51 = vsel %vm429_vm0, %v1867_v21, 2147483647  ;;  %v1914_v21 = vand.u32 65535, %v1913_v59  ;;  %v1959_v3 = vand.u32 65535, %v1958_v46  ;;  %v1946_v61 = vcvt.s32.f32 %v1944_v53 }
 0x6e4   : > { %1948 = vmin.xlane.f32.xlu1 %v1947_v23  ;;  %v1962_v5 = vcvt.s32.f32 %v1960_v58  ;;  %v1975_v16 = vshra.s32 %v1973_v51, 16  ;;  %v1901_v58 = vcvt.s32.f32 %v1899_v11  ;;  %v1974_v59 = vand.u32 65535, %v1973_v51 }
 0x6e5   : > { %v1916_v32 = vcvt.s32.f32 %v1914_v21  ;;  %v1961_v20 = vcvt.s32.f32 %v1959_v3 }
 0x6e6   : > { %1963 = vmin.xlane.f32.xlu0 %v1962_v5  ;;  %v1977_v7 = vcvt.s32.f32 %v1975_v16  ;;  %v1976_v10 = vcvt.s32.f32 %v1974_v59 }
 0x6e8   : > { %1978 = vmin.xlane.f32.xlu1 %v1977_v7 }
 0x763   : > { %v1874_v43 = vpop.xlane.xlu0 %1873 }
 0x764   : > { %vm1875_vm2 = vcmp.eq.f32.partialorder %v1872_v56, %v1874_v43 }
 0x765   : > { %v1889_v15 = vpop.xlane.xlu1 %1888  ;;  %v1876_v34 = vsel %vm1875_vm2, %v1871_v44, inf  ;;  %v1931_v44 = vcvt.s32.f32 %v1929_v41 }
 0x766   : > { %1877 = vmin.xlane.f32.xlu0 %v1876_v34  ;;  %vm1890_vm3 = vcmp.eq.f32.partialorder %v1887_v6, %v1889_v15  ;;  %v1895_v51 = vcvt.f32.s32 %v1889_v15 }
 0x767   : > { %v1891_v38 = vsel %vm1890_vm3, %v1886_v55, inf }
 0x768   : > { %1892 = vmin.xlane.f32.xlu1 %v1891_v38  ;;  %v1896_v21 = vshll.u32 %v1895_v51, 16 }
 0x76b   : > { %v1904_v4 = vpop.xlane.xlu0 %1903 }
 0x76c   : > { %vm1905_vm4 = vcmp.eq.f32.partialorder %v1902_v52, %v1904_v4  ;;  %v1910_v53 = vcvt.f32.s32 %v1904_v4 }
 0x76d   : > { %v1919_v16 = vpop.xlane.xlu1 %1918  ;;  %v1906_v2 = vsel %vm1905_vm4, %v1901_v58, inf }
 0x76e   : > { %1907 = vmin.xlane.f32.xlu0 %v1906_v2  ;;  %vm1920_vm5 = vcmp.eq.f32.partialorder %v1917_v18, %v1919_v16 }
 0x76f   : > { %v1921_v9 = vsel %vm1920_vm5, %v1916_v32, inf  ;;  %v1934_v56 = vpop.xlane.xlu0 %1933 }
 0x770   : > { %1922 = vmin.xlane.f32.xlu1 %v1921_v9  ;;  %vm1935_vm6 = vcmp.eq.f32.partialorder %v1932_v13, %v1934_v56  ;;  %v1880_v13 = vcvt.f32.s32 %v1874_v43  ;;  %v1911_v43 = vshll.u32 %v1910_v53, 16 }
 0x771   : > { %v1949_v55 = vpop.xlane.xlu1 %1948  ;;  %v1936_v6 = vsel %vm1935_vm6, %v1931_v44, inf  ;;  %v1925_v44 = vcvt.f32.s32 %v1919_v16 }
 0x772   : > { %1937 = vmin.xlane.f32.xlu0 %v1936_v6  ;;  %vm1950_vm7 = vcmp.eq.f32.partialorder %v1947_v23, %v1949_v55  ;;  %v1881_v23 = vshll.u32 %v1880_v13, 16 }
 0x773   : > { %v6586_v11 = vpop.xlane.xlu0 %1963  ;;  %v1951_v52 = vsel %vm1950_vm7, %v1946_v61, inf }
 0x774   : > { %1952 = vmin.xlane.f32.xlu1 %v1951_v52  ;;  %vm1965_vm8 = vcmp.eq.f32.partialorder %v1962_v5, %v6586_v11  ;;  %v1955_v52 = vcvt.f32.s32 %v1949_v55 }
 0x775   : > { %v6589_v2 = vpop.xlane.xlu1 %1978  ;;  %v1966_v18 = vsel %vm1965_vm8, %v1961_v20, inf }
 0x776   : > { %1967 = vmin.xlane.f32.xlu0 %v1966_v18  ;;  %vm1980_vm9 = vcmp.eq.f32.partialorder %v1977_v7, %v6589_v2  ;;  %v1926_v18 = vshll.u32 %v1925_v44, 16 }
 0x777   : > { %v1981_v41 = vsel %vm1980_vm9, %v1976_v10, inf }
 0x778   : > { %1982 = vmin.xlane.f32.xlu1 %v1981_v41 }
 0x7f3   : > { %v1878_v46 = vpop.xlane.xlu0 %1877 }
 0x7f4   : > { %v1879_v34 = vcvt.f32.s32 %v1878_v46  ;;  %v1956_v46 = vshll.u32 %v1955_v52, 16 }
 0x7f5   : > { %v1893_v38 = vpop.xlane.xlu1 %1892 }
 0x7f6   : > { %v1882_v58 = vadd.s32 %v1881_v23, %v1879_v34  ;;  %v1894_v32 = vcvt.f32.s32 %v1893_v38  ;;  %v1985_v38 = vcvt.f32.s32 %v6589_v2 }
 0x7f8   : > { %v1897_v5 = vadd.s32 %v1896_v21, %v1894_v32  ;;  %vm1988_vm10 = vcmp.eq.s32.totalorder %v6340_v26, %v1882_v58 }
 0x7f9   : > { %v6594_v9 = vsel %vm1988_vm10, -1e+30, %v6482_v50  ;;  %v6600_v15 = vsel %vm1988_vm10, 1.0, %v8287_v57  ;;  %v1940_v50 = vcvt.f32.s32 %v1934_v56  ;;  %v1970_v56 = vcvt.f32.s32 %v6586_v11 }
 0x7fa   : > { %v2248_v7 = vsel %vm429_vm0, %v6594_v9, -inf  ;;  %vm1989_vm11 = vcmp.eq.s32.totalorder %v6340_v26, %v1897_v5  ;;  %8293 = vst [vmem:[#allocation35_spill] sm:$0xff] %v6600_v15 }
 0x7fb   : > { %2249 = vmax.xlane.f32.xlu0 %v2248_v7  ;;  %v1908_v3 = vpop.xlane.xlu0 %1907  ;;  %v6603_v4 = vsel %vm1989_vm11, -1e+30, %v6491_v40  ;;  %v6606_v6 = vsel %vm1989_vm11, 1.0, %v8287_v57  ;;  %v1941_v13 = vshll.u32 %v1940_v50, 16  ;;  %v1971_v7 = vshll.u32 %v1970_v56, 16 }
 0x7fc   : > { %8294 = vst [vmem:[#allocation36_spill] sm:$0xff] %v6606_v6  ;;  %v1909_v61 = vcvt.f32.s32 %v1908_v3  ;;  %v2251_v59 = vsel %vm429_vm0, %v6603_v4, -inf  ;;  %v1986_v50 = vshll.u32 %v1985_v38, 16 }
 0x7fd   : > { %2252 = vmax.xlane.f32.xlu1 %v2251_v59  ;;  %v1923_v20 = vpop.xlane.xlu1 %1922 }
 0x7fe   : > { %v1912_v10 = vadd.s32 %v1911_v43, %v1909_v61  ;;  %v1924_v41 = vcvt.f32.s32 %v1923_v20 }
 0x7ff   : > { %v1938_v51 = vpop.xlane.xlu0 %1937 }
 0x800   : > { %v1927_v40 = vadd.s32 %v1926_v18, %v1924_v41  ;;  %vm1990_vm12 = vcmp.eq.s32.totalorder %v6340_v26, %v1912_v10  ;;  %v1939_v23 = vcvt.f32.s32 %v1938_v51 }
 0x801   : > { %v6615_v34 = vsel %vm1990_vm12, -1e+30, %v6503_v37  ;;  %v1953_v55 = vpop.xlane.xlu1 %1952  ;;  %v6619_v21 = vsel %vm1990_vm12, 1.0, %v8287_v57 }
 0x802   : > { %8295 = vst [vmem:[#allocation37_spill] sm:$0xff] %v6619_v21  ;;  %v2254_v58 = vsel %vm429_vm0, %v6615_v34, -inf  ;;  %vm1991_vm13 = vcmp.eq.s32.totalorder %v6340_v26, %v1927_v40  ;;  %v1942_v32 = vadd.s32 %v1941_v13, %v1939_v23  ;;  %v1954_v53 = vcvt.f32.s32 %v1953_v55 }
 0x803   : > { %2255 = vmax.xlane.f32.xlu0 %v2254_v58  ;;  %v6625_v11 = vsel %vm1991_vm13, -1e+30, %v6513_v48  ;;  %v6628_v37 = vsel %vm1991_vm13, 1.0, %v8287_v57  ;;  %v1968_v5 = vpop.xlane.xlu0 %1967 }
 0x804   : > { %8296 = vst [vmem:[#allocation38_spill] sm:$0xff] %v6628_v37  ;;  %v2257_v44 = vsel %vm429_vm0, %v6625_v11, -inf  ;;  %v1957_v43 = vadd.s32 %v1956_v46, %v1954_v53  ;;  %v1969_v3 = vcvt.f32.s32 %v1968_v5  ;;  %vm1992_vm14 = vcmp.eq.s32.totalorder %v6340_v26, %v1942_v32 }
 0x805   : > { %2258 = vmax.xlane.f32.xlu1 %v2257_v44  ;;  %v1983_v61 = vpop.xlane.xlu1 %1982  ;;  %v6636_v48 = vsel %vm1992_vm14, -1e+30, %v6524_v31  ;;  %v6642_v18 = vsel %vm1992_vm14, 1.0, %v8287_v57 }
 0x806   : > { %v1972_v59 = vadd.s32 %v1971_v7, %v1969_v3  ;;  %v1984_v52 = vcvt.f32.s32 %v1983_v61  ;;  %v2260_v20 = vsel %vm429_vm0, %v6636_v48, -inf  ;;  %vm1993_vm15 = vcmp.eq.s32.totalorder %v6340_v26, %v1957_v43  ;;  %8297 = vst [vmem:[#allocation39_spill] sm:$0xff] %v6642_v18 }
 0x807   : > { %2261 = vmax.xlane.f32.xlu0 %v2260_v20  ;;  %v6645_v10 = vsel %vm1993_vm15, -1e+30, %v6533_v45  ;;  %v6648_v41 = vsel %vm1993_vm15, 1.0, %v8287_v57 }
 0x808   : > { %8298 = vst [vmem:[#allocation40_spill] sm:$0xff] %v6648_v41  ;;  %v1987_v13 = vadd.s32 %v1986_v50, %v1984_v52  ;;  %v2263_v40 = vsel %vm429_vm0, %v6645_v10, -inf  ;;  %vm1994_vm2 = vcmp.eq.s32.totalorder %v6340_v26, %v1972_v59 }
 0x809   : > { %2264 = vmax.xlane.f32.xlu1 %v2263_v40  ;;  %v6656_v51 = vsel %vm1994_vm2, -1e+30, %v6544_v35  ;;  %v6662_v46 = vsel %vm1994_vm2, 1.0, %v8287_v57 }
 0x80a   : > { %v2266_v45 = vsel %vm429_vm0, %v6656_v51, -inf  ;;  %vm1995_vm3 = vcmp.eq.s32.totalorder %v6340_v26, %v1987_v13  ;;  %8299 = vst [vmem:[#allocation41_spill] sm:$0xff] %v6662_v46 }
 0x80b   : > { %2267 = vmax.xlane.f32.xlu0 %v2266_v45  ;;  %v6665_v56 = vsel %vm1995_vm3, -1e+30, %v6553_v8  ;;  %v6668_v23 = vsel %vm1995_vm3, 1.0, %v8287_v57 }
 0x80c   : > { %8300 = vst [vmem:[#allocation42_spill] sm:$0xff] %v6668_v23  ;;  %v2269_v35 = vsel %vm429_vm0, %v6665_v56, -inf }
 0x80d   : > { %2270 = vmax.xlane.f32.xlu1 %v2269_v35 }
 0x888   : > { %v2250_v55 = vpop.xlane.xlu0 %2249 }
 0x889   : > { %vm2272_vm4 = vcmp.ge.f32.partialorder %v6594_v9, %v2250_v55 }
 0x88a   : > { %v2280_v58 = vsel %vm2272_vm4, %v6340_v26, 16  ;;  %v2253_v32 = vpop.xlane.xlu1 %2252 }
 0x88b   : > { %vm2273_vm5 = vcmp.ge.f32.partialorder %v6603_v4, %v2253_v32  ;;  %v2288_v8 = vsel %vm429_vm0, %v2280_v58, 2147483647 }
 0x88c   : > { %v2281_v53 = vsel %vm2273_vm5, %v6340_v26, 16  ;;  %v2290_v5 = vshra.s32 %v2288_v8, 16  ;;  %v2289_v46 = vand.u32 65535, %v2288_v8 }
 0x88d   : > { %v2303_v44 = vsel %vm429_vm0, %v2281_v53, 2147483647 }
 0x88e   : > { %v2292_v7 = vcvt.s32.f32 %v2290_v5  ;;  %v2305_v43 = vshra.s32 %v2303_v44, 16  ;;  %v2291_v18 = vcvt.s32.f32 %v2289_v46 }
 0x890   : > { %2293 = vmin.xlane.f32.xlu0 %v2292_v7  ;;  %v2256_v3 = vpop.xlane.xlu0 %2255  ;;  %v2307_v50 = vcvt.s32.f32 %v2305_v43 }
 0x891   : > { %vm2274_vm6 = vcmp.ge.f32.partialorder %v6615_v34, %v2256_v3 }
 0x892   : > { %v2282_v61 = vsel %vm2274_vm6, %v6340_v26, 16  ;;  %2308 = vmin.xlane.f32.xlu1 %v2307_v50  ;;  %v2259_v59 = vpop.xlane.xlu1 %2258 }
 0x893   : > { %vm2275_vm7 = vcmp.ge.f32.partialorder %v6625_v11, %v2259_v59  ;;  %v2318_v52 = vsel %vm429_vm0, %v2282_v61, 2147483647 }
 0x894   : > { %v2283_v20 = vsel %vm2275_vm7, %v6340_v26, 16  ;;  %v2320_v13 = vshra.s32 %v2318_v52, 16  ;;  %v2262_v40 = vpop.xlane.xlu0 %2261 }
 0x895   : > { %v2333_v45 = vsel %vm429_vm0, %v2283_v20, 2147483647  ;;  %vm2276_vm8 = vcmp.ge.f32.partialorder %v6636_v48, %v2262_v40 }
 0x896   : > { %v2322_v35 = vcvt.s32.f32 %v2320_v13  ;;  %v2335_v55 = vshra.s32 %v2333_v45, 16  ;;  %v2284_v58 = vsel %vm2276_vm8, %v6340_v26, 16  ;;  %v2265_v32 = vpop.xlane.xlu1 %2264 }
 0x897   : > { %vm2277_vm9 = vcmp.ge.f32.partialorder %v6645_v10, %v2265_v32  ;;  %v2348_v5 = vsel %vm429_vm0, %v2284_v58, 2147483647 }
 0x898   : > { %2323 = vmin.xlane.f32.xlu0 %v2322_v35  ;;  %v2337_v53 = vcvt.s32.f32 %v2335_v55  ;;  %v2285_v43 = vsel %vm2277_vm9, %v6340_v26, 16  ;;  %v2268_v3 = vpop.xlane.xlu0 %2267  ;;  %v2350_v61 = vshra.s32 %v2348_v5, 16  ;;  %v2349_v15 = vand.u32 65535, %v2348_v5 }
 0x899   : > { %vm2278_vm10 = vcmp.ge.f32.partialorder %v6656_v51, %v2268_v3  ;;  %v2363_v59 = vsel %vm429_vm0, %v2285_v43, 2147483647 }
 0x89a   : > { %2338 = vmin.xlane.f32.xlu1 %v2337_v53  ;;  %v2286_v20 = vsel %vm2278_vm10, %v6340_v26, 16  ;;  %v2271_v13 = vpop.xlane.xlu1 %2270  ;;  %v2352_v40 = vcvt.s32.f32 %v2350_v61  ;;  %v2365_v38 = vshra.s32 %v2363_v59, 16  ;;  %v2304_v61 = vand.u32 65535, %v2303_v44 }
 0x89b   : > { %vm2279_vm11 = vcmp.ge.f32.partialorder %v6665_v56, %v2271_v13  ;;  %v2378_v55 = vsel %vm429_vm0, %v2286_v20, 2147483647  ;;  %v2364_v44 = vand.u32 65535, %v2363_v59 }
 0x89c   : > { %v2287_v58 = vsel %vm2279_vm11, %v6340_v26, 16  ;;  %2353 = vmin.xlane.f32.xlu0 %v2352_v40  ;;  %v2367_v32 = vcvt.s32.f32 %v2365_v38  ;;  %v2380_v31 = vshra.s32 %v2378_v55, 16  ;;  %v2306_v41 = vcvt.s32.f32 %v2304_v61 }
 0x89d   : > { %v2393_v2 = vsel %vm429_vm0, %v2287_v58, 2147483647  ;;  %v2319_v38 = vand.u32 65535, %v2318_v52  ;;  %v2334_v58 = vand.u32 65535, %v2333_v45  ;;  %v2351_v61 = vcvt.s32.f32 %v2349_v15 }
 0x89e   : > { %2368 = vmin.xlane.f32.xlu1 %v2367_v32  ;;  %v2382_v3 = vcvt.s32.f32 %v2380_v31  ;;  %v2395_v16 = vshra.s32 %v2393_v2, 16  ;;  %v2366_v52 = vcvt.s32.f32 %v2364_v44 }
 0x89f   : > { %v2321_v31 = vcvt.s32.f32 %v2319_v38  ;;  %v2336_v8 = vcvt.s32.f32 %v2334_v58 }
 0x8a0   : > { %2383 = vmin.xlane.f32.xlu0 %v2382_v3  ;;  %v2397_v43 = vcvt.s32.f32 %v2395_v16 }
 0x8a2   : > { %2398 = vmin.xlane.f32.xlu1 %v2397_v43 }
 0x91d   : > { %v2294_v23 = vpop.xlane.xlu0 %2293 }
 0x91e   : > { %vm2295_vm12 = vcmp.eq.f32.partialorder %v2292_v7, %v2294_v23  ;;  %v2379_v7 = vand.u32 65535, %v2378_v55 }
 0x91f   : > { %v2309_v13 = vpop.xlane.xlu1 %2308  ;;  %v2296_v20 = vsel %vm2295_vm12, %v2291_v18, inf }
 0x920   : > { %2297 = vmin.xlane.f32.xlu0 %v2296_v20  ;;  %vm2310_vm13 = vcmp.eq.f32.partialorder %v2307_v50, %v2309_v13  ;;  %v2394_v50 = vand.u32 65535, %v2393_v2  ;;  %v2381_v5 = vcvt.s32.f32 %v2379_v7  ;;  %v2300_v2 = vcvt.f32.s32 %v2294_v23 }
 0x921   : > { %v2311_v21 = vsel %vm2310_vm13, %v2306_v41, inf }
 0x922   : > { %2312 = vmin.xlane.f32.xlu1 %v2311_v21  ;;  %v2396_v59 = vcvt.s32.f32 %v2394_v50 }
 0x925   : > { %v2324_v37 = vpop.xlane.xlu0 %2323 }
 0x926   : > { %vm2325_vm14 = vcmp.eq.f32.partialorder %v2322_v35, %v2324_v37  ;;  %v2330_v44 = vcvt.f32.s32 %v2324_v37 }
 0x927   : > { %v2339_v16 = vpop.xlane.xlu1 %2338  ;;  %v2326_v6 = vsel %vm2325_vm14, %v2321_v31, inf }
 0x928   : > { %2327 = vmin.xlane.f32.xlu0 %v2326_v6  ;;  %vm2340_vm15 = vcmp.eq.f32.partialorder %v2337_v53, %v2339_v16  ;;  %v2345_v7 = vcvt.f32.s32 %v2339_v16  ;;  %v2331_v23 = vshll.u32 %v2330_v44, 16 }
 0x929   : > { %v2341_v46 = vsel %vm2340_vm15, %v2336_v8, inf  ;;  %v2354_v18 = vpop.xlane.xlu0 %2353 }
 0x92a   : > { %2342 = vmin.xlane.f32.xlu1 %v2341_v46  ;;  %vm2355_vm2 = vcmp.eq.f32.partialorder %v2352_v40, %v2354_v18  ;;  %v2315_v40 = vcvt.f32.s32 %v2309_v13 }
 0x92b   : > { %v2369_v41 = vpop.xlane.xlu1 %2368  ;;  %v2356_v21 = vsel %vm2355_vm2, %v2351_v61, inf }
 0x92c   : > { %2357 = vmin.xlane.f32.xlu0 %v2356_v21  ;;  %vm2370_vm3 = vcmp.eq.f32.partialorder %v2367_v32, %v2369_v41  ;;  %v2301_v32 = vshll.u32 %v2300_v2, 16  ;;  %v2316_v58 = vshll.u32 %v2315_v40, 16 }
 0x92d   : > { %v6698_v45 = vpop.xlane.xlu0 %2383  ;;  %v2371_v35 = vsel %vm2370_vm3, %v2366_v52, inf }
 0x92e   : > { %2372 = vmin.xlane.f32.xlu1 %v2371_v35  ;;  %vm2385_vm4 = vcmp.eq.f32.partialorder %v2382_v3, %v6698_v45  ;;  %v2375_v35 = vcvt.f32.s32 %v2369_v41 }
 0x92f   : > { %v6701_v6 = vpop.xlane.xlu1 %2398  ;;  %v2386_v53 = vsel %vm2385_vm4, %v2381_v5, inf }
 0x930   : > { %2387 = vmin.xlane.f32.xlu0 %v2386_v53  ;;  %vm2400_vm5 = vcmp.eq.f32.partialorder %v2397_v43, %v6701_v6  ;;  %v2346_v53 = vshll.u32 %v2345_v7, 16 }
 0x931   : > { %v2401_v15 = vsel %vm2400_vm5, %v2396_v59, inf }
 0x932   : > { %2402 = vmin.xlane.f32.xlu1 %v2401_v15 }
 0x9ad   : > { %v2298_v55 = vpop.xlane.xlu0 %2297 }
 0x9ae   : > { %v2299_v20 = vcvt.f32.s32 %v2298_v55  ;;  %v2376_v55 = vshll.u32 %v2375_v35, 16 }
 0x9af   : > { %v2313_v38 = vpop.xlane.xlu1 %2312 }
 0x9b0   : > { %v2302_v31 = vadd.s32 %v2301_v32, %v2299_v20  ;;  %v2314_v8 = vcvt.f32.s32 %v2313_v38  ;;  %v2405_v38 = vcvt.f32.s32 %v6701_v6 }
 0x9b2   : > { %v2317_v3 = vadd.s32 %v2316_v58, %v2314_v8  ;;  %vm2408_vm6 = vcmp.eq.s32.totalorder %v6340_v26, %v2302_v31 }
 0x9b3   : > { %v6706_v46 = vsel %vm2408_vm6, -1e+30, %v6594_v9  ;;  %v6712_v13 = vsel %vm2408_vm6, 1.0, %v8287_v57  ;;  %v2360_v9 = vcvt.f32.s32 %v2354_v18  ;;  %v2390_v18 = vcvt.f32.s32 %v6698_v45 }
 0x9b4   : > { %v2668_v43 = vsel %vm429_vm0, %v6706_v46, -inf  ;;  %vm2409_vm7 = vcmp.eq.s32.totalorder %v6340_v26, %v2317_v3  ;;  %8301 = vst [vmem:[#allocation43_spill] sm:$0xff] %v6712_v13 }
 0x9b5   : > { %2669 = vmax.xlane.f32.xlu0 %v2668_v43  ;;  %v2328_v61 = vpop.xlane.xlu0 %2327  ;;  %v6715_v37 = vsel %vm2409_vm7, -1e+30, %v6603_v4  ;;  %v6718_v50 = vsel %vm2409_vm7, 1.0, %v8287_v57  ;;  %v2361_v2 = vshll.u32 %v2360_v9, 16  ;;  %v2391_v43 = vshll.u32 %v2390_v18, 16 }
 0x9b6   : > { %8302 = vst [vmem:[#allocation44_spill] sm:$0xff] %v6718_v50  ;;  %v2329_v21 = vcvt.f32.s32 %v2328_v61  ;;  %v2671_v52 = vsel %vm429_vm0, %v6715_v37, -inf  ;;  %v2406_v9 = vshll.u32 %v2405_v38, 16 }
 0x9b7   : > { %2672 = vmax.xlane.f32.xlu1 %v2671_v52  ;;  %v2343_v5 = vpop.xlane.xlu1 %2342 }
 0x9b8   : > { %v2332_v59 = vadd.s32 %v2331_v23, %v2329_v21  ;;  %v2344_v15 = vcvt.f32.s32 %v2343_v5 }
 0x9b9   : > { %v2358_v40 = vpop.xlane.xlu0 %2357 }
 0x9ba   : > { %v2347_v4 = vadd.s32 %v2346_v53, %v2344_v15  ;;  %vm2410_vm8 = vcmp.eq.s32.totalorder %v6340_v26, %v2332_v59  ;;  %v2359_v32 = vcvt.f32.s32 %v2358_v40 }
 0x9bb   : > { %v6727_v20 = vsel %vm2410_vm8, -1e+30, %v6615_v34  ;;  %v2373_v41 = vpop.xlane.xlu1 %2372  ;;  %v6731_v58 = vsel %vm2410_vm8, 1.0, %v8287_v57 }
 0x9bc   : > { %8303 = vst [vmem:[#allocation45_spill] sm:$0xff] %v6731_v58  ;;  %v2674_v31 = vsel %vm429_vm0, %v6727_v20, -inf  ;;  %vm2411_vm9 = vcmp.eq.s32.totalorder %v6340_v26, %v2347_v4  ;;  %v2362_v8 = vadd.s32 %v2361_v2, %v2359_v32  ;;  %v2374_v44 = vcvt.f32.s32 %v2373_v41 }
 0x9bd   : > { %2675 = vmax.xlane.f32.xlu0 %v2674_v31  ;;  %v6737_v45 = vsel %vm2411_vm9, -1e+30, %v6625_v11  ;;  %v6740_v34 = vsel %vm2411_vm9, 1.0, %v8287_v57  ;;  %v2388_v3 = vpop.xlane.xlu0 %2387 }
 0x9be   : > { %8304 = vst [vmem:[#allocation46_spill] sm:$0xff] %v6740_v34  ;;  %v2677_v7 = vsel %vm429_vm0, %v6737_v45, -inf  ;;  %v2377_v23 = vadd.s32 %v2376_v55, %v2374_v44  ;;  %v2389_v61 = vcvt.f32.s32 %v2388_v3  ;;  %vm2412_vm10 = vcmp.eq.s32.totalorder %v6340_v26, %v2362_v8 }
 0x9bf   : > { %2678 = vmax.xlane.f32.xlu1 %v2677_v7  ;;  %v2403_v21 = vpop.xlane.xlu1 %2402  ;;  %v6748_v11 = vsel %vm2412_vm10, -1e+30, %v6636_v48  ;;  %v6754_v53 = vsel %vm2412_vm10, 1.0, %v8287_v57 }
 0x9c0   : > { %v2392_v52 = vadd.s32 %v2391_v43, %v2389_v61  ;;  %v2404_v35 = vcvt.f32.s32 %v2403_v21  ;;  %v2680_v5 = vsel %vm429_vm0, %v6748_v11, -inf  ;;  %vm2413_vm11 = vcmp.eq.s32.totalorder %v6340_v26, %v2377_v23  ;;  %8305 = vst [vmem:[#allocation47_spill] sm:$0xff] %v6754_v53 }
 0x9c1   : > { %2681 = vmax.xlane.f32.xlu0 %v2680_v5  ;;  %v6757_v59 = vsel %vm2413_vm11, -1e+30, %v6645_v10  ;;  %v6760_v15 = vsel %vm2413_vm11, 1.0, %v8287_v57 }
 0x9c2   : > { %8306 = vst [vmem:[#allocation48_spill] sm:$0xff] %v6760_v15  ;;  %v2407_v2 = vadd.s32 %v2406_v9, %v2404_v35  ;;  %v2683_v4 = vsel %vm429_vm0, %v6757_v59, -inf  ;;  %vm2414_vm12 = vcmp.eq.s32.totalorder %v6340_v26, %v2392_v52 }
 0x9c3   : > { %2684 = vmax.xlane.f32.xlu1 %v2683_v4  ;;  %v6768_v40 = vsel %vm2414_vm12, -1e+30, %v6656_v51  ;;  %v6774_v55 = vsel %vm2414_vm12, 1.0, %v8287_v57 }
 0x9c4   : > { %v2686_v10 = vsel %vm429_vm0, %v6768_v40, -inf  ;;  %vm2415_vm13 = vcmp.eq.s32.totalorder %v6340_v26, %v2407_v2  ;;  %8307 = vst [vmem:[#allocation49_spill] sm:$0xff] %v6774_v55 }
 0x9c5   : > { %2687 = vmax.xlane.f32.xlu0 %v2686_v10  ;;  %v6777_v18 = vsel %vm2415_vm13, -1e+30, %v6665_v56  ;;  %v6780_v32 = vsel %vm2415_vm13, 1.0, %v8287_v57 }
 0x9c6   : > { %8308 = vst [vmem:[#allocation50_spill] sm:$0xff] %v6780_v32  ;;  %v2689_v51 = vsel %vm429_vm0, %v6777_v18, -inf }
 0x9c7   : > { %2690 = vmax.xlane.f32.xlu1 %v2689_v51 }
 0xa42   : > { %v2670_v41 = vpop.xlane.xlu0 %2669 }
 0xa43   : > { %vm2692_vm14 = vcmp.ge.f32.partialorder %v6706_v46, %v2670_v41 }
 0xa44   : > { %v2700_v31 = vsel %vm2692_vm14, %v6340_v26, 16  ;;  %v2673_v8 = vpop.xlane.xlu1 %2672 }
 0xa45   : > { %v2708_v44 = vsel %vm429_vm0, %v2700_v31, 2147483647  ;;  %vm2693_vm15 = vcmp.ge.f32.partialorder %v6715_v37, %v2673_v8 }
 0xa46   : > { %v2701_v56 = vsel %vm2693_vm15, %v6340_v26, 16  ;;  %v2710_v3 = vshra.s32 %v2708_v44, 16  ;;  %v2709_v55 = vand.u32 65535, %v2708_v44 }
 0xa47   : > { %v2723_v7 = vsel %vm429_vm0, %v2701_v56, 2147483647 }
 0xa48   : > { %v2712_v43 = vcvt.s32.f32 %v2710_v3  ;;  %v2725_v23 = vshra.s32 %v2723_v7, 16  ;;  %v2711_v53 = vcvt.s32.f32 %v2709_v55 }
 0xa4a   : > { %2713 = vmin.xlane.f32.xlu0 %v2712_v43  ;;  %v2676_v61 = vpop.xlane.xlu0 %2675  ;;  %v2727_v9 = vcvt.s32.f32 %v2725_v23 }
 0xa4b   : > { %vm2694_vm2 = vcmp.ge.f32.partialorder %v6727_v20, %v2676_v61 }
 0xa4c   : > { %v2702_v21 = vsel %vm2694_vm2, %v6340_v26, 16  ;;  %2728 = vmin.xlane.f32.xlu1 %v2727_v9  ;;  %v2679_v52 = vpop.xlane.xlu1 %2678 }
 0xa4d   : > { %v2738_v35 = vsel %vm429_vm0, %v2702_v21, 2147483647  ;;  %vm2695_vm3 = vcmp.ge.f32.partialorder %v6737_v45, %v2679_v52 }
 0xa4e   : > { %v2703_v5 = vsel %vm2695_vm3, %v6340_v26, 16  ;;  %v2740_v2 = vshra.s32 %v2738_v35, 16  ;;  %v2682_v10 = vpop.xlane.xlu0 %2681  ;;  %v2739_v58 = vand.u32 65535, %v2738_v35 }
 0xa4f   : > { %v2753_v4 = vsel %vm429_vm0, %v2703_v5, 2147483647  ;;  %vm2696_vm4 = vcmp.ge.f32.partialorder %v6748_v11, %v2682_v10 }
 0xa50   : > { %v2742_v51 = vcvt.s32.f32 %v2740_v2  ;;  %v2755_v41 = vshra.s32 %v2753_v4, 16  ;;  %v2704_v31 = vsel %vm2696_vm4, %v6340_v26, 16  ;;  %v2685_v8 = vpop.xlane.xlu1 %2684 }
 0xa51   : > { %v2768_v56 = vsel %vm429_vm0, %v2704_v31, 2147483647  ;;  %vm2697_vm5 = vcmp.ge.f32.partialorder %v6757_v59, %v2685_v8 }
 0xa52   : > { %2743 = vmin.xlane.f32.xlu0 %v2742_v51  ;;  %v2757_v3 = vcvt.s32.f32 %v2755_v41  ;;  %v2705_v23 = vsel %vm2697_vm5, %v6340_v26, 16  ;;  %v2688_v61 = vpop.xlane.xlu0 %2687  ;;  %v2770_v21 = vshra.s32 %v2768_v56, 16  ;;  %v2769_v13 = vand.u32 65535, %v2768_v56 }
 0xa53   : > { %v2783_v52 = vsel %vm429_vm0, %v2705_v23, 2147483647  ;;  %vm2698_vm6 = vcmp.ge.f32.partialorder %v6768_v40, %v2688_v61 }
 0xa54   : > { %2758 = vmin.xlane.f32.xlu1 %v2757_v3  ;;  %v2706_v5 = vsel %vm2698_vm6, %v6340_v26, 16  ;;  %v2691_v2 = vpop.xlane.xlu1 %2690  ;;  %v2772_v10 = vcvt.s32.f32 %v2770_v21  ;;  %v2785_v38 = vshra.s32 %v2783_v52, 16  ;;  %v2724_v21 = vand.u32 65535, %v2723_v7 }
 0xa55   : > { %v2798_v31 = vsel %vm429_vm0, %v2706_v5, 2147483647  ;;  %vm2699_vm7 = vcmp.ge.f32.partialorder %v6777_v18, %v2691_v2  ;;  %v2784_v55 = vand.u32 65535, %v2783_v52 }
 0xa56   : > { %v2707_v41 = vsel %vm2699_vm7, %v6340_v26, 16  ;;  %2773 = vmin.xlane.f32.xlu0 %v2772_v10  ;;  %v2787_v8 = vcvt.s32.f32 %v2785_v38  ;;  %v2800_v48 = vshra.s32 %v2798_v31, 16  ;;  %v2726_v15 = vcvt.s32.f32 %v2724_v21 }
 0xa57   : > { %v2813_v6 = vsel %vm429_vm0, %v2707_v41, 2147483647  ;;  %v2754_v41 = vand.u32 65535, %v2753_v4  ;;  %v2799_v21 = vand.u32 65535, %v2798_v31  ;;  %v2786_v35 = vcvt.s32.f32 %v2784_v55 }
 0xa58   : > { %2788 = vmin.xlane.f32.xlu1 %v2787_v8  ;;  %v2802_v23 = vcvt.s32.f32 %v2800_v48  ;;  %v2815_v61 = vshra.s32 %v2813_v6, 16  ;;  %v2741_v48 = vcvt.s32.f32 %v2739_v58  ;;  %v2814_v4 = vand.u32 65535, %v2813_v6 }
 0xa59   : > { %v2756_v44 = vcvt.s32.f32 %v2754_v41  ;;  %v2801_v56 = vcvt.s32.f32 %v2799_v21 }
 0xa5a   : > { %2803 = vmin.xlane.f32.xlu0 %v2802_v23  ;;  %v2817_v16 = vcvt.s32.f32 %v2815_v61  ;;  %v2816_v52 = vcvt.s32.f32 %v2814_v4 }
 0xa5c   : > { %2818 = vmin.xlane.f32.xlu1 %v2817_v16 }
 0xad7   : > { %v2714_v32 = vpop.xlane.xlu0 %2713 }
 0xad8   : > { %vm2715_vm8 = vcmp.eq.f32.partialorder %v2712_v43, %v2714_v32 }
 0xad9   : > { %v2729_v5 = vpop.xlane.xlu1 %2728  ;;  %v2716_v2 = vsel %vm2715_vm8, %v2711_v53, inf  ;;  %v2771_v53 = vcvt.s32.f32 %v2769_v13 }
 0xada   : > { %2717 = vmin.xlane.f32.xlu0 %v2716_v2  ;;  %vm2730_vm9 = vcmp.eq.f32.partialorder %v2727_v9, %v2729_v5  ;;  %v2735_v6 = vcvt.f32.s32 %v2729_v5 }
 0xadb   : > { %v2731_v38 = vsel %vm2730_vm9, %v2726_v15, inf }
 0xadc   : > { %2732 = vmin.xlane.f32.xlu1 %v2731_v38  ;;  %v2736_v41 = vshll.u32 %v2735_v6, 16 }
 0xadf   : > { %v2744_v34 = vpop.xlane.xlu0 %2743 }
 0xae0   : > { %vm2745_vm10 = vcmp.eq.f32.partialorder %v2742_v51, %v2744_v34  ;;  %v2750_v55 = vcvt.f32.s32 %v2744_v34 }
 0xae1   : > { %v2759_v61 = vpop.xlane.xlu1 %2758  ;;  %v2746_v50 = vsel %vm2745_vm10, %v2741_v48, inf }
 0xae2   : > { %2747 = vmin.xlane.f32.xlu0 %v2746_v50  ;;  %vm2760_vm11 = vcmp.eq.f32.partialorder %v2757_v3, %v2759_v61 }
 0xae3   : > { %v2761_v7 = vsel %vm2760_vm11, %v2756_v44, inf  ;;  %v2774_v43 = vpop.xlane.xlu0 %2773 }
 0xae4   : > { %2762 = vmin.xlane.f32.xlu1 %v2761_v7  ;;  %vm2775_vm12 = vcmp.eq.f32.partialorder %v2772_v10, %v2774_v43  ;;  %v2720_v10 = vcvt.f32.s32 %v2714_v32  ;;  %v2751_v32 = vshll.u32 %v2750_v55, 16 }
 0xae5   : > { %v2789_v15 = vpop.xlane.xlu1 %2788  ;;  %v2776_v9 = vsel %vm2775_vm12, %v2771_v53, inf  ;;  %v2765_v53 = vcvt.f32.s32 %v2759_v61 }
 0xae6   : > { %2777 = vmin.xlane.f32.xlu0 %v2776_v9  ;;  %vm2790_vm13 = vcmp.eq.f32.partialorder %v2787_v8, %v2789_v15  ;;  %v2721_v8 = vshll.u32 %v2720_v10, 16 }
 0xae7   : > { %v6810_v58 = vpop.xlane.xlu0 %2803  ;;  %v2791_v51 = vsel %vm2790_vm13, %v2786_v35, inf }
 0xae8   : > { %2792 = vmin.xlane.f32.xlu1 %v2791_v51  ;;  %vm2805_vm14 = vcmp.eq.f32.partialorder %v2802_v23, %v6810_v58  ;;  %v2795_v51 = vcvt.f32.s32 %v2789_v15 }
 0xae9   : > { %v6813_v50 = vpop.xlane.xlu1 %2818  ;;  %v2806_v3 = vsel %vm2805_vm14, %v2801_v56, inf }
 0xaea   : > { %2807 = vmin.xlane.f32.xlu0 %v2806_v3  ;;  %vm2820_vm15 = vcmp.eq.f32.partialorder %v2817_v16, %v6813_v50  ;;  %v2766_v3 = vshll.u32 %v2765_v53, 16 }
 0xaeb   : > { %v2821_v13 = vsel %vm2820_vm15, %v2816_v52, inf }
 0xaec   : > { %2822 = vmin.xlane.f32.xlu1 %v2821_v13 }
 0xb67   : > { %v2718_v31 = vpop.xlane.xlu0 %2717 }
 0xb68   : > { %v2719_v2 = vcvt.f32.s32 %v2718_v31  ;;  %v2796_v31 = vshll.u32 %v2795_v51, 16 }
 0xb69   : > { %v2733_v38 = vpop.xlane.xlu1 %2732 }
 0xb6a   : > { %v2722_v48 = vadd.s32 %v2721_v8, %v2719_v2  ;;  %v2734_v44 = vcvt.f32.s32 %v2733_v38  ;;  %v2825_v38 = vcvt.f32.s32 %v6813_v50 }
 0xb6c   : > { %v2737_v23 = vadd.s32 %v2736_v41, %v2734_v44  ;;  %vm2828_vm2 = vcmp.eq.s32.totalorder %v6340_v26, %v2722_v48 }
 0xb6d   : > { %v6818_v7 = vsel %vm2828_vm2, -1e+30, %v6706_v46  ;;  %v6824_v5 = vsel %vm2828_vm2, 1.0, %v8287_v57  ;;  %v2780_v46 = vcvt.f32.s32 %v2774_v43  ;;  %v2810_v43 = vcvt.f32.s32 %v6810_v58 }
 0xb6e   : > { %v3088_v16 = vsel %vm429_vm0, %v6818_v7, -inf  ;;  %vm2829_vm3 = vcmp.eq.s32.totalorder %v6340_v26, %v2737_v23  ;;  %8309 = vst [vmem:[#allocation51_spill] sm:$0xff] %v6824_v5 }
 0xb6f   : > { %3089 = vmax.xlane.f32.xlu0 %v3088_v16  ;;  %v2748_v21 = vpop.xlane.xlu0 %2747  ;;  %v6827_v34 = vsel %vm2829_vm3, -1e+30, %v6715_v37  ;;  %v6830_v9 = vsel %vm2829_vm3, 1.0, %v8287_v57  ;;  %v2781_v10 = vshll.u32 %v2780_v46, 16  ;;  %v2811_v16 = vshll.u32 %v2810_v43, 16 }
 0xb70   : > { %8310 = vst [vmem:[#allocation52_spill] sm:$0xff] %v6830_v9  ;;  %v2749_v35 = vcvt.f32.s32 %v2748_v21  ;;  %v3091_v4 = vsel %vm429_vm0, %v6827_v34, -inf  ;;  %v2826_v46 = vshll.u32 %v2825_v38, 16 }
 0xb71   : > { %3092 = vmax.xlane.f32.xlu1 %v3091_v4  ;;  %v2763_v56 = vpop.xlane.xlu1 %2762 }
 0xb72   : > { %v2752_v52 = vadd.s32 %v2751_v32, %v2749_v35  ;;  %v2764_v13 = vcvt.f32.s32 %v2763_v56 }
 0xb73   : > { %v2778_v6 = vpop.xlane.xlu0 %2777 }
 0xb74   : > { %v2767_v37 = vadd.s32 %v2766_v3, %v2764_v13  ;;  %vm2830_vm4 = vcmp.eq.s32.totalorder %v6340_v26, %v2752_v52  ;;  %v2779_v8 = vcvt.f32.s32 %v2778_v6 }
 0xb75   : > { %v6839_v2 = vsel %vm2830_vm4, -1e+30, %v6727_v20  ;;  %v2793_v15 = vpop.xlane.xlu1 %2792  ;;  %v6843_v41 = vsel %vm2830_vm4, 1.0, %v8287_v57 }
 0xb76   : > { %8311 = vst [vmem:[#allocation53_spill] sm:$0xff] %v6843_v41  ;;  %v3094_v48 = vsel %vm429_vm0, %v6839_v2, -inf  ;;  %vm2831_vm5 = vcmp.eq.s32.totalorder %v6340_v26, %v2767_v37  ;;  %v2782_v44 = vadd.s32 %v2781_v10, %v2779_v8  ;;  %v2794_v55 = vcvt.f32.s32 %v2793_v15 }
 0xb77   : > { %3095 = vmax.xlane.f32.xlu0 %v3094_v48  ;;  %v6849_v58 = vsel %vm2831_vm5, -1e+30, %v6737_v45  ;;  %v6852_v20 = vsel %vm2831_vm5, 1.0, %v8287_v57  ;;  %v2808_v23 = vpop.xlane.xlu0 %2807 }
 0xb78   : > { %8312 = vst [vmem:[#allocation54_spill] sm:$0xff] %v6852_v20  ;;  %v3097_v53 = vsel %vm429_vm0, %v6849_v58, -inf  ;;  %v2797_v32 = vadd.s32 %v2796_v31, %v2794_v55  ;;  %v2809_v21 = vcvt.f32.s32 %v2808_v23  ;;  %vm2832_vm6 = vcmp.eq.s32.totalorder %v6340_v26, %v2782_v44 }
 0xb79   : > { %3098 = vmax.xlane.f32.xlu1 %v3097_v53  ;;  %v2823_v35 = vpop.xlane.xlu1 %2822  ;;  %v6860_v45 = vsel %vm2832_vm6, -1e+30, %v6748_v11  ;;  %v6866_v3 = vsel %vm2832_vm6, 1.0, %v8287_v57 }
 0xb7a   : > { %v2812_v4 = vadd.s32 %v2811_v16, %v2809_v21  ;;  %v2824_v51 = vcvt.f32.s32 %v2823_v35  ;;  %v3100_v56 = vsel %vm429_vm0, %v6860_v45, -inf  ;;  %vm2833_vm7 = vcmp.eq.s32.totalorder %v6340_v26, %v2797_v32  ;;  %8313 = vst [vmem:[#allocation55_spill] sm:$0xff] %v6866_v3 }
 0xb7b   : > { %3101 = vmax.xlane.f32.xlu0 %v3100_v56  ;;  %v6869_v52 = vsel %vm2833_vm7, -1e+30, %v6757_v59  ;;  %v6872_v13 = vsel %vm2833_vm7, 1.0, %v8287_v57 }
 0xb7c   : > { %8314 = vst [vmem:[#allocation56_spill] sm:$0xff] %v6872_v13  ;;  %v2827_v10 = vadd.s32 %v2826_v46, %v2824_v51  ;;  %v3103_v37 = vsel %vm429_vm0, %v6869_v52, -inf  ;;  %vm2834_vm8 = vcmp.eq.s32.totalorder %v6340_v26, %v2812_v4 }
 0xb7d   : > { %3104 = vmax.xlane.f32.xlu1 %v3103_v37  ;;  %v6880_v6 = vsel %vm2834_vm8, -1e+30, %v6768_v40  ;;  %v6886_v31 = vsel %vm2834_vm8, 1.0, %v8287_v57 }
 0xb7e   : > { %v3106_v59 = vsel %vm429_vm0, %v6880_v6, -inf  ;;  %vm2835_vm9 = vcmp.eq.s32.totalorder %v6340_v26, %v2827_v10  ;;  %8315 = vst [vmem:[#allocation57_spill] sm:$0xff] %v6886_v31 }
 0xb7f   : > { %3107 = vmax.xlane.f32.xlu0 %v3106_v59  ;;  %v6889_v43 = vsel %vm2835_vm9, -1e+30, %v6777_v18  ;;  %v6892_v8 = vsel %vm2835_vm9, 1.0, %v8287_v57 }
 0xb80   : > { %8316 = vst [vmem:[#allocation58_spill] sm:$0xff] %v6892_v8  ;;  %v3109_v40 = vsel %vm429_vm0, %v6889_v43, -inf }
 0xb81   : > { %3110 = vmax.xlane.f32.xlu1 %v3109_v40 }
 0xbfc   : > { %v3090_v15 = vpop.xlane.xlu0 %3089 }
 0xbfd   : > { %vm3112_vm10 = vcmp.ge.f32.partialorder %v6818_v7, %v3090_v15 }
 0xbfe   : > { %v3120_v48 = vsel %vm3112_vm10, %v6340_v26, 16  ;;  %v3093_v44 = vpop.xlane.xlu1 %3092 }
 0xbff   : > { %v3128_v55 = vsel %vm429_vm0, %v3120_v48, 2147483647  ;;  %vm3113_vm11 = vcmp.ge.f32.partialorder %v6827_v34, %v3093_v44 }
 0xc00   : > { %v3121_v18 = vsel %vm3113_vm11, %v6340_v26, 16  ;;  %v3130_v23 = vshra.s32 %v3128_v55, 16  ;;  %v3129_v31 = vand.u32 65535, %v3128_v55 }
 0xc01   : > { %v3143_v53 = vsel %vm429_vm0, %v3121_v18, 2147483647 }
 0xc02   : > { %v3132_v16 = vcvt.s32.f32 %v3130_v23  ;;  %v3145_v32 = vshra.s32 %v3143_v53, 16  ;;  %v3131_v3 = vcvt.s32.f32 %v3129_v31 }
 0xc04   : > { %3133 = vmin.xlane.f32.xlu0 %v3132_v16  ;;  %v3096_v21 = vpop.xlane.xlu0 %3095  ;;  %v3147_v46 = vcvt.s32.f32 %v3145_v32 }
 0xc05   : > { %vm3114_vm12 = vcmp.ge.f32.partialorder %v6839_v2, %v3096_v21 }
 0xc06   : > { %v3122_v35 = vsel %vm3114_vm12, %v6340_v26, 16  ;;  %3148 = vmin.xlane.f32.xlu1 %v3147_v46  ;;  %v3099_v4 = vpop.xlane.xlu1 %3098 }
 0xc07   : > { %v3158_v51 = vsel %vm429_vm0, %v3122_v35, 2147483647  ;;  %vm3115_vm13 = vcmp.ge.f32.partialorder %v6849_v58, %v3099_v4 }
 0xc08   : > { %v3123_v56 = vsel %vm3115_vm13, %v6340_v26, 16  ;;  %v3160_v10 = vshra.s32 %v3158_v51, 16  ;;  %v3102_v59 = vpop.xlane.xlu0 %3101  ;;  %v3159_v41 = vand.u32 65535, %v3158_v51 }
 0xc09   : > { %v3173_v37 = vsel %vm429_vm0, %v3123_v56, 2147483647  ;;  %vm3116_vm14 = vcmp.ge.f32.partialorder %v6860_v45, %v3102_v59 }
 0xc0a   : > { %v3162_v40 = vcvt.s32.f32 %v3160_v10  ;;  %v3175_v15 = vshra.s32 %v3173_v37, 16  ;;  %v3124_v48 = vsel %vm3116_vm14, %v6340_v26, 16  ;;  %v3105_v44 = vpop.xlane.xlu1 %3104 }
 0xc0b   : > { %v3188_v18 = vsel %vm429_vm0, %v3124_v48, 2147483647  ;;  %vm3117_vm15 = vcmp.ge.f32.partialorder %v6869_v52, %v3105_v44 }
 0xc0c   : > { %3163 = vmin.xlane.f32.xlu0 %v3162_v40  ;;  %v3177_v23 = vcvt.s32.f32 %v3175_v15  ;;  %v3125_v32 = vsel %vm3117_vm15, %v6340_v26, 16  ;;  %v3108_v21 = vpop.xlane.xlu0 %3107  ;;  %v3190_v35 = vshra.s32 %v3188_v18, 16  ;;  %v3189_v5 = vand.u32 65535, %v3188_v18 }
 0xc0d   : > { %v3203_v4 = vsel %vm429_vm0, %v3125_v32, 2147483647  ;;  %vm3118_vm2 = vcmp.ge.f32.partialorder %v6880_v6, %v3108_v21 }
 0xc0e   : > { %3178 = vmin.xlane.f32.xlu1 %v3177_v23  ;;  %v3126_v56 = vsel %vm3118_vm2, %v6340_v26, 16  ;;  %v3111_v10 = vpop.xlane.xlu1 %3110  ;;  %v3192_v59 = vcvt.s32.f32 %v3190_v35  ;;  %v3205_v38 = vshra.s32 %v3203_v4, 16  ;;  %v3144_v35 = vand.u32 65535, %v3143_v53 }
 0xc0f   : > { %v3218_v48 = vsel %vm429_vm0, %v3126_v56, 2147483647  ;;  %vm3119_vm3 = vcmp.ge.f32.partialorder %v6889_v43, %v3111_v10  ;;  %v3204_v31 = vand.u32 65535, %v3203_v4 }
 0xc10   : > { %v3127_v15 = vsel %vm3119_vm3, %v6340_v26, 16  ;;  %3193 = vmin.xlane.f32.xlu0 %v3192_v59  ;;  %v3207_v44 = vcvt.s32.f32 %v3205_v38  ;;  %v3220_v11 = vshra.s32 %v3218_v48, 16  ;;  %v3146_v13 = vcvt.s32.f32 %v3144_v35 }
 0xc11   : > { %v3233_v50 = vsel %vm429_vm0, %v3127_v15, 2147483647  ;;  %v3174_v15 = vand.u32 65535, %v3173_v37  ;;  %v3219_v35 = vand.u32 65535, %v3218_v48  ;;  %v3206_v51 = vcvt.s32.f32 %v3204_v31 }
 0xc12   : > { %3208 = vmin.xlane.f32.xlu1 %v3207_v44  ;;  %v3222_v32 = vcvt.s32.f32 %v3220_v11  ;;  %v3235_v21 = vshra.s32 %v3233_v50, 16  ;;  %v3161_v11 = vcvt.s32.f32 %v3159_v41  ;;  %v3234_v37 = vand.u32 65535, %v3233_v50 }
 0xc13   : > { %v3176_v55 = vcvt.s32.f32 %v3174_v15  ;;  %v3221_v18 = vcvt.s32.f32 %v3219_v35 }
 0xc14   : > { %3223 = vmin.xlane.f32.xlu0 %v3222_v32  ;;  %v3237_v61 = vcvt.s32.f32 %v3235_v21  ;;  %v3236_v4 = vcvt.s32.f32 %v3234_v37 }
 0xc16   : > { %3238 = vmin.xlane.f32.xlu1 %v3237_v61 }
 0xc91   : > { %v3134_v8 = vpop.xlane.xlu0 %3133 }
 0xc92   : > { %vm3135_vm4 = vcmp.eq.f32.partialorder %v3132_v16, %v3134_v8 }
 0xc93   : > { %v3149_v56 = vpop.xlane.xlu1 %3148  ;;  %v3136_v10 = vsel %vm3135_vm4, %v3131_v3, inf  ;;  %v3191_v3 = vcvt.s32.f32 %v3189_v5 }
 0xc94   : > { %3137 = vmin.xlane.f32.xlu0 %v3136_v10  ;;  %vm3150_vm5 = vcmp.eq.f32.partialorder %v3147_v46, %v3149_v56  ;;  %v3155_v50 = vcvt.f32.s32 %v3149_v56 }
 0xc95   : > { %v3151_v38 = vsel %vm3150_vm5, %v3146_v13, inf }
 0xc96   : > { %3152 = vmin.xlane.f32.xlu1 %v3151_v38  ;;  %v3156_v15 = vshll.u32 %v3155_v50, 16 }
 0xc99   : > { %v3164_v20 = vpop.xlane.xlu0 %3163 }
 0xc9a   : > { %vm3165_vm6 = vcmp.eq.f32.partialorder %v3162_v40, %v3164_v20  ;;  %v3170_v31 = vcvt.f32.s32 %v3164_v20 }
 0xc9b   : > { %v3179_v21 = vpop.xlane.xlu1 %3178  ;;  %v3166_v9 = vsel %vm3165_vm6, %v3161_v11, inf }
 0xc9c   : > { %3167 = vmin.xlane.f32.xlu0 %v3166_v9  ;;  %vm3180_vm7 = vcmp.eq.f32.partialorder %v3177_v23, %v3179_v21 }
 0xc9d   : > { %v3181_v53 = vsel %vm3180_vm7, %v3176_v55, inf  ;;  %v3194_v16 = vpop.xlane.xlu0 %3193 }
 0xc9e   : > { %3182 = vmin.xlane.f32.xlu1 %v3181_v53  ;;  %vm3195_vm8 = vcmp.eq.f32.partialorder %v3192_v59, %v3194_v16  ;;  %v3140_v59 = vcvt.f32.s32 %v3134_v8  ;;  %v3171_v8 = vshll.u32 %v3170_v31, 16 }
 0xc9f   : > { %v3209_v13 = vpop.xlane.xlu1 %3208  ;;  %v3196_v46 = vsel %vm3195_vm8, %v3191_v3, inf  ;;  %v3185_v3 = vcvt.f32.s32 %v3179_v21 }
 0xca0   : > { %3197 = vmin.xlane.f32.xlu0 %v3196_v46  ;;  %vm3210_vm9 = vcmp.eq.f32.partialorder %v3207_v44, %v3209_v13  ;;  %v3141_v44 = vshll.u32 %v3140_v59, 16 }
 0xca1   : > { %v6922_v41 = vpop.xlane.xlu0 %3223  ;;  %v3211_v40 = vsel %vm3210_vm9, %v3206_v51, inf }
 0xca2   : > { %3212 = vmin.xlane.f32.xlu1 %v3211_v40  ;;  %vm3225_vm10 = vcmp.eq.f32.partialorder %v3222_v32, %v6922_v41  ;;  %v3215_v40 = vcvt.f32.s32 %v3209_v13 }
 0xca3   : > { %v6925_v9 = vpop.xlane.xlu1 %3238  ;;  %v3226_v23 = vsel %vm3225_vm10, %v3221_v18, inf }
 0xca4   : > { %3227 = vmin.xlane.f32.xlu0 %v3226_v23  ;;  %vm3240_vm11 = vcmp.eq.f32.partialorder %v3237_v61, %v6925_v9  ;;  %v3186_v23 = vshll.u32 %v3185_v3, 16 }
 0xca5   : > { %v3241_v5 = vsel %vm3240_vm11, %v3236_v4, inf }
 0xca6   : > { %3242 = vmin.xlane.f32.xlu1 %v3241_v5 }
 0xd21   : > { %v3138_v48 = vpop.xlane.xlu0 %3137 }
 0xd22   : > { %v3139_v10 = vcvt.f32.s32 %v3138_v48  ;;  %v3216_v48 = vshll.u32 %v3215_v40, 16 }
 0xd23   : > { %v3153_v38 = vpop.xlane.xlu1 %3152 }
 0xd24   : > { %v3142_v11 = vadd.s32 %v3141_v44, %v3139_v10  ;;  %v3154_v55 = vcvt.f32.s32 %v3153_v38  ;;  %v3245_v38 = vcvt.f32.s32 %v6925_v9 }
 0xd26   : > { %v3157_v32 = vadd.s32 %v3156_v15, %v3154_v55  ;;  %vm3248_vm12 = vcmp.eq.s32.totalorder %v6340_v26, %v3142_v11 }
 0xd27   : > { %v6930_v53 = vsel %vm3248_vm12, -1e+30, %v6818_v7  ;;  %v6936_v56 = vsel %vm3248_vm12, 1.0, %v8287_v57  ;;  %v3200_v7 = vcvt.f32.s32 %v3194_v16  ;;  %v3230_v16 = vcvt.f32.s32 %v6922_v41 }
 0xd28   : > { %v3508_v61 = vsel %vm429_vm0, %v6930_v53, -inf  ;;  %vm3249_vm13 = vcmp.eq.s32.totalorder %v6340_v26, %v3157_v32  ;;  %8317 = vst [vmem:[#allocation59_spill] sm:$0xff] %v6936_v56 }
 0xd29   : > { %3509 = vmax.xlane.f32.xlu0 %v3508_v61  ;;  %v3168_v35 = vpop.xlane.xlu0 %3167  ;;  %v6939_v20 = vsel %vm3249_vm13, -1e+30, %v6827_v34  ;;  %v6942_v46 = vsel %vm3249_vm13, 1.0, %v8287_v57  ;;  %v3201_v59 = vshll.u32 %v3200_v7, 16  ;;  %v3231_v61 = vshll.u32 %v3230_v16, 16 }
 0xd2a   : > { %8318 = vst [vmem:[#allocation60_spill] sm:$0xff] %v6942_v46  ;;  %v3169_v51 = vcvt.f32.s32 %v3168_v35  ;;  %v3511_v37 = vsel %vm429_vm0, %v6939_v20, -inf  ;;  %v3246_v7 = vshll.u32 %v3245_v38, 16 }
 0xd2b   : > { %3512 = vmax.xlane.f32.xlu1 %v3511_v37  ;;  %v3183_v18 = vpop.xlane.xlu1 %3182 }
 0xd2c   : > { %v3172_v4 = vadd.s32 %v3171_v8, %v3169_v51  ;;  %v3184_v5 = vcvt.f32.s32 %v3183_v18 }
 0xd2d   : > { %v3198_v50 = vpop.xlane.xlu0 %3197 }
 0xd2e   : > { %v3187_v34 = vadd.s32 %v3186_v23, %v3184_v5  ;;  %vm3250_vm14 = vcmp.eq.s32.totalorder %v6340_v26, %v3172_v4  ;;  %v3199_v44 = vcvt.f32.s32 %v3198_v50 }
 0xd2f   : > { %v6951_v10 = vsel %vm3250_vm14, -1e+30, %v6839_v2  ;;  %v3213_v13 = vpop.xlane.xlu1 %3212  ;;  %v6955_v15 = vsel %vm3250_vm14, 1.0, %v8287_v57 }
 0xd30   : > { %8319 = vst [vmem:[#allocation61_spill] sm:$0xff] %v6955_v15  ;;  %v3514_v11 = vsel %vm429_vm0, %v6951_v10, -inf  ;;  %vm3251_vm15 = vcmp.eq.s32.totalorder %v6340_v26, %v3187_v34  ;;  %v3202_v55 = vadd.s32 %v3201_v59, %v3199_v44  ;;  %v3214_v31 = vcvt.f32.s32 %v3213_v13 }
 0xd31   : > { %3515 = vmax.xlane.f32.xlu0 %v3514_v11  ;;  %v6961_v41 = vsel %vm3251_vm15, -1e+30, %v6849_v58  ;;  %v6964_v2 = vsel %vm3251_vm15, 1.0, %v8287_v57  ;;  %v3228_v32 = vpop.xlane.xlu0 %3227 }
 0xd32   : > { %8320 = vst [vmem:[#allocation62_spill] sm:$0xff] %v6964_v2  ;;  %v3517_v3 = vsel %vm429_vm0, %v6961_v41, -inf  ;;  %v3217_v8 = vadd.s32 %v3216_v48, %v3214_v31  ;;  %v3229_v35 = vcvt.f32.s32 %v3228_v32  ;;  %vm3252_vm2 = vcmp.eq.s32.totalorder %v6340_v26, %v3202_v55 }
 0xd33   : > { %3518 = vmax.xlane.f32.xlu1 %v3517_v3  ;;  %v3243_v51 = vpop.xlane.xlu1 %3242  ;;  %v6972_v58 = vsel %vm3252_vm2, -1e+30, %v6860_v45  ;;  %v6978_v23 = vsel %vm3252_vm2, 1.0, %v8287_v57 }
 0xd34   : > { %v3232_v37 = vadd.s32 %v3231_v61, %v3229_v35  ;;  %v3244_v40 = vcvt.f32.s32 %v3243_v51  ;;  %v3520_v18 = vsel %vm429_vm0, %v6972_v58, -inf  ;;  %vm3253_vm3 = vcmp.eq.s32.totalorder %v6340_v26, %v3217_v8  ;;  %8321 = vst [vmem:[#allocation63_spill] sm:$0xff] %v6978_v23 }
 0xd35   : > { %3521 = vmax.xlane.f32.xlu0 %v3520_v18  ;;  %v6981_v4 = vsel %vm3253_vm3, -1e+30, %v6869_v52  ;;  %v6984_v5 = vsel %vm3253_vm3, 1.0, %v8287_v57 }
 0xd36   : > { %8322 = vst [vmem:[#allocation64_spill] sm:$0xff] %v6984_v5  ;;  %v3247_v59 = vadd.s32 %v3246_v7, %v3244_v40  ;;  %v3523_v34 = vsel %vm429_vm0, %v6981_v4, -inf  ;;  %vm3254_vm4 = vcmp.eq.s32.totalorder %v6340_v26, %v3232_v37 }
 0xd37   : > { %3524 = vmax.xlane.f32.xlu1 %v3523_v34  ;;  %v6992_v50 = vsel %vm3254_vm4, -1e+30, %v6880_v6  ;;  %v6998_v48 = vsel %vm3254_vm4, 1.0, %v8287_v57 }
 0xd38   : > { %v3526_v52 = vsel %vm429_vm0, %v6992_v50, -inf  ;;  %vm3255_vm5 = vcmp.eq.s32.totalorder %v6340_v26, %v3247_v59  ;;  %8323 = vst [vmem:[#allocation65_spill] sm:$0xff] %v6998_v48 }
 0xd39   : > { %3527 = vmax.xlane.f32.xlu0 %v3526_v52  ;;  %v7001_v16 = vsel %vm3255_vm5, -1e+30, %v6889_v43  ;;  %v7004_v44 = vsel %vm3255_vm5, 1.0, %v8287_v57 }
 0xd3a   : > { %8324 = vst [vmem:[#allocation66_spill] sm:$0xff] %v7004_v44  ;;  %v3529_v6 = vsel %vm429_vm0, %v7001_v16, -inf }
 0xd3b   : > { %3530 = vmax.xlane.f32.xlu1 %v3529_v6 }
 0xdb6   : > { %v3510_v13 = vpop.xlane.xlu0 %3509 }
 0xdb7   : > { %vm3532_vm6 = vcmp.ge.f32.partialorder %v6930_v53, %v3510_v13 }
 0xdb8   : > { %v3540_v11 = vsel %vm3532_vm6, %v6340_v26, 16  ;;  %v3513_v55 = vpop.xlane.xlu1 %3512 }
 0xdb9   : > { %v3548_v31 = vsel %vm429_vm0, %v3540_v11, 2147483647  ;;  %vm3533_vm7 = vcmp.ge.f32.partialorder %v6939_v20, %v3513_v55 }
 0xdba   : > { %v3541_v43 = vsel %vm3533_vm7, %v6340_v26, 16  ;;  %v3550_v32 = vshra.s32 %v3548_v31, 16  ;;  %v3549_v48 = vand.u32 65535, %v3548_v31 }
 0xdbb   : > { %v3563_v3 = vsel %vm429_vm0, %v3541_v43, 2147483647 }
 0xdbc   : > { %v3552_v61 = vcvt.s32.f32 %v3550_v32  ;;  %v3565_v8 = vshra.s32 %v3563_v3, 16  ;;  %v3551_v23 = vcvt.s32.f32 %v3549_v48 }
 0xdbe   : > { %3553 = vmin.xlane.f32.xlu0 %v3552_v61  ;;  %v3516_v35 = vpop.xlane.xlu0 %3515  ;;  %v3567_v7 = vcvt.s32.f32 %v3565_v8 }
 0xdbf   : > { %vm3534_vm8 = vcmp.ge.f32.partialorder %v6951_v10, %v3516_v35 }
 0xdc0   : > { %v3542_v51 = vsel %vm3534_vm8, %v6340_v26, 16  ;;  %3568 = vmin.xlane.f32.xlu1 %v3567_v7  ;;  %v3519_v37 = vpop.xlane.xlu1 %3518 }
 0xdc1   : > { %v3578_v40 = vsel %vm429_vm0, %v3542_v51, 2147483647  ;;  %vm3535_vm9 = vcmp.ge.f32.partialorder %v6961_v41, %v3519_v37 }
 0xdc2   : > { %v3543_v18 = vsel %vm3535_vm9, %v6340_v26, 16  ;;  %v3580_v59 = vshra.s32 %v3578_v40, 16  ;;  %v3522_v52 = vpop.xlane.xlu0 %3521  ;;  %v3579_v15 = vand.u32 65535, %v3578_v40 }
 0xdc3   : > { %v3593_v34 = vsel %vm429_vm0, %v3543_v18, 2147483647  ;;  %vm3536_vm10 = vcmp.ge.f32.partialorder %v6972_v58, %v3522_v52 }
 0xdc4   : > { %v3582_v6 = vcvt.s32.f32 %v3580_v59  ;;  %v3595_v13 = vshra.s32 %v3593_v34, 16  ;;  %v3544_v11 = vsel %vm3536_vm10, %v6340_v26, 16  ;;  %v3525_v55 = vpop.xlane.xlu1 %3524 }
 0xdc5   : > { %v3608_v43 = vsel %vm429_vm0, %v3544_v11, 2147483647  ;;  %vm3537_vm11 = vcmp.ge.f32.partialorder %v6981_v4, %v3525_v55 }
 0xdc6   : > { %3583 = vmin.xlane.f32.xlu0 %v3582_v6  ;;  %v3597_v32 = vcvt.s32.f32 %v3595_v13  ;;  %v3545_v8 = vsel %vm3537_vm11, %v6340_v26, 16  ;;  %v3528_v35 = vpop.xlane.xlu0 %3527  ;;  %v3610_v51 = vshra.s32 %v3608_v43, 16  ;;  %v3609_v56 = vand.u32 65535, %v3608_v43 }
 0xdc7   : > { %v3623_v37 = vsel %vm429_vm0, %v3545_v8, 2147483647  ;;  %vm3538_vm12 = vcmp.ge.f32.partialorder %v6992_v50, %v3528_v35 }
 0xdc8   : > { %3598 = vmin.xlane.f32.xlu1 %v3597_v32  ;;  %v3546_v18 = vsel %vm3538_vm12, %v6340_v26, 16  ;;  %v3531_v59 = vpop.xlane.xlu1 %3530  ;;  %v3612_v52 = vcvt.s32.f32 %v3610_v51  ;;  %v3625_v38 = vshra.s32 %v3623_v37, 16  ;;  %v3564_v51 = vand.u32 65535, %v3563_v3 }
 0xdc9   : > { %v3638_v11 = vsel %vm429_vm0, %v3546_v18, 2147483647  ;;  %vm3539_vm13 = vcmp.ge.f32.partialorder %v7001_v16, %v3531_v59  ;;  %v3624_v48 = vand.u32 65535, %v3623_v37 }
 0xdca   : > { %v3547_v13 = vsel %vm3539_vm13, %v6340_v26, 16  ;;  %3613 = vmin.xlane.f32.xlu0 %v3612_v52  ;;  %v3627_v55 = vcvt.s32.f32 %v3625_v38  ;;  %v3640_v45 = vshra.s32 %v3638_v11, 16  ;;  %v3566_v5 = vcvt.s32.f32 %v3564_v51 }
 0xdcb   : > { %v3653_v9 = vsel %vm429_vm0, %v3547_v13, 2147483647  ;;  %v3594_v13 = vand.u32 65535, %v3593_v34  ;;  %v3639_v51 = vand.u32 65535, %v3638_v11  ;;  %v3626_v40 = vcvt.s32.f32 %v3624_v48 }
 0xdcc   : > { %3628 = vmin.xlane.f32.xlu1 %v3627_v55  ;;  %v3642_v8 = vcvt.s32.f32 %v3640_v45  ;;  %v3655_v35 = vshra.s32 %v3653_v9, 16  ;;  %v3581_v45 = vcvt.s32.f32 %v3579_v15  ;;  %v3654_v34 = vand.u32 65535, %v3653_v9 }
 0xdcd   : > { %v3596_v31 = vcvt.s32.f32 %v3594_v13  ;;  %v3641_v43 = vcvt.s32.f32 %v3639_v51 }
 0xdce   : > { %3643 = vmin.xlane.f32.xlu0 %v3642_v8  ;;  %v3657_v21 = vcvt.s32.f32 %v3655_v35  ;;  %v3656_v37 = vcvt.s32.f32 %v3654_v34 }
 0xdd0   : > { %3658 = vmin.xlane.f32.xlu1 %v3657_v21 }
 0xe4b   : > { %v3554_v44 = vpop.xlane.xlu0 %3553 }
 0xe4c   : > { %vm3555_vm14 = vcmp.eq.f32.partialorder %v3552_v61, %v3554_v44 }
 0xe4d   : > { %v3569_v18 = vpop.xlane.xlu1 %3568  ;;  %v3556_v59 = vsel %vm3555_vm14, %v3551_v23, inf  ;;  %v3611_v23 = vcvt.s32.f32 %v3609_v56 }
 0xe4e   : > { %3557 = vmin.xlane.f32.xlu0 %v3556_v59  ;;  %vm3570_vm15 = vcmp.eq.f32.partialorder %v3567_v7, %v3569_v18  ;;  %v3575_v9 = vcvt.f32.s32 %v3569_v18 }
 0xe4f   : > { %v3571_v38 = vsel %vm3570_vm15, %v3566_v5, inf }
 0xe50   : > { %3572 = vmin.xlane.f32.xlu1 %v3571_v38  ;;  %v3576_v13 = vshll.u32 %v3575_v9, 16 }
 0xe53   : > { %v3584_v2 = vpop.xlane.xlu0 %3583 }
 0xe54   : > { %vm3585_vm2 = vcmp.eq.f32.partialorder %v3582_v6, %v3584_v2  ;;  %v3590_v48 = vcvt.f32.s32 %v3584_v2 }
 0xe55   : > { %v3599_v35 = vpop.xlane.xlu1 %3598  ;;  %v3586_v46 = vsel %vm3585_vm2, %v3581_v45, inf }
 0xe56   : > { %3587 = vmin.xlane.f32.xlu0 %v3586_v46  ;;  %vm3600_vm3 = vcmp.eq.f32.partialorder %v3597_v32, %v3599_v35 }
 0xe57   : > { %v3601_v3 = vsel %vm3600_vm3, %v3596_v31, inf  ;;  %v3614_v61 = vpop.xlane.xlu0 %3613 }
 0xe58   : > { %3602 = vmin.xlane.f32.xlu1 %v3601_v3  ;;  %vm3615_vm4 = vcmp.eq.f32.partialorder %v3612_v52, %v3614_v61  ;;  %v3560_v52 = vcvt.f32.s32 %v3554_v44  ;;  %v3591_v44 = vshll.u32 %v3590_v48, 16 }
 0xe59   : > { %v3629_v5 = vpop.xlane.xlu1 %3628  ;;  %v3616_v7 = vsel %vm3615_vm4, %v3611_v23, inf  ;;  %v3605_v23 = vcvt.f32.s32 %v3599_v35 }
 0xe5a   : > { %3617 = vmin.xlane.f32.xlu0 %v3616_v7  ;;  %vm3630_vm5 = vcmp.eq.f32.partialorder %v3627_v55, %v3629_v5  ;;  %v3561_v55 = vshll.u32 %v3560_v52, 16 }
 0xe5b   : > { %v7034_v15 = vpop.xlane.xlu0 %3643  ;;  %v3631_v6 = vsel %vm3630_vm5, %v3626_v40, inf }
 0xe5c   : > { %3632 = vmin.xlane.f32.xlu1 %v3631_v6  ;;  %vm3645_vm6 = vcmp.eq.f32.partialorder %v3642_v8, %v7034_v15  ;;  %v3635_v6 = vcvt.f32.s32 %v3629_v5 }
 0xe5d   : > { %v7037_v46 = vpop.xlane.xlu1 %3658  ;;  %v3646_v32 = vsel %vm3645_vm6, %v3641_v43, inf }
 0xe5e   : > { %3647 = vmin.xlane.f32.xlu0 %v3646_v32  ;;  %vm3660_vm7 = vcmp.eq.f32.partialorder %v3657_v21, %v7037_v46  ;;  %v3606_v32 = vshll.u32 %v3605_v23, 16 }
 0xe5f   : > { %v3661_v56 = vsel %vm3660_vm7, %v3656_v37, inf }
 0xe60   : > { %3662 = vmin.xlane.f32.xlu1 %v3661_v56 }
 0xedb   : > { %v3558_v11 = vpop.xlane.xlu0 %3557 }
 0xedc   : > { %v3559_v59 = vcvt.f32.s32 %v3558_v11  ;;  %v3636_v11 = vshll.u32 %v3635_v6, 16 }
 0xedd   : > { %v3573_v38 = vpop.xlane.xlu1 %3572 }
 0xede   : > { %v3562_v45 = vadd.s32 %v3561_v55, %v3559_v59  ;;  %v3574_v31 = vcvt.f32.s32 %v3573_v38  ;;  %v3665_v38 = vcvt.f32.s32 %v7037_v46 }
 0xee0   : > { %v3577_v8 = vadd.s32 %v3576_v13, %v3574_v31  ;;  %vm3668_vm8 = vcmp.eq.s32.totalorder %v6340_v26, %v3562_v45 }
 0xee1   : > { %v7042_v3 = vsel %vm3668_vm8, -1e+30, %v6930_v53  ;;  %v7048_v18 = vsel %vm3668_vm8, 1.0, %v8287_v57  ;;  %v3620_v53 = vcvt.f32.s32 %v3614_v61  ;;  %v3650_v61 = vcvt.f32.s32 %v7034_v15 }
 0xee2   : > { %v3928_v21 = vsel %vm429_vm0, %v7042_v3, -inf  ;;  %vm3669_vm9 = vcmp.eq.s32.totalorder %v6340_v26, %v3577_v8  ;;  %8325 = vst [vmem:[#allocation67_spill] sm:$0xff] %v7048_v18 }
 0xee3   : > { %3929 = vmax.xlane.f32.xlu0 %v3928_v21  ;;  %v3588_v51 = vpop.xlane.xlu0 %3587  ;;  %v7051_v2 = vsel %vm3669_vm9, -1e+30, %v6939_v20  ;;  %v7054_v7 = vsel %vm3669_vm9, 1.0, %v8287_v57  ;;  %v3621_v52 = vshll.u32 %v3620_v53, 16  ;;  %v3651_v21 = vshll.u32 %v3650_v61, 16 }
 0xee4   : > { %8326 = vst [vmem:[#allocation68_spill] sm:$0xff] %v7054_v7  ;;  %v3589_v40 = vcvt.f32.s32 %v3588_v51  ;;  %v3931_v34 = vsel %vm429_vm0, %v7051_v2, -inf  ;;  %v3666_v53 = vshll.u32 %v3665_v38, 16 }
 0xee5   : > { %3932 = vmax.xlane.f32.xlu1 %v3931_v34  ;;  %v3603_v43 = vpop.xlane.xlu1 %3602 }
 0xee6   : > { %v3592_v37 = vadd.s32 %v3591_v44, %v3589_v40  ;;  %v3604_v56 = vcvt.f32.s32 %v3603_v43 }
 0xee7   : > { %v3618_v9 = vpop.xlane.xlu0 %3617 }
 0xee8   : > { %v3607_v20 = vadd.s32 %v3606_v32, %v3604_v56  ;;  %vm3670_vm10 = vcmp.eq.s32.totalorder %v6340_v26, %v3592_v37  ;;  %v3619_v55 = vcvt.f32.s32 %v3618_v9 }
 0xee9   : > { %v7063_v59 = vsel %vm3670_vm10, -1e+30, %v6951_v10  ;;  %v3633_v5 = vpop.xlane.xlu1 %3632  ;;  %v7067_v13 = vsel %vm3670_vm10, 1.0, %v8287_v57 }
 0xeea   : > { %8327 = vst [vmem:[#allocation69_spill] sm:$0xff] %v7067_v13  ;;  %v3934_v45 = vsel %vm429_vm0, %v7063_v59, -inf  ;;  %vm3671_vm11 = vcmp.eq.s32.totalorder %v6340_v26, %v3607_v20  ;;  %v3622_v31 = vadd.s32 %v3621_v52, %v3619_v55  ;;  %v3634_v48 = vcvt.f32.s32 %v3633_v5 }
 0xeeb   : > { %3935 = vmax.xlane.f32.xlu0 %v3934_v45  ;;  %v7073_v15 = vsel %vm3671_vm11, -1e+30, %v6961_v41  ;;  %v7076_v10 = vsel %vm3671_vm11, 1.0, %v8287_v57  ;;  %v3648_v8 = vpop.xlane.xlu0 %3647 }
 0xeec   : > { %8328 = vst [vmem:[#allocation70_spill] sm:$0xff] %v7076_v10  ;;  %v3937_v23 = vsel %vm429_vm0, %v7073_v15, -inf  ;;  %v3637_v44 = vadd.s32 %v3636_v11, %v3634_v48  ;;  %v3649_v51 = vcvt.f32.s32 %v3648_v8  ;;  %vm3672_vm12 = vcmp.eq.s32.totalorder %v6340_v26, %v3622_v31 }
 0xeed   : > { %3938 = vmax.xlane.f32.xlu1 %v3937_v23  ;;  %v3663_v40 = vpop.xlane.xlu1 %3662  ;;  %v7084_v41 = vsel %vm3672_vm12, -1e+30, %v6972_v58  ;;  %v7090_v32 = vsel %vm3672_vm12, 1.0, %v8287_v57 }
 0xeee   : > { %v3652_v34 = vadd.s32 %v3651_v21, %v3649_v51  ;;  %v3664_v6 = vcvt.f32.s32 %v3663_v40  ;;  %v3940_v43 = vsel %vm429_vm0, %v7084_v41, -inf  ;;  %vm3673_vm13 = vcmp.eq.s32.totalorder %v6340_v26, %v3637_v44  ;;  %8329 = vst [vmem:[#allocation71_spill] sm:$0xff] %v7090_v32 }
 0xeef   : > { %3941 = vmax.xlane.f32.xlu0 %v3940_v43  ;;  %v7093_v37 = vsel %vm3673_vm13, -1e+30, %v6981_v4  ;;  %v7096_v56 = vsel %vm3673_vm13, 1.0, %v8287_v57 }
 0xef0   : > { %8330 = vst [vmem:[#allocation72_spill] sm:$0xff] %v7096_v56  ;;  %v3667_v52 = vadd.s32 %v3666_v53, %v3664_v6  ;;  %v3943_v20 = vsel %vm429_vm0, %v7093_v37, -inf  ;;  %vm3674_vm14 = vcmp.eq.s32.totalorder %v6340_v26, %v3652_v34 }
 0xef1   : > { %3944 = vmax.xlane.f32.xlu1 %v3943_v20  ;;  %v7104_v9 = vsel %vm3674_vm14, -1e+30, %v6992_v50  ;;  %v7110_v11 = vsel %vm3674_vm14, 1.0, %v8287_v57 }
 0xef2   : > { %v3946_v4 = vsel %vm429_vm0, %v7104_v9, -inf  ;;  %vm3675_vm15 = vcmp.eq.s32.totalorder %v6340_v26, %v3667_v52  ;;  %8331 = vst [vmem:[#allocation73_spill] sm:$0xff] %v7110_v11 }
 0xef3   : > { %3947 = vmax.xlane.f32.xlu0 %v3946_v4  ;;  %v7113_v61 = vsel %vm3675_vm15, -1e+30, %v7001_v16  ;;  %v7116_v55 = vsel %vm3675_vm15, 1.0, %v8287_v57 }
 0xef4   : > { %8332 = vst [vmem:[#allocation74_spill] sm:$0xff] %v7116_v55  ;;  %v3949_v50 = vsel %vm429_vm0, %v7113_v61, -inf }
 0xef5   : > { %3950 = vmax.xlane.f32.xlu1 %v3949_v50 }
 0xf70   : > { %v3930_v5 = vpop.xlane.xlu0 %3929 }
 0xf71   : > { %vm3952_vm2 = vcmp.ge.f32.partialorder %v7042_v3, %v3930_v5 }
 0xf72   : > { %v3960_v45 = vsel %vm3952_vm2, %v6340_v26, 16  ;;  %v3933_v31 = vpop.xlane.xlu1 %3932 }
 0xf73   : > { %v3968_v48 = vsel %vm429_vm0, %v3960_v45, 2147483647  ;;  %vm3953_vm3 = vcmp.ge.f32.partialorder %v7051_v2, %v3933_v31 }
 0xf74   : > { %v3961_v16 = vsel %vm3953_vm3, %v6340_v26, 16  ;;  %v3970_v8 = vshra.s32 %v3968_v48, 16  ;;  %v3969_v11 = vand.u32 65535, %v3968_v48 }
 0xf75   : > { %v3983_v23 = vsel %vm429_vm0, %v3961_v16, 2147483647 }
 0xf76   : > { %v3972_v21 = vcvt.s32.f32 %v3970_v8  ;;  %v3985_v44 = vshra.s32 %v3983_v23, 16  ;;  %v3971_v32 = vcvt.s32.f32 %v3969_v11 }
 0xf78   : > { %3973 = vmin.xlane.f32.xlu0 %v3972_v21  ;;  %v3936_v51 = vpop.xlane.xlu0 %3935  ;;  %v3987_v53 = vcvt.s32.f32 %v3985_v44 }
 0xf79   : > { %vm3954_vm4 = vcmp.ge.f32.partialorder %v7063_v59, %v3936_v51 }
 0xf7a   : > { %v3962_v40 = vsel %vm3954_vm4, %v6340_v26, 16  ;;  %3988 = vmin.xlane.f32.xlu1 %v3987_v53  ;;  %v3939_v34 = vpop.xlane.xlu1 %3938 }
 0xf7b   : > { %v3998_v6 = vsel %vm429_vm0, %v3962_v40, 2147483647  ;;  %vm3955_vm5 = vcmp.ge.f32.partialorder %v7073_v15, %v3939_v34 }
 0xf7c   : > { %v3963_v43 = vsel %vm3955_vm5, %v6340_v26, 16  ;;  %v4000_v52 = vshra.s32 %v3998_v6, 16  ;;  %v3942_v4 = vpop.xlane.xlu0 %3941  ;;  %v3999_v13 = vand.u32 65535, %v3998_v6 }
 0xf7d   : > { %v4013_v20 = vsel %vm429_vm0, %v3963_v43, 2147483647  ;;  %vm3956_vm6 = vcmp.ge.f32.partialorder %v7084_v41, %v3942_v4 }
 0xf7e   : > { %v4002_v50 = vcvt.s32.f32 %v4000_v52  ;;  %v4015_v5 = vshra.s32 %v4013_v20, 16  ;;  %v3964_v45 = vsel %vm3956_vm6, %v6340_v26, 16  ;;  %v3945_v31 = vpop.xlane.xlu1 %3944 }
 0xf7f   : > { %v4028_v16 = vsel %vm429_vm0, %v3964_v45, 2147483647  ;;  %vm3957_vm7 = vcmp.ge.f32.partialorder %v7093_v37, %v3945_v31 }
 0xf80   : > { %4003 = vmin.xlane.f32.xlu0 %v4002_v50  ;;  %v4017_v8 = vcvt.s32.f32 %v4015_v5  ;;  %v3965_v44 = vsel %vm3957_vm7, %v6340_v26, 16  ;;  %v3948_v51 = vpop.xlane.xlu0 %3947  ;;  %v4030_v40 = vshra.s32 %v4028_v16, 16  ;;  %v4029_v18 = vand.u32 65535, %v4028_v16 }
 0xf81   : > { %v4043_v34 = vsel %vm429_vm0, %v3965_v44, 2147483647  ;;  %vm3958_vm8 = vcmp.ge.f32.partialorder %v7104_v9, %v3948_v51 }
 0xf82   : > { %4018 = vmin.xlane.f32.xlu1 %v4017_v8  ;;  %v3966_v43 = vsel %vm3958_vm8, %v6340_v26, 16  ;;  %v3951_v52 = vpop.xlane.xlu1 %3950  ;;  %v4032_v4 = vcvt.s32.f32 %v4030_v40  ;;  %v4045_v38 = vshra.s32 %v4043_v34, 16  ;;  %v3984_v40 = vand.u32 65535, %v3983_v23 }
 0xf83   : > { %v4058_v45 = vsel %vm429_vm0, %v3966_v43, 2147483647  ;;  %vm3959_vm9 = vcmp.ge.f32.partialorder %v7113_v61, %v3951_v52  ;;  %v4044_v11 = vand.u32 65535, %v4043_v34 }
 0xf84   : > { %v3967_v5 = vsel %vm3959_vm9, %v6340_v26, 16  ;;  %4033 = vmin.xlane.f32.xlu0 %v4032_v4  ;;  %v4047_v31 = vcvt.s32.f32 %v4045_v38  ;;  %v4060_v58 = vshra.s32 %v4058_v45, 16  ;;  %v3986_v56 = vcvt.s32.f32 %v3984_v40 }
 0xf85   : > { %v4073_v46 = vsel %vm429_vm0, %v3967_v5, 2147483647  ;;  %v4014_v5 = vand.u32 65535, %v4013_v20  ;;  %v4059_v40 = vand.u32 65535, %v4058_v45  ;;  %v4046_v6 = vcvt.s32.f32 %v4044_v11 }
 0xf86   : > { %4048 = vmin.xlane.f32.xlu1 %v4047_v31  ;;  %v4062_v44 = vcvt.s32.f32 %v4060_v58  ;;  %v4075_v51 = vshra.s32 %v4073_v46, 16  ;;  %v4001_v58 = vcvt.s32.f32 %v3999_v13  ;;  %v4074_v20 = vand.u32 65535, %v4073_v46 }
 0xf87   : > { %v4016_v48 = vcvt.s32.f32 %v4014_v5  ;;  %v4061_v16 = vcvt.s32.f32 %v4059_v40 }
 0xf88   : > { %4063 = vmin.xlane.f32.xlu0 %v4062_v44  ;;  %v4077_v35 = vcvt.s32.f32 %v4075_v51  ;;  %v4076_v34 = vcvt.s32.f32 %v4074_v20 }
 0xf8a   : > { %4078 = vmin.xlane.f32.xlu1 %v4077_v35 }
0x1005   : > { %v3974_v55 = vpop.xlane.xlu0 %3973 }
0x1006   : > { %vm3975_vm10 = vcmp.eq.f32.partialorder %v3972_v21, %v3974_v55 }
0x1007   : > { %v3989_v43 = vpop.xlane.xlu1 %3988  ;;  %v3976_v52 = vsel %vm3975_vm10, %v3971_v32, inf  ;;  %v4031_v32 = vcvt.s32.f32 %v4029_v18 }
0x1008   : > { %3977 = vmin.xlane.f32.xlu0 %v3976_v52  ;;  %vm3990_vm11 = vcmp.eq.f32.partialorder %v3987_v53, %v3989_v43  ;;  %v3995_v46 = vcvt.f32.s32 %v3989_v43 }
0x1009   : > { %v3991_v38 = vsel %vm3990_vm11, %v3986_v56, inf }
0x100a   : > { %3992 = vmin.xlane.f32.xlu1 %v3991_v38  ;;  %v3996_v5 = vshll.u32 %v3995_v46, 16 }
0x100d   : > { %v4004_v10 = vpop.xlane.xlu0 %4003 }
0x100e   : > { %vm4005_vm12 = vcmp.eq.f32.partialorder %v4002_v50, %v4004_v10  ;;  %v4010_v11 = vcvt.f32.s32 %v4004_v10 }
0x100f   : > { %v4019_v51 = vpop.xlane.xlu1 %4018  ;;  %v4006_v7 = vsel %vm4005_vm12, %v4001_v58, inf }
0x1010   : > { %4007 = vmin.xlane.f32.xlu0 %v4006_v7  ;;  %vm4020_vm13 = vcmp.eq.f32.partialorder %v4017_v8, %v4019_v51 }
0x1011   : > { %v4021_v23 = vsel %vm4020_vm13, %v4016_v48, inf  ;;  %v4034_v21 = vpop.xlane.xlu0 %4033 }
0x1012   : > { %4022 = vmin.xlane.f32.xlu1 %v4021_v23  ;;  %vm4035_vm14 = vcmp.eq.f32.partialorder %v4032_v4, %v4034_v21  ;;  %v3980_v4 = vcvt.f32.s32 %v3974_v55  ;;  %v4011_v55 = vshll.u32 %v4010_v11, 16 }
0x1013   : > { %v4049_v56 = vpop.xlane.xlu1 %4048  ;;  %v4036_v53 = vsel %vm4035_vm14, %v4031_v32, inf  ;;  %v4025_v32 = vcvt.f32.s32 %v4019_v51 }
0x1014   : > { %4037 = vmin.xlane.f32.xlu0 %v4036_v53  ;;  %vm4050_vm15 = vcmp.eq.f32.partialorder %v4047_v31, %v4049_v56  ;;  %v3981_v31 = vshll.u32 %v3980_v4, 16 }
0x1015   : > { %v7146_v13 = vpop.xlane.xlu0 %4063  ;;  %v4051_v50 = vsel %vm4050_vm15, %v4046_v6, inf }
0x1016   : > { %4052 = vmin.xlane.f32.xlu1 %v4051_v50  ;;  %vm4065_vm2 = vcmp.eq.f32.partialorder %v4062_v44, %v7146_v13  ;;  %v4055_v50 = vcvt.f32.s32 %v4049_v56 }
0x1017   : > { %v7149_v7 = vpop.xlane.xlu1 %4078  ;;  %v4066_v8 = vsel %vm4065_vm2, %v4061_v16, inf }
0x1018   : > { %4067 = vmin.xlane.f32.xlu0 %v4066_v8  ;;  %vm4080_vm3 = vcmp.eq.f32.partialorder %v4077_v35, %v7149_v7  ;;  %v4026_v8 = vshll.u32 %v4025_v32, 16 }
0x1019   : > { %v4081_v18 = vsel %vm4080_vm3, %v4076_v34, inf }
0x101a   : > { %4082 = vmin.xlane.f32.xlu1 %v4081_v18 }
0x1095   : > { %v3978_v45 = vpop.xlane.xlu0 %3977 }
0x1096   : > { %v3979_v52 = vcvt.f32.s32 %v3978_v45  ;;  %v4056_v45 = vshll.u32 %v4055_v50, 16 }
0x1097   : > { %v3993_v38 = vpop.xlane.xlu1 %3992 }
0x1098   : > { %v3982_v58 = vadd.s32 %v3981_v31, %v3979_v52  ;;  %v3994_v48 = vcvt.f32.s32 %v3993_v38  ;;  %v4085_v38 = vcvt.f32.s32 %v7149_v7 }
0x109a   : > { %v3997_v44 = vadd.s32 %v3996_v5, %v3994_v48  ;;  %vm4088_vm4 = vcmp.eq.s32.totalorder %v6340_v26, %v3982_v58 }
0x109b   : > { %v7154_v23 = vsel %vm4088_vm4, -1e+30, %v7042_v3  ;;  %v7160_v43 = vsel %vm4088_vm4, 1.0, %v8287_v57  ;;  %v4040_v3 = vcvt.f32.s32 %v4034_v21  ;;  %v4070_v21 = vcvt.f32.s32 %v7146_v13 }
0x109c   : > { %v4348_v35 = vsel %vm429_vm0, %v7154_v23, -inf  ;;  %vm4089_vm5 = vcmp.eq.s32.totalorder %v6340_v26, %v3997_v44 }
0x109d   : > { %4349 = vmax.xlane.f32.xlu0 %v4348_v35  ;;  %v4008_v40 = vpop.xlane.xlu0 %4007  ;;  %v7163_v10 = vsel %vm4089_vm5, -1e+30, %v7051_v2  ;;  %v7166_v53 = vsel %vm4089_vm5, 1.0, %v8287_v57  ;;  %v4041_v4 = vshll.u32 %v4040_v3, 16  ;;  %v4071_v35 = vshll.u32 %v4070_v21, 16 }
0x109e   : > { %v4009_v6 = vcvt.f32.s32 %v4008_v40  ;;  %v4120_v51 = vpack.c.bf16 %v7166_v53, %v7160_v43  ;;  %v4351_v20 = vsel %vm429_vm0, %v7163_v10, -inf  ;;  %v4086_v3 = vshll.u32 %v4085_v38, 16 }
0x109f   : > { %4352 = vmax.xlane.f32.xlu1 %v4351_v20  ;;  %v4023_v16 = vpop.xlane.xlu1 %4022 }
0x10a0   : > { %v4012_v34 = vadd.s32 %v4011_v55, %v4009_v6  ;;  %v4024_v18 = vcvt.f32.s32 %v4023_v16 }
0x10a1   : > { %v4038_v46 = vpop.xlane.xlu0 %4037 }
0x10a2   : > { %v4027_v2 = vadd.s32 %v4026_v8, %v4024_v18  ;;  %vm4090_vm6 = vcmp.eq.s32.totalorder %v6340_v26, %v4012_v34  ;;  %v4039_v31 = vcvt.f32.s32 %v4038_v46 }
0x10a3   : > { %v7175_v52 = vsel %vm4090_vm6, -1e+30, %v7063_v59  ;;  %v4053_v56 = vpop.xlane.xlu1 %4052  ;;  %v7179_v5 = vsel %vm4090_vm6, 1.0, %v8287_v57 }
0x10a4   : > { %v4354_v58 = vsel %vm429_vm0, %v7175_v52, -inf  ;;  %vm4091_vm7 = vcmp.eq.s32.totalorder %v6340_v26, %v4027_v2  ;;  %v4042_v48 = vadd.s32 %v4041_v4, %v4039_v31  ;;  %v4054_v11 = vcvt.f32.s32 %v4053_v56 }
0x10a5   : > { %4355 = vmax.xlane.f32.xlu0 %v4354_v58  ;;  %v7185_v13 = vsel %vm4091_vm7, -1e+30, %v7073_v15  ;;  %v7188_v59 = vsel %vm4091_vm7, 1.0, %v8287_v57  ;;  %v4068_v44 = vpop.xlane.xlu0 %4067  ;;  %v8334_v58 = vpack.c.bf16 %v6250_v1, %v6247_v0 }
0x10a6   : > { %v4121_v7 = vpack.c.bf16 %v7188_v59, %v7179_v5  ;;  %v4357_v32 = vsel %vm429_vm0, %v7185_v13, -inf  ;;  %v4057_v55 = vadd.s32 %v4056_v45, %v4054_v11  ;;  %v4069_v40 = vcvt.f32.s32 %v4068_v44 }
0x10a7   : > { %4358 = vmax.xlane.f32.xlu1 %v4357_v32  ;;  %vm4092_vm8 = vcmp.eq.s32.totalorder %v6340_v26, %v4042_v48  ;;  %v4083_v6 = vpop.xlane.xlu1 %4082  ;;  %v8336_v48 = vpack.c.bf16 %v6296_v28, %v6293_v27 }
0x10a8   : > { %v4100_v15 = vsel %vm4092_vm8, -1e+30, %v7084_v41  ;;  %v4072_v20 = vadd.s32 %v4071_v35, %v4069_v40  ;;  %v4084_v50 = vcvt.f32.s32 %v4083_v6  ;;  %vm4093_vm9 = vcmp.eq.s32.totalorder %v6340_v26, %v4057_v55 }
0x10a9   : > { %v4360_v16 = vsel %vm429_vm0, %v4100_v15, -inf  ;;  %v7199_v8 = vsel %vm4092_vm8, 1.0, %v8287_v57  ;;  %v4101_v34 = vsel %vm4093_vm9, -1e+30, %v7093_v37  ;;  %v7203_v18 = vsel %vm4093_vm9, 1.0, %v8287_v57 }
0x10aa   : > { %4361 = vmax.xlane.f32.xlu0 %v4360_v16  ;;  %v4087_v4 = vadd.s32 %v4086_v3, %v4084_v50  ;;  %v4122_v2 = vpack.c.bf16 %v7203_v18, %v7199_v8  ;;  %v4363_v41 = vsel %vm429_vm0, %v4101_v34, -inf  ;;  %vm4094_vm10 = vcmp.eq.s32.totalorder %v6340_v26, %v4072_v20 }
0x10ab   : > { %4364 = vmax.xlane.f32.xlu1 %v4363_v41  ;;  %v4102_v46 = vsel %vm4094_vm10, -1e+30, %v7104_v9  ;;  %v7213_v37 = vsel %vm4094_vm10, 1.0, %v8287_v57  ;;  %v8333_v9 = vpack.c.bf16 %v6244_v63, %v6241_v62 }
0x10ac   : > { %v4366_v45 = vsel %vm429_vm0, %v4102_v46, -inf  ;;  %vm4095_vm11 = vcmp.eq.s32.totalorder %v6340_v26, %v4087_v4 }
0x10ad   : > { %v4103_v21 = vsel %vm4095_vm11, -1e+30, %v7113_v61  ;;  %v7217_v31 = vsel %vm4095_vm11, 1.0, %v8287_v57  ;;  %v8335_v61 = vpack.c.bf16 %v6302_v30, %v6299_v29 }
0x10ae   : > { %4367 = vmax.xlane.f32.xlu0 %v4366_v45  ;;  %v4123_v38 = vpack.c.bf16 %v7217_v31, %v7213_v37  ;;  %v4369_v56 = vsel %vm429_vm0, %v4103_v21, -inf }
0x10af   : > { %4370 = vmax.xlane.f32.xlu1 %v4369_v56 }
0x10c0   : > { %972 = vrot.lane.b32.xlu1 %v8333_v9, %s5841_s18 }
0x10c4   : > { %970 = vrot.lane.b32.xlu0 %v8334_v58, %s5841_s18  ;;  %974 = vrot.lane.b32.xlu1 %v8335_v61, %s5841_s18 }
0x10c8   : > { %976 = vrot.lane.b32.xlu1 %v8336_v48, %s5841_s18 }
0x112a   : > { %v4350_v11 = vpop.xlane.xlu0 %4349 }
0x112b   : > { %vm4372_vm12 = vcmp.ge.f32.partialorder %v7154_v23, %v4350_v11 }
0x112c   : > { %v4380_v44 = vsel %vm4372_vm12, %v6340_v26, 16  ;;  %v4353_v32 = vpop.xlane.xlu1 %4352 }
0x112d   : > { %v7237_v62 = vsel %vm429_vm0, %v4380_v44, 2147483647  ;;  %vm4373_vm13 = vcmp.ge.f32.partialorder %v7163_v10, %v4353_v32 }
0x112e   : > { %v4390_v63 = vshra.s32 %v7237_v62, 16  ;;  %v4381_v0 = vsel %vm4373_vm13, %v6340_v26, 16  ;;  %v4389_v43 = vand.u32 65535, %v7237_v62 }
0x112f   : > { %v7243_v1 = vsel %vm429_vm0, %v4381_v0, 2147483647 }
0x1130   : > { %v7245_v27 = vcvt.s32.f32 %v4390_v63  ;;  %v4405_v28 = vshra.s32 %v7243_v1, 16  ;;  %v4404_v53 = vand.u32 65535, %v7243_v1  ;;  %v4391_v5 = vcvt.s32.f32 %v4389_v43 }
0x1132   : > { %4393 = vmin.xlane.f32.xlu0 %v7245_v27  ;;  %v4356_v29 = vpop.xlane.xlu0 %4355  ;;  %v7249_v30 = vcvt.s32.f32 %v4405_v28  ;;  %v4406_v8 = vcvt.s32.f32 %v4404_v53 }
0x1133   : > { %vm4374_vm14 = vcmp.ge.f32.partialorder %v7175_v52, %v4356_v29 }
0x1134   : > { %v4382_v23 = vsel %vm4374_vm14, %v6340_v26, 16  ;;  %4408 = vmin.xlane.f32.xlu1 %v7249_v30  ;;  %v4359_v10 = vpop.xlane.xlu1 %4358 }
0x1135   : > { %v7255_v35 = vsel %vm429_vm0, %v4382_v23, 2147483647  ;;  %vm4375_vm15 = vcmp.ge.f32.partialorder %v7185_v13, %v4359_v10  ;;  %v8337_v23 = vpack.c.bf16 %v6383_v33, %v6377_v17 }
0x1136   : > { %v4420_v55 = vshra.s32 %v7255_v35, 16  ;;  %v4383_v40 = vsel %vm4375_vm15, %v6340_v26, 16  ;;  %v4419_v18 = vand.u32 65535, %v7255_v35 }
0x1137   : > { %v7261_v3 = vsel %vm429_vm0, %v4383_v40, 2147483647  ;;  %v4362_v6 = vpop.xlane.xlu0 %4361  ;;  %v8338_v40 = vpack.c.bf16 %v6404_v39, %v6398_v24  ;;  %v8340_v24 = vpack.c.bf16 %v6444_v60, %v6438_v42  ;;  %v8342_v39 = vld [vmem:[#allocation30_spill] sm:$0xff]  ;;  %v8345_v42 = vld [vmem:[#allocation31_spill] sm:$0xff] }
0x1138   : > { %vm4376_vm2 = vcmp.ge.f32.partialorder %v4100_v15, %v4362_v6  ;;  %v7263_v52 = vcvt.s32.f32 %v4420_v55  ;;  %v4435_v20 = vshra.s32 %v7261_v3, 16  ;;  %v4365_v16 = vpop.xlane.xlu1 %4364  ;;  %v8350_v6 = vld [vmem:[#allocation36_spill] sm:$0xff]  ;;  %v4421_v31 = vcvt.s32.f32 %v4419_v18 }
0x1139   : > { %v4384_v50 = vsel %vm4376_vm2, %v6340_v26, 16  ;;  %vm4377_vm3 = vcmp.ge.f32.partialorder %v4101_v34, %v4365_v16  ;;  %v8353_v16 = vld [vmem:[#allocation38_spill] sm:$0xff] }
0x113a   : > { %v7268_v4 = vsel %vm429_vm0, %v4384_v50, 2147483647  ;;  %4423 = vmin.xlane.f32.xlu0 %v7263_v52  ;;  %v4385_v13 = vsel %vm4377_vm3, %v6340_v26, 16  ;;  %v7276_v56 = vcvt.s32.f32 %v4435_v20  ;;  %v8351_v20 = vld [vmem:[#allocation35_spill] sm:$0xff] }
0x113b   : > { %v4368_v41 = vpop.xlane.xlu0 %4367  ;;  %v4450_v45 = vshra.s32 %v7268_v4, 16  ;;  %v7274_v15 = vsel %vm429_vm0, %v4385_v13, 2147483647  ;;  %v8352_v50 = vpack.c.bf16 %v8350_v6, %v8351_v20  ;;  %v8354_v13 = vld [vmem:[#allocation37_spill] sm:$0xff]  ;;  %v8380_v6 = vld [vmem:[#allocation56_spill] sm:$0xff]  ;;  %v8381_v20 = vld [vmem:[#allocation55_spill] sm:$0xff] }
0x113c   : > { %vm4378_vm4 = vcmp.ge.f32.partialorder %v4102_v46, %v4368_v41  ;;  %v4465_v9 = vshra.s32 %v7274_v15, 16  ;;  %v4371_v61 = vpop.xlane.xlu1 %4370  ;;  %v8355_v41 = vpack.c.bf16 %v8353_v16, %v8354_v13  ;;  %v8383_v16 = vld [vmem:[#allocation58_spill] sm:$0xff]  ;;  %v8384_v13 = vld [vmem:[#allocation57_spill] sm:$0xff]  ;;  %v4449_v1 = vand.u32 65535, %v7268_v4 }
0x113d   : > { %v4386_v58 = vsel %vm4378_vm4, %v6340_v26, 16  ;;  %vm4379_vm5 = vcmp.ge.f32.partialorder %v4103_v21, %v4371_v61  ;;  %v7295_v0 = vcvt.s32.f32 %v4450_v45  ;;  %v8356_v45 = vld [vmem:[#allocation40_spill] sm:$0xff]  ;;  %v8359_v61 = vld [vmem:[#allocation42_spill] sm:$0xff] }
0x113e   : > { %v7281_v34 = vsel %vm429_vm0, %v4386_v58, 2147483647  ;;  %4438 = vmin.xlane.f32.xlu0 %v7276_v56  ;;  %v4387_v48 = vsel %vm4379_vm5, %v6340_v26, 16  ;;  %v7285_v44 = vcvt.s32.f32 %v4465_v9  ;;  %v8357_v9 = vld [vmem:[#allocation39_spill] sm:$0xff] }
0x113f   : > { %v971_v11 = vpop.permute.xlu0 %970  ;;  %v4480_v46 = vshra.s32 %v7281_v34, 16  ;;  %v7289_v32 = vsel %vm429_vm0, %v4387_v48, 2147483647  ;;  %v8358_v58 = vpack.c.bf16 %v8356_v45, %v8357_v9  ;;  %v8360_v48 = vld [vmem:[#allocation41_spill] sm:$0xff]  ;;  %v8386_v45 = vld [vmem:[#allocation60_spill] sm:$0xff]  ;;  %v8387_v9 = vld [vmem:[#allocation59_spill] sm:$0xff] }
0x1140   : > { %v7293_v63 = vsel %vm429_vm0, %v6230_v54, %v971_v11  ;;  %v4495_v21 = vshra.s32 %v7289_v32, 16  ;;  %4468 = vmin.xlane.f32.xlu1 %v7285_v44  ;;  %v973_v28 = vpop.permute.xlu1 %972  ;;  %v8361_v11 = vpack.c.bf16 %v8359_v61, %v8360_v48  ;;  %v8389_v61 = vld [vmem:[#allocation62_spill] sm:$0xff]  ;;  %v8390_v48 = vld [vmem:[#allocation61_spill] sm:$0xff] }
0x1141   : > { %5342 = vmatpush3.bf16.msra.mxu0 %v7293_v63  ;;  %v7302_v29 = vsel %vm429_vm0, %v6220_v49, %v973_v28  ;;  %v7313_v10 = vcvt.s32.f32 %v4480_v46  ;;  %v8362_v46 = vld [vmem:[#allocation44_spill] sm:$0xff] }
0x1142   : > { %4453 = vmin.xlane.f32.xlu0 %v7295_v0  ;;  %5353 = vmatprep.subr.bf16.mxu0 %v8287_v57  ;;  %v7307_v54 = vcvt.s32.f32 %v4495_v21  ;;  %v8363_v21 = vld [vmem:[#allocation43_spill] sm:$0xff] }
0x1143   : > { %5348 = vmatpush3.bf16.msra.mxu1 %v7302_v29  ;;  %v8364_v28 = vpack.c.bf16 %v8362_v46, %v8363_v21  ;;  %v8392_v46 = vld [vmem:[#allocation64_spill] sm:$0xff]  ;;  %v8393_v21 = vld [vmem:[#allocation63_spill] sm:$0xff] }
0x1144   : > { %5344 = vmatmul.mubr.msk.bf16.vlgmr.msra.gmra.mrb[16].mxu0 %vm429_vm0, %v8337_v23  ;;  %5359 = vmatprep.subr.bf16.mxu1 %v8287_v57  ;;  %v975_v49 = vpop.permute.xlu1 %974  ;;  %v8365_v23 = vld [vmem:[#allocation46_spill] sm:$0xff] }
0x1145   : > { %4498 = vmin.xlane.f32.xlu1 %v7307_v54  ;;  %5355 = vmatprep.mubr.msk.bf16.mxu0 %vm5840_vm1, %v8287_v57  ;;  %v7321_v55 = vsel %vm429_vm0, %v6282_v19, %v975_v49  ;;  %v8339_v19 = vpack.c.bf16 %v6424_v36, %v6415_v25  ;;  %v8343_v25 = vpack.c.bf16 %v6516_v22, %v8342_v39  ;;  %v8344_v36 = vld [vmem:[#allocation32_spill] sm:$0xff]  ;;  %v8366_v49 = vld [vmem:[#allocation45_spill] sm:$0xff] }
0x1146   : > { %5350 = vmatmul.mubr.msk.bf16.vlgmr.msra.gmra.mrb[24].mxu1 %vm429_vm0, %v8338_v40  ;;  %4483 = vmin.xlane.f32.xlu0 %v7313_v10  ;;  %v8346_v60 = vpack.c.bf16 %v8344_v36, %v8345_v42  ;;  %v8367_v40 = vpack.c.bf16 %v8365_v23, %v8366_v49  ;;  %v8372_v39 = vld [vmem:[#allocation49_spill] sm:$0xff]  ;;  %v8374_v36 = vld [vmem:[#allocation52_spill] sm:$0xff]  ;;  %v8375_v42 = vld [vmem:[#allocation51_spill] sm:$0xff] }
0x1147   : > { %5354 = vmatpush3.bf16.msra.mxu0 %v7321_v55  ;;  %5361 = vmatprep.mubr.msk.bf16.mxu1 %vm5840_vm1, %v8287_v57  ;;  %v8395_v23 = vld [vmem:[#allocation66_spill] sm:$0xff]  ;;  %v8396_v49 = vld [vmem:[#allocation65_spill] sm:$0xff] }
0x1148   : > { %5365 = vmatprep.subr.bf16.mxu0 %v8287_v57  ;;  %v977_v17 = vpop.permute.xlu1 %976 }
0x1149   : > { %v7334_v33 = vsel %vm429_vm0, %v6272_v14, %v977_v17  ;;  %v8341_v14 = vpack.c.bf16 %v6494_v12, %v6488_v47  ;;  %v8347_v47 = vld [vmem:[#allocation34_spill] sm:$0xff]  ;;  %v8348_v12 = vld [vmem:[#allocation33_spill] sm:$0xff]  ;;  %v8368_v17 = vld [vmem:[#allocation48_spill] sm:$0xff] }
0x114a   : > { %5360 = vmatpush3.bf16.msra.mxu1 %v7334_v33  ;;  %v8349_v22 = vpack.c.bf16 %v8347_v47, %v8348_v12  ;;  %v8377_v47 = vld [vmem:[#allocation54_spill] sm:$0xff]  ;;  %v8378_v12 = vld [vmem:[#allocation53_spill] sm:$0xff] }
0x114b   : > { %5371 = vmatprep.subr.bf16.mxu1 %v8287_v57 }
0x114c   : > { %5356 = vmatmul.mubr.msk.bf16.vlgmr.msra.gmra.mrb[20].mxu0 %vm429_vm0, %v8339_v19  ;;  %v8369_v19 = vld [vmem:[#allocation47_spill] sm:$0xff] }
0x114d   : > { %5366 = vmatpush3.bf16.msra.mxu0 %v7293_v63  ;;  %5367 = vmatprep.mubr.msk.bf16.mxu0 %vm5840_vm1, %v8287_v57 }
0x114e   : > { %5362 = vmatmul.mubr.msk.bf16.vlgmr.msra.gmra.mrb[28].mxu1 %vm429_vm0, %v8340_v24  ;;  %5377 = vmatprep.subr.bf16.mxu0 %v8287_v57  ;;  %v8370_v24 = vpack.c.bf16 %v8368_v17, %v8369_v19  ;;  %v8398_v17 = vld [vmem:[#allocation68_spill] sm:$0xff]  ;;  %v8399_v19 = vld [vmem:[#allocation67_spill] sm:$0xff] }
0x114f   : > { %5372 = vmatpush3.bf16.msra.mxu1 %v7302_v29  ;;  %5373 = vmatprep.mubr.msk.bf16.mxu1 %vm5840_vm1, %v8287_v57 }
0x1150   : > { %5383 = vmatprep.subr.bf16.mxu1 %v8287_v57 }
0x1154   : > { %5368 = vmatmul.mubr.msk.bf16.vlgmr.msra.gmra.mrb[24].mxu0 %vm429_vm0, %v8341_v14  ;;  %v8371_v14 = vld [vmem:[#allocation50_spill] sm:$0xff] }
0x1155   : > { %5378 = vmatpush3.bf16.msra.mxu0 %v7321_v55  ;;  %5379 = vmatprep.mubr.msk.bf16.mxu0 %vm5840_vm1, %v8287_v57 }
0x1156   : > { %5374 = vmatmul.mubr.msk.bf16.vlgmr.msra.gmra.mrb[32].mxu1 %vm429_vm0, %v8343_v25  ;;  %5389 = vmatprep.subr.bf16.mxu0 %v8287_v57  ;;  %v8373_v25 = vpack.c.bf16 %v8371_v14, %v8372_v39  ;;  %v8401_v14 = vld [vmem:[#allocation70_spill] sm:$0xff]  ;;  %v8402_v39 = vld [vmem:[#allocation69_spill] sm:$0xff] }
0x1157   : > { %5384 = vmatpush3.bf16.msra.mxu1 %v7334_v33  ;;  %5385 = vmatprep.mubr.msk.bf16.mxu1 %vm5840_vm1, %v8287_v57 }
0x1158   : > { %5395 = vmatprep.subr.bf16.mxu1 %v8287_v57 }
0x115c   : > { %5380 = vmatmul.mubr.msk.bf16.vlgmr.msra.gmra.mrb[28].mxu0 %vm429_vm0, %v8346_v60  ;;  %v8376_v60 = vpack.c.bf16 %v8374_v36, %v8375_v42  ;;  %v8404_v36 = vld [vmem:[#allocation72_spill] sm:$0xff]  ;;  %v8405_v42 = vld [vmem:[#allocation71_spill] sm:$0xff] }
0x115d   : > { %5390 = vmatpush3.bf16.msra.mxu0 %v7293_v63  ;;  %5391 = vmatprep.mubr.msk.bf16.mxu0 %vm5840_vm1, %v8287_v57 }
0x115e   : > { %5386 = vmatmul.mubr.msk.bf16.vlgmr.msra.gmra.mrb[36].mxu1 %vm429_vm0, %v8349_v22  ;;  %5401 = vmatprep.subr.bf16.mxu0 %v8287_v57  ;;  %v8379_v22 = vpack.c.bf16 %v8377_v47, %v8378_v12  ;;  %v8407_v47 = vld [vmem:[#allocation74_spill] sm:$0xff]  ;;  %v8408_v12 = vld [vmem:[#allocation73_spill] sm:$0xff] }
0x115f   : > { %5396 = vmatpush3.bf16.msra.mxu1 %v7302_v29  ;;  %5397 = vmatprep.mubr.msk.bf16.mxu1 %vm5840_vm1, %v8287_v57 }
0x1160   : > { %5407 = vmatprep.subr.bf16.mxu1 %v8287_v57 }
0x1164   : > { %5392 = vmatmul.mubr.msk.bf16.vlgmr.msra.gmra.mrb[32].mxu0 %vm429_vm0, %v8352_v50  ;;  %v8382_v50 = vpack.c.bf16 %v8380_v6, %v8381_v20  ;;  %v4479_v6 = vand.u32 65535, %v7281_v34 }
0x1165   : > { %5402 = vmatpush3.bf16.msra.mxu0 %v7321_v55  ;;  %5403 = vmatprep.mubr.msk.bf16.mxu0 %vm5840_vm1, %v8287_v57 }
0x1166   : > { %5398 = vmatmul.mubr.msk.bf16.vlgmr.msra.gmra.mrb[40].mxu1 %vm429_vm0, %v8355_v41  ;;  %5413 = vmatprep.subr.bf16.mxu0 %v8287_v57  ;;  %v8385_v41 = vpack.c.bf16 %v8383_v16, %v8384_v13 }
0x1167   : > { %5408 = vmatpush3.bf16.msra.mxu1 %v7334_v33  ;;  %5409 = vmatprep.mubr.msk.bf16.mxu1 %vm5840_vm1, %v8287_v57 }
0x1168   : > { %5419 = vmatprep.subr.bf16.mxu1 %v8287_v57 }
0x116c   : > { %5404 = vmatmul.mubr.msk.bf16.vlgmr.msra.gmra.mrb[36].mxu0 %vm429_vm0, %v8358_v58  ;;  %v8388_v58 = vpack.c.bf16 %v8386_v45, %v8387_v9 }
0x116d   : > { %5414 = vmatpush3.bf16.msra.mxu0 %v7293_v63  ;;  %5415 = vmatprep.mubr.msk.bf16.mxu0 %vm5840_vm1, %v8287_v57 }
0x116e   : > { %5410 = vmatmul.mubr.msk.bf16.vlgmr.msra.gmra.mrb[44].mxu1 %vm429_vm0, %v8361_v11  ;;  %5425 = vmatprep.subr.bf16.mxu0 %v8287_v57  ;;  %v8391_v11 = vpack.c.bf16 %v8389_v61, %v8390_v48 }
0x116f   : > { %5420 = vmatpush3.bf16.msra.mxu1 %v7302_v29  ;;  %5421 = vmatprep.mubr.msk.bf16.mxu1 %vm5840_vm1, %v8287_v57 }
0x1170   : > { %5431 = vmatprep.subr.bf16.mxu1 %v8287_v57 }
0x1174   : > { %5416 = vmatmul.mubr.msk.bf16.vlgmr.msra.gmra.mrb[40].mxu0 %vm429_vm0, %v8364_v28  ;;  %v8394_v28 = vpack.c.bf16 %v8392_v46, %v8393_v21 }
0x1175   : > { %5426 = vmatpush3.bf16.msra.mxu0 %v7321_v55  ;;  %5427 = vmatprep.mubr.msk.bf16.mxu0 %vm5840_vm1, %v8287_v57 }
0x1176   : > { %5422 = vmatmul.mubr.msk.bf16.vlgmr.msra.gmra.mrb[48].mxu1 %vm429_vm0, %v8367_v40  ;;  %5437 = vmatprep.subr.bf16.mxu0 %v8287_v57  ;;  %v8397_v40 = vpack.c.bf16 %v8395_v23, %v8396_v49 }
0x1177   : > { %5432 = vmatpush3.bf16.msra.mxu1 %v7334_v33  ;;  %5433 = vmatprep.mubr.msk.bf16.mxu1 %vm5840_vm1, %v8287_v57 }
0x1178   : > { %5443 = vmatprep.subr.bf16.mxu1 %v8287_v57 }
0x117c   : > { %5428 = vmatmul.mubr.msk.bf16.vlgmr.msra.gmra.mrb[44].mxu0 %vm429_vm0, %v8370_v24  ;;  %v8400_v24 = vpack.c.bf16 %v8398_v17, %v8399_v19 }
0x117d   : > { %5438 = vmatpush3.bf16.msra.mxu0 %v7293_v63  ;;  %5439 = vmatprep.mubr.msk.bf16.mxu0 %vm5840_vm1, %v8287_v57 }
0x117e   : > { %5434 = vmatmul.mubr.msk.bf16.vlgmr.msra.gmra.mrb[52].mxu1 %vm429_vm0, %v8373_v25  ;;  %5449 = vmatprep.subr.bf16.mxu0 %v8287_v57  ;;  %v8403_v25 = vpack.c.bf16 %v8401_v14, %v8402_v39 }
0x117f   : > { %5444 = vmatpush3.bf16.msra.mxu1 %v7302_v29  ;;  %5445 = vmatprep.mubr.msk.bf16.mxu1 %vm5840_vm1, %v8287_v57 }
0x1180   : > { %5455 = vmatprep.subr.bf16.mxu1 %v8287_v57 }
0x1184   : > { %5440 = vmatmul.mubr.msk.bf16.vlgmr.msra.gmra.mrb[48].mxu0 %vm429_vm0, %v8376_v60  ;;  %v8406_v60 = vpack.c.bf16 %v8404_v36, %v8405_v42 }
0x1185   : > { %5450 = vmatpush3.bf16.msra.mxu0 %v7321_v55  ;;  %5451 = vmatprep.mubr.msk.bf16.mxu0 %vm5840_vm1, %v8287_v57 }
0x1186   : > { %5446 = vmatmul.mubr.msk.bf16.vlgmr.msra.gmra.mrb[56].mxu1 %vm429_vm0, %v8379_v22  ;;  %5461 = vmatprep.subr.bf16.mxu0 %v8287_v57  ;;  %v8409_v22 = vpack.c.bf16 %v8407_v47, %v8408_v12 }
0x1187   : > { %5456 = vmatpush3.bf16.msra.mxu1 %v7334_v33  ;;  %5457 = vmatprep.mubr.msk.bf16.mxu1 %vm5840_vm1, %v8287_v57 }
0x1188   : > { %5467 = vmatprep.subr.bf16.mxu1 %v8287_v57 }
0x118c   : > { %5452 = vmatmul.mubr.msk.bf16.vlgmr.msra.gmra.mrb[52].mxu0 %vm429_vm0, %v8382_v50 }
0x118d   : > { %5462 = vmatpush3.bf16.msra.mxu0 %v7293_v63  ;;  %5463 = vmatprep.mubr.msk.bf16.mxu0 %vm5840_vm1, %v8287_v57 }
0x118e   : > { %5458 = vmatmul.mubr.msk.bf16.vlgmr.msra.gmra.mrb[60].mxu1 %vm429_vm0, %v8385_v41  ;;  %5473 = vmatprep.subr.bf16.mxu0 %v8287_v57 }
0x118f   : > { %5468 = vmatpush3.bf16.msra.mxu1 %v7302_v29  ;;  %5469 = vmatprep.mubr.msk.bf16.mxu1 %vm5840_vm1, %v8287_v57 }
0x1190   : > { %5479 = vmatprep.subr.bf16.mxu1 %v8287_v57 }
0x1194   : > { %5464 = vmatmul.mubr.msk.bf16.vlgmr.msra.gmra.mrb[56].mxu0 %vm429_vm0, %v8388_v58 }
0x1195   : > { %5474 = vmatpush3.bf16.msra.mxu0 %v7321_v55  ;;  %5475 = vmatprep.mubr.msk.bf16.mxu0 %vm5840_vm1, %v8287_v57 }
0x1196   : > { %5470 = vmatmul.mubr.msk.bf16.vlgmr.msra.gmra.mrb[64].mxu1 %vm429_vm0, %v8391_v11  ;;  %5485 = vmatprep.subr.bf16.mxu0 %v8287_v57 }
0x1197   : > { %5480 = vmatpush3.bf16.msra.mxu1 %v7334_v33  ;;  %5481 = vmatprep.mubr.msk.bf16.mxu1 %vm5840_vm1, %v8287_v57 }
0x1198   : > { %5491 = vmatprep.subr.bf16.mxu1 %v8287_v57 }
0x119c   : > { %5476 = vmatmul.mubr.msk.bf16.vlgmr.msra.gmra.mrb[60].mxu0 %vm429_vm0, %v8394_v28 }
0x119d   : > { %5486 = vmatpush3.bf16.msra.mxu0 %v7293_v63  ;;  %5487 = vmatprep.mubr.msk.bf16.mxu0 %vm5840_vm1, %v8287_v57 }
0x119e   : > { %5482 = vmatmul.mubr.msk.bf16.vlgmr.msra.gmra.mrb[68].mxu1 %vm429_vm0, %v8397_v40  ;;  %5497 = vmatprep.subr.bf16.mxu0 %v8287_v57 }
0x119f   : > { %5492 = vmatpush3.bf16.msra.mxu1 %v7302_v29  ;;  %5493 = vmatprep.mubr.msk.bf16.mxu1 %vm5840_vm1, %v8287_v57 }
0x11a0   : > { %5503 = vmatprep.subr.bf16.mxu1 %v8287_v57 }
0x11a4   : > { %5488 = vmatmul.mubr.msk.bf16.vlgmr.msra.gmra.mrb[64].mxu0 %vm429_vm0, %v8400_v24 }
0x11a5   : > { %5498 = vmatpush3.bf16.msra.mxu0 %v7321_v55  ;;  %5499 = vmatprep.mubr.msk.bf16.mxu0 %vm5840_vm1, %v8287_v57 }
0x11a6   : > { %5494 = vmatmul.mubr.msk.bf16.vlgmr.msra.gmra.mrb[72].mxu1 %vm429_vm0, %v8403_v25  ;;  %5509 = vmatprep.subr.bf16.mxu0 %v8287_v57 }
0x11a7   : > { %5504 = vmatpush3.bf16.msra.mxu1 %v7334_v33  ;;  %5505 = vmatprep.mubr.msk.bf16.mxu1 %vm5840_vm1, %v8287_v57 }
0x11a8   : > { %5515 = vmatprep.subr.bf16.mxu1 %v8287_v57 }
0x11ac   : > { %5500 = vmatmul.mubr.msk.bf16.vlgmr.msra.gmra.mrb[68].mxu0 %vm429_vm0, %v8406_v60 }
0x11ad   : > { %5510 = vmatpush3.bf16.msra.mxu0 %v7293_v63  ;;  %5511 = vmatprep.mubr.msk.bf16.mxu0 %vm5840_vm1, %v8287_v57 }
0x11ae   : > { %5506 = vmatmul.mubr.msk.bf16.vlgmr.msra.gmra.mrb[76].mxu1 %vm429_vm0, %v8409_v22  ;;  %5521 = vmatprep.subr.bf16.mxu0 %v8287_v57 }
0x11af   : > { %5516 = vmatpush3.bf16.msra.mxu1 %v7302_v29  ;;  %5517 = vmatprep.mubr.msk.bf16.mxu1 %vm5840_vm1, %v8287_v57 }
0x11b0   : > { %5527 = vmatprep.subr.bf16.mxu1 %v8287_v57 }
0x11b4   : > { %5512 = vmatmul.mubr.msk.bf16.vlgmr.msra.gmra.mrb[72].mxu0 %vm429_vm0, %v4120_v51 }
0x11b5   : > { %5522 = vmatpush3.bf16.msra.mxu0 %v7321_v55  ;;  %5523 = vmatprep.mubr.msk.bf16.mxu0 %vm5840_vm1, %v8287_v57 }
0x11b6   : > { %5518 = vmatmul.mubr.msk.bf16.vlgmr.msra.gmra.mrb[80].mxu1 %vm429_vm0, %v4121_v7  ;;  %5533 = vmatprep.subr.bf16.mxu0 %v8287_v57 }
0x11b7   : > { %5528 = vmatpush3.bf16.msra.mxu1 %v7334_v33  ;;  %5529 = vmatprep.mubr.msk.bf16.mxu1 %vm5840_vm1, %v8287_v57 }
0x11b8   : > { %5539 = vmatprep.subr.bf16.mxu1 %v8287_v57 }
0x11bc   : > { %5524 = vmatmul.mubr.msk.bf16.vlgmr.msra.gmra.mrb[76].mxu0 %vm429_vm0, %v4122_v2 }
0x11bd   : > { %5534 = vmatpush3.bf16.msra.mxu0 %v7293_v63  ;;  %5535 = vmatprep.mubr.msk.bf16.mxu0 %vm5840_vm1, %v8287_v57 }
0x11be   : > { %5530 = vmatmul.mubr.msk.bf16.vlgmr.msra.gmra.mrb[84].mxu1 %vm429_vm0, %v4123_v38  ;;  %5545 = vmatprep.subr.bf16.mxu0 %v8287_v57  ;;  %v4434_v38 = vand.u32 65535, %v7261_v3  ;;  %v4451_v3 = vcvt.s32.f32 %v4449_v1 }
0x11bf   : > { %5540 = vmatpush3.bf16.msra.mxu1 %v7302_v29  ;;  %v7577_v51 = vpop.xlane.xlu0 %4393  ;;  %5541 = vmatprep.mubr.msk.bf16.mxu1 %vm5840_vm1, %v8287_v57 }
0x11c0   : > { %vm4395_vm6 = vcmp.eq.f32.partialorder %v7245_v27, %v7577_v51  ;;  %5551 = vmatprep.subr.bf16.mxu1 %v8287_v57  ;;  %v4464_v27 = vand.u32 65535, %v7274_v15  ;;  %v4436_v63 = vcvt.s32.f32 %v4434_v38 }
0x11c1   : > { %v7584_v59 = vpop.xlane.xlu1 %4408  ;;  %v4396_v7 = vsel %vm4395_vm6, %v4391_v5, inf }
0x11c2   : > { %vm4410_vm7 = vcmp.eq.f32.partialorder %v7249_v30, %v7584_v59  ;;  %4397 = vmin.xlane.f32.xlu0 %v4396_v7  ;;  %v4466_v15 = vcvt.s32.f32 %v4464_v27 }
0x11c3   : > { %v4411_v2 = vsel %vm4410_vm7, %v4406_v8, inf }
0x11c4   : > { %4412 = vmin.xlane.f32.xlu1 %v4411_v2 }
0x11c7   : > { %v7589_v37 = vpop.xlane.xlu0 %4423 }
0x11c8   : > { %vm4425_vm8 = vcmp.eq.f32.partialorder %v7263_v52, %v7589_v37  ;;  %v4494_v52 = vand.u32 65535, %v7289_v32  ;;  %v4481_v32 = vcvt.s32.f32 %v4479_v6 }
0x11c9   : > { %v4426_v62 = vsel %vm4425_vm8, %v4421_v31, inf }
0x11ca   : > { %4427 = vmin.xlane.f32.xlu0 %v4426_v62  ;;  %v4496_v16 = vcvt.s32.f32 %v4494_v52 }
0x11cb   : > { %v7596_v30 = vpop.xlane.xlu0 %4438 }
0x11cc   : > { %vm4440_vm9 = vcmp.eq.f32.partialorder %v7276_v56, %v7596_v30 }
0x11cd   : > { %v4441_v35 = vsel %vm4440_vm9, %v4436_v63, inf  ;;  %v7600_v29 = vpop.xlane.xlu1 %4468 }
0x11ce   : > { %4442 = vmin.xlane.f32.xlu1 %v4441_v35  ;;  %vm4470_vm10 = vcmp.eq.f32.partialorder %v7285_v44, %v7600_v29 }
0x11cf   : > { %v7606_v4 = vpop.xlane.xlu0 %4453  ;;  %v4471_v56 = vsel %vm4470_vm10, %v4466_v15, inf }
0x11d0   : > { %vm4455_vm11 = vcmp.eq.f32.partialorder %v7295_v0, %v7606_v4 }
0x11d1   : > { %v4456_v20 = vsel %vm4455_vm11, %v4451_v3, inf }
0x11d2   : > { %v7610_v50 = vpop.xlane.xlu1 %4498  ;;  %4457 = vmin.xlane.f32.xlu0 %v4456_v20  ;;  %4472 = vmin.xlane.f32.xlu1 %v4471_v56 }
0x11d3   : > { %vm4500_vm12 = vcmp.eq.f32.partialorder %v7307_v54, %v7610_v50  ;;  %v7614_v34 = vpop.xlane.xlu0 %4483 }
0x11d4   : > { %vm4485_vm13 = vcmp.eq.f32.partialorder %v7313_v10, %v7614_v34  ;;  %v4501_v13 = vsel %vm4500_vm12, %v4496_v16, inf }
0x11d5   : > { %v4486_v44 = vsel %vm4485_vm13, %v4481_v32, inf }
0x11d6   : > { %4487 = vmin.xlane.f32.xlu0 %v4486_v44  ;;  %4502 = vmin.xlane.f32.xlu1 %v4501_v13 }
0x1217   : > { %v7618_v0 = vpop.f32.mrb[16].mxu0 }
0x1218   : > { %v5345_v41 = vpop.f32.mrb[17].mxu0  ;;  %1376 = vrot.lane.b32.xlu0 %v7618_v0, %s5842_s12 }
0x1219   : > { %v7622_v45 = vpop.f32.mrb[18].mxu0  ;;  %v7624_v54 = vpop.f32.mrb[24].mxu1 }
0x121a   : > { %v5346_v9 = vpop.f32.mrb[19].mxu0  ;;  %1378 = vrot.lane.b32.xlu1 %v7622_v45, %s5842_s12  ;;  %v5351_v10 = vpop.f32.mrb[25].mxu1 }
0x121b   : > { %v7628_v58 = vpop.f32.mrb[26].mxu1 }
0x121c   : > { %v5352_v61 = vpop.f32.mrb[27].mxu1 }
0x121d   : > { %v4400_v61 = vcvt.f32.s32 %v7577_v51 }
0x121e   : > { %1380 = vrot.lane.b32.xlu1 %v7624_v54, %s5842_s12 }
0x121f   : > { %v7632_v48 = vpop.f32.mrb[20].mxu0 }
0x1220   : > { %1384 = vrot.lane.b32.xlu0 %v7632_v48, %s5842_s12  ;;  %v5357_v11 = vpop.f32.mrb[21].mxu0 }
0x1221   : > { %v7636_v46 = vpop.f32.mrb[22].mxu0  ;;  %v7638_v21 = vpop.f32.mrb[28].mxu1 }
0x1222   : > { %v5358_v28 = vpop.f32.mrb[23].mxu0  ;;  %1382 = vrot.lane.b32.xlu1 %v7628_v58, %s5842_s12  ;;  %v5363_v23 = vpop.f32.mrb[29].mxu1 }
0x1223   : > { %v7642_v49 = vpop.f32.mrb[30].mxu1  ;;  %v4415_v28 = vcvt.f32.s32 %v7584_v59 }
0x1224   : > { %1388 = vrot.lane.b32.xlu0 %v7638_v21, %s5842_s12  ;;  %v5364_v40 = vpop.f32.mrb[31].mxu1 }
0x1226   : > { %1386 = vrot.lane.b32.xlu1 %v7636_v46, %s5842_s12 }
0x1227   : > { %v7648_v17 = vpop.f32.mrb[24].mxu0 }
0x1228   : > { %v5369_v19 = vpop.f32.mrb[25].mxu0  ;;  %1788 = vrot.lane.b32.xlu0 %v7648_v17, %s5842_s12 }
0x1229   : > { %v7652_v24 = vpop.f32.mrb[26].mxu0  ;;  %v7654_v14 = vpop.f32.mrb[32].mxu1  ;;  %v4401_v19 = vshll.u32 %v4400_v61, 16 }
0x122a   : > { %v5370_v39 = vpop.f32.mrb[27].mxu0  ;;  %1390 = vrot.lane.b32.xlu1 %v7642_v49, %s5842_s12  ;;  %v5375_v25 = vpop.f32.mrb[33].mxu1 }
0x122b   : > { %v7658_v36 = vpop.f32.mrb[34].mxu1 }
0x122c   : > { %1792 = vrot.lane.b32.xlu0 %v7654_v14, %s5842_s12  ;;  %v5376_v42 = vpop.f32.mrb[35].mxu1 }
0x122e   : > { %1790 = vrot.lane.b32.xlu1 %v7652_v24, %s5842_s12 }
0x122f   : > { %v7664_v60 = vpop.f32.mrb[28].mxu0 }
0x1230   : > { %v5381_v47 = vpop.f32.mrb[29].mxu0 }
0x1231   : > { %v7666_v12 = vpop.f32.mrb[30].mxu0  ;;  %v7668_v22 = vpop.f32.mrb[36].mxu1 }
0x1232   : > { %v5382_v43 = vpop.f32.mrb[31].mxu0  ;;  %1794 = vrot.lane.b32.xlu1 %v7658_v36, %s5842_s12  ;;  %v5387_v53 = vpop.f32.mrb[37].mxu1 }
0x1233   : > { %v7672_v5 = vpop.f32.mrb[38].mxu1 }
0x1234   : > { %v5388_v7 = vpop.f32.mrb[39].mxu1 }
0x1235   : > { %v4416_v7 = vshll.u32 %v4415_v28, 16 }
0x1237   : > { %v7674_v8 = vpop.f32.mrb[32].mxu0 }
0x1238   : > { %v5393_v18 = vpop.f32.mrb[33].mxu0  ;;  %2208 = vrot.lane.b32.xlu0 %v7674_v8, %s5842_s12 }
0x1239   : > { %v7678_v2 = vpop.f32.mrb[34].mxu0  ;;  %v7680_v31 = vpop.f32.mrb[40].mxu1  ;;  %v4430_v18 = vcvt.f32.s32 %v7589_v37 }
0x123a   : > { %v5394_v38 = vpop.f32.mrb[35].mxu0  ;;  %2210 = vrot.lane.b32.xlu1 %v7678_v2, %s5842_s12  ;;  %v5399_v62 = vpop.f32.mrb[41].mxu1 }
0x123b   : > { %v7684_v1 = vpop.f32.mrb[42].mxu1 }
0x123c   : > { %2212 = vrot.lane.b32.xlu0 %v7680_v31, %s5842_s12  ;;  %v5400_v27 = vpop.f32.mrb[43].mxu1 }
0x123e   : > { %2214 = vrot.lane.b32.xlu1 %v7684_v1, %s5842_s12 }
0x123f   : > { %v7690_v63 = vpop.f32.mrb[36].mxu0 }
0x1240   : > { %v5405_v35 = vpop.f32.mrb[37].mxu0 }
0x1241   : > { %v7692_v3 = vpop.f32.mrb[38].mxu0  ;;  %v7694_v6 = vpop.f32.mrb[44].mxu1 }
0x1242   : > { %v5406_v52 = vpop.f32.mrb[39].mxu0  ;;  %v5411_v15 = vpop.f32.mrb[45].mxu1 }
0x1243   : > { %v7696_v20 = vpop.f32.mrb[46].mxu1  ;;  %v4431_v52 = vshll.u32 %v4430_v18, 16 }
0x1244   : > { %v5412_v56 = vpop.f32.mrb[47].mxu1 }
0x1247   : > { %v7698_v32 = vpop.f32.mrb[40].mxu0 }
0x1248   : > { %v5417_v16 = vpop.f32.mrb[41].mxu0  ;;  %2628 = vrot.lane.b32.xlu0 %v7698_v32, %s5842_s12 }
0x1249   : > { %v7702_v44 = vpop.f32.mrb[42].mxu0  ;;  %v7704_v13 = vpop.f32.mrb[48].mxu1  ;;  %v4445_v16 = vcvt.f32.s32 %v7596_v30 }
0x124a   : > { %v5418_v41 = vpop.f32.mrb[43].mxu0  ;;  %2630 = vrot.lane.b32.xlu1 %v7702_v44, %s5842_s12  ;;  %v5423_v9 = vpop.f32.mrb[49].mxu1 }
0x124b   : > { %v7708_v10 = vpop.f32.mrb[50].mxu1 }
0x124c   : > { %2632 = vrot.lane.b32.xlu0 %v7704_v13, %s5842_s12  ;;  %v5424_v11 = vpop.f32.mrb[51].mxu1 }
0x124e   : > { %2634 = vrot.lane.b32.xlu1 %v7708_v10, %s5842_s12 }
0x124f   : > { %v7716_v23 = vpop.f32.mrb[44].mxu0  ;;  %v4398_v40 = vpop.xlane.xlu0 %4397 }
0x1250   : > { %8410 = vst [vmem:[#allocation30_spill] sm:$0xff] %v7716_v23  ;;  %v4399_v39 = vcvt.f32.s32 %v4398_v40  ;;  %v5429_v25 = vpop.f32.mrb[45].mxu0 }
0x1251   : > { %v7718_v42 = vpop.f32.mrb[46].mxu0  ;;  %v7720_v47 = vpop.f32.mrb[52].mxu1  ;;  %v4475_v25 = vcvt.f32.s32 %v7600_v29 }
0x1252   : > { %8411 = vst [vmem:[#allocation32_spill] sm:$0xff] %v7718_v42  ;;  %8412 = vst [vmem:[#allocation31_spill] sm:$0xff] %v7720_v47  ;;  %v4402_v51 = vadd.s32 %v4401_v19, %v4399_v39  ;;  %v5430_v43 = vpop.f32.mrb[47].mxu0  ;;  %v4413_v53 = vpop.xlane.xlu1 %4412 }
0x1253   : > { %v4414_v38 = vcvt.f32.s32 %v4413_v53  ;;  %v5435_v62 = vpop.f32.mrb[53].mxu1  ;;  %v4446_v53 = vshll.u32 %v4445_v16, 16 }
0x1254   : > { %v7723_v27 = vpop.f32.mrb[54].mxu1  ;;  %vm4508_vm14 = vcmp.eq.s32.totalorder %v6340_v26, %v4402_v51  ;;  %v4476_v62 = vshll.u32 %v4475_v25, 16 }
0x1255   : > { %v4417_v59 = vadd.s32 %v4416_v7, %v4414_v38  ;;  %v5436_v35 = vpop.f32.mrb[55].mxu1  ;;  %v5158_v41 = vsel %vm4508_vm14, 1.0, %v8287_v57  ;;  %v4460_v7 = vcvt.f32.s32 %v7606_v4 }
0x1257   : > { %vm4509_vm15 = vcmp.eq.s32.totalorder %v6340_v26, %v4417_v59  ;;  %v7727_v15 = vpop.f32.mrb[48].mxu0  ;;  %v4428_v56 = vpop.xlane.xlu0 %4427  ;;  %v4461_v35 = vshll.u32 %v4460_v7, 16 }
0x1258   : > { %v5159_v37 = vsel %vm4509_vm15, 1.0, %v8287_v57  ;;  %v4429_v9 = vcvt.f32.s32 %v4428_v56  ;;  %v5441_v61 = vpop.f32.mrb[49].mxu0  ;;  %3048 = vrot.lane.b32.xlu0 %v7727_v15, %s5842_s12 }
0x1259   : > { %v4532_v11 = vpack.c.bf16 %v5159_v37, %v5158_v41  ;;  %v7734_v28 = vpop.f32.mrb[50].mxu0  ;;  %v7736_v40 = vpop.f32.mrb[56].mxu1  ;;  %v4505_v41 = vcvt.f32.s32 %v7610_v50 }
0x125a   : > { %v4432_v19 = vadd.s32 %v4431_v52, %v4429_v9  ;;  %v5442_v39 = vpop.f32.mrb[51].mxu0  ;;  %3050 = vrot.lane.b32.xlu1 %v7734_v28, %s5842_s12  ;;  %v5447_v30 = vpop.f32.mrb[57].mxu1 }
0x125b   : > { %v7741_v51 = vpop.f32.mrb[58].mxu1  ;;  %5536 = vmatmul.mubr.msk.bf16.vlgmr.msra.gmra.mrb[80].mxu0 %vm429_vm0, %v4532_v11  ;;  %v4443_v43 = vpop.xlane.xlu1 %4442 }
0x125c   : > { %5546 = vmatpush3.bf16.msra.mxu0 %v7321_v55  ;;  %v4444_v18 = vcvt.f32.s32 %v4443_v43  ;;  %3052 = vrot.lane.b32.xlu0 %v7736_v40, %s5842_s12  ;;  %v5448_v38 = vpop.f32.mrb[59].mxu1  ;;  %vm4510_vm2 = vcmp.eq.s32.totalorder %v6340_v26, %v4432_v19  ;;  %v4490_v55 = vcvt.f32.s32 %v7614_v34 }
0x125d   : > { %5547 = vmatprep.mubr.msk.bf16.mxu0 %vm5840_vm1, %v8287_v57  ;;  %v5160_v37 = vsel %vm4510_vm2, 1.0, %v8287_v57 }
0x125e   : > { %v4447_v29 = vadd.s32 %v4446_v53, %v4444_v18  ;;  %3054 = vrot.lane.b32.xlu1 %v7741_v51, %s5842_s12  ;;  %v4491_v7 = vshll.u32 %v4490_v55, 16 }
0x125f   : > { %v7753_v59 = vpop.f32.mrb[52].mxu0  ;;  %v4458_v4 = vpop.xlane.xlu0 %4457 }
0x1260   : > { %vm4511_vm3 = vcmp.eq.s32.totalorder %v6340_v26, %v4447_v29  ;;  %v4459_v52 = vcvt.f32.s32 %v4458_v4  ;;  %v5453_v56 = vpop.f32.mrb[53].mxu0  ;;  %v4473_v16 = vpop.xlane.xlu1 %4472  ;;  %1796 = vrot.lane.b32.xlu0 %v7664_v60, %s5842_s12  ;;  %v4506_v4 = vshll.u32 %v4505_v41, 16 }
0x1261   : > { %v5161_v9 = vsel %vm4511_vm3, 1.0, %v8287_v57  ;;  %v4474_v61 = vcvt.f32.s32 %v4473_v16  ;;  %v7762_v11 = vpop.f32.mrb[54].mxu0  ;;  %v7764_v19 = vpop.f32.mrb[60].mxu1 }
0x1262   : > { %v4533_v34 = vpack.c.bf16 %v5161_v9, %v5160_v37  ;;  %v4462_v39 = vadd.s32 %v4461_v35, %v4459_v52  ;;  %v5454_v30 = vpop.f32.mrb[55].mxu0  ;;  %1798 = vrot.lane.b32.xlu1 %v7666_v12, %s5842_s12  ;;  %v5459_v25 = vpop.f32.mrb[61].mxu1 }
0x1263   : > { %v4477_v43 = vadd.s32 %v4476_v62, %v4474_v61  ;;  %v7768_v53 = vpop.f32.mrb[62].mxu1  ;;  %v4488_v50 = vpop.xlane.xlu0 %4487 }
0x1264   : > { %vm4512_vm4 = vcmp.eq.s32.totalorder %v6340_v26, %v4462_v39  ;;  %v4489_v18 = vcvt.f32.s32 %v4488_v50  ;;  %v4503_v38 = vpop.xlane.xlu1 %4502  ;;  %v5460_v29 = vpop.f32.mrb[63].mxu1  ;;  %5542 = vmatmul.mubr.msk.bf16.vlgmr.msra.gmra.mrb[88].mxu1 %vm429_vm0, %v4533_v34 }
0x1265   : > { %v5162_v35 = vsel %vm4512_vm4, 1.0, %v8287_v57  ;;  %vm4513_vm5 = vcmp.eq.s32.totalorder %v6340_v26, %v4477_v43  ;;  %v4504_v52 = vcvt.f32.s32 %v4503_v38  ;;  %5552 = vmatpush3.bf16.msra.mxu1 %v7334_v33  ;;  %5553 = vmatprep.mubr.msk.bf16.mxu1 %vm5840_vm1, %v8287_v57 }
0x1266   : > { %v5163_v62 = vsel %vm4513_vm5, 1.0, %v8287_v57  ;;  %v4492_v55 = vadd.s32 %v4491_v7, %v4489_v18 }
0x1267   : > { %v4534_v56 = vpack.c.bf16 %v5163_v62, %v5162_v35  ;;  %v4507_v16 = vadd.s32 %v4506_v4, %v4504_v52  ;;  %v7778_v37 = vpop.f32.mrb[56].mxu0 }
0x1268   : > { %vm4514_vm6 = vcmp.eq.s32.totalorder %v6340_v26, %v4492_v55  ;;  %v5465_v41 = vpop.f32.mrb[57].mxu0  ;;  %3468 = vrot.lane.b32.xlu0 %v7778_v37, %s5842_s12 }
0x1269   : > { %v5164_v9 = vsel %vm4514_vm6, 1.0, %v8287_v57  ;;  %vm4515_vm7 = vcmp.eq.s32.totalorder %v6340_v26, %v4507_v16  ;;  %v7785_v33 = vpop.f32.mrb[58].mxu0  ;;  %v7787_v61 = vpop.f32.mrb[64].mxu1  ;;  %5548 = vmatmul.mubr.msk.bf16.vlgmr.msra.gmra.mrb[84].mxu0 %vm429_vm0, %v4534_v56 }
0x126a   : > { %v5165_v34 = vsel %vm4515_vm7, 1.0, %v8287_v57  ;;  %v5466_v39 = vpop.f32.mrb[59].mxu0  ;;  %3470 = vrot.lane.b32.xlu1 %v7785_v33, %s5842_s12  ;;  %v5471_v30 = vpop.f32.mrb[65].mxu1 }
0x126b   : > { %v4535_v25 = vpack.c.bf16 %v5165_v34, %v5164_v9  ;;  %v7793_v43 = vpop.f32.mrb[66].mxu1 }
0x126c   : > { %1800 = vrot.lane.b32.xlu0 %v7668_v22, %s5842_s12  ;;  %v5472_v26 = vpop.f32.mrb[67].mxu1 }
0x126d   : > { %5554 = vmatmul.mubr.msk.bf16.vlgmr.msra.gmra.mrb[92].mxu1 %vm429_vm0, %v4535_v25 }
0x126e   : > { %1802 = vrot.lane.b32.xlu1 %v7672_v5, %s5842_s12 }
0x126f   : > { %v7800_v50 = vpop.f32.mrb[60].mxu0 }
0x1270   : > { %v5477_v57 = vpop.f32.mrb[61].mxu0  ;;  %3472 = vrot.lane.b32.xlu0 %v7787_v61, %s5842_s12 }
0x1271   : > { %v7804_v7 = vpop.f32.mrb[62].mxu0  ;;  %v7806_v18 = vpop.f32.mrb[68].mxu1 }
0x1272   : > { %v5478_v38 = vpop.f32.mrb[63].mxu0  ;;  %3474 = vrot.lane.b32.xlu1 %v7793_v43, %s5842_s12  ;;  %v5483_v29 = vpop.f32.mrb[69].mxu1 }
0x1273   : > { %v7810_v4 = vpop.f32.mrb[70].mxu1 }
0x1274   : > { %2216 = vrot.lane.b32.xlu0 %v7690_v63, %s5842_s12  ;;  %v5484_v35 = vpop.f32.mrb[71].mxu1 }
0x1276   : > { %2218 = vrot.lane.b32.xlu1 %v7692_v3, %s5842_s12 }
0x1277   : > { %v7816_v52 = vpop.f32.mrb[64].mxu0 }
0x1278   : > { %v5489_v62 = vpop.f32.mrb[65].mxu0  ;;  %3888 = vrot.lane.b32.xlu0 %v7816_v52, %s5842_s12 }
0x1279   : > { %v7820_v55 = vpop.f32.mrb[66].mxu0  ;;  %v7822_v56 = vpop.f32.mrb[72].mxu1 }
0x127a   : > { %8413 = vst [vmem:[#allocation34_spill] sm:$0xff] %v7822_v56  ;;  %v5490_v16 = vpop.f32.mrb[67].mxu0  ;;  %3890 = vrot.lane.b32.xlu1 %v7820_v55, %s5842_s12  ;;  %v5495_v41 = vpop.f32.mrb[73].mxu1 }
0x127b   : > { %v7826_v9 = vpop.f32.mrb[74].mxu1 }
0x127c   : > { %8414 = vst [vmem:[#allocation33_spill] sm:$0xff] %v7826_v9  ;;  %2220 = vrot.lane.b32.xlu0 %v7694_v6, %s5842_s12  ;;  %v5496_v34 = vpop.f32.mrb[75].mxu1 }
0x127e   : > { %2222 = vrot.lane.b32.xlu1 %v7696_v20, %s5842_s12 }
0x127f   : > { %v7832_v39 = vpop.f32.mrb[68].mxu0 }
0x1280   : > { %v5501_v30 = vpop.f32.mrb[69].mxu0  ;;  %3892 = vrot.lane.b32.xlu0 %v7822_v56, %s5842_s12 }
0x1281   : > { %v7836_v25 = vpop.f32.mrb[70].mxu0  ;;  %v7838_v26 = vpop.f32.mrb[76].mxu1 }
0x1282   : > { %v5502_v57 = vpop.f32.mrb[71].mxu0  ;;  %3894 = vrot.lane.b32.xlu1 %v7826_v9, %s5842_s12  ;;  %v5507_v38 = vpop.f32.mrb[77].mxu1 }
0x1283   : > { %v7842_v29 = vpop.f32.mrb[78].mxu1 }
0x1284   : > { %2636 = vrot.lane.b32.xlu0 %v7716_v23, %s5842_s12  ;;  %v5508_v35 = vpop.f32.mrb[79].mxu1 }
0x1286   : > { %2638 = vrot.lane.b32.xlu1 %v7718_v42, %s5842_s12 }
0x1287   : > { %v7848_v62 = vpop.f32.mrb[72].mxu0 }
0x1288   : > { %8415 = vst [vmem:[#allocation36_spill] sm:$0xff] %v7848_v62  ;;  %v5513_v16 = vpop.f32.mrb[73].mxu0  ;;  %4308 = vrot.lane.b32.xlu0 %v7848_v62, %s5842_s12 }
0x1289   : > { %v7852_v41 = vpop.f32.mrb[74].mxu0  ;;  %v7854_v34 = vpop.f32.mrb[80].mxu1 }
0x128a   : > { %8416 = vst [vmem:[#allocation35_spill] sm:$0xff] %v7852_v41  ;;  %8417 = vst [vmem:[#allocation38_spill] sm:$0xff] %v7854_v34  ;;  %v1377_v30 = vpop.permute.xlu0 %1376  ;;  %v5514_v57 = vpop.f32.mrb[75].mxu0  ;;  %4310 = vrot.lane.b32.xlu1 %v7852_v41, %s5842_s12 }
0x128b   : > { %v1400_v38 = vadd.f32 %v1377_v30, %v7618_v0  ;;  %v5519_v35 = vpop.f32.mrb[81].mxu1 }
0x128c   : > { %v7859_v23 = vpop.f32.mrb[82].mxu1  ;;  %v1379_v42 = vpop.permute.xlu1 %1378  ;;  %2640 = vrot.lane.b32.xlu0 %v7720_v47, %s5842_s12 }
0x128d   : > { %8418 = vst [vmem:[#allocation37_spill] sm:$0xff] %v7859_v23  ;;  %v1401_v16 = vadd.f32 %v1379_v42, %v7622_v45  ;;  %v5520_v62 = vpop.f32.mrb[83].mxu1 }
0x128e   : > { %2642 = vrot.lane.b32.xlu1 %v7723_v27, %s5842_s12 }
0x128f   : > { %v7866_v9 = vpop.f32.mrb[76].mxu0 }
0x1290   : > { %v5525_v57 = vpop.f32.mrb[77].mxu0  ;;  %v1381_v56 = vpop.permute.xlu1 %1380  ;;  %4312 = vrot.lane.b32.xlu0 %v7854_v34, %s5842_s12 }
0x1291   : > { %v1402_v0 = vadd.f32 %v1381_v56, %v7624_v54  ;;  %v7871_v30 = vpop.f32.mrb[78].mxu0  ;;  %v7873_v35 = vpop.f32.mrb[84].mxu1 }
0x1292   : > { %v1385_v47 = vpop.permute.xlu0 %1384  ;;  %v5526_v41 = vpop.f32.mrb[79].mxu0  ;;  %4314 = vrot.lane.b32.xlu1 %v7859_v23, %s5842_s12 }
0x1293   : > { %v7878_v45 = vadd.f32 %v1385_v47, %v7632_v48  ;;  %v5531_v42 = vpop.f32.mrb[85].mxu1 }
0x1294   : > { %v7880_v62 = vpop.f32.mrb[86].mxu1  ;;  %v1383_v57 = vpop.permute.xlu1 %1382  ;;  %3056 = vrot.lane.b32.xlu0 %v7753_v59, %s5842_s12 }
0x1295   : > { %v1403_v54 = vadd.f32 %v1383_v57, %v7628_v58  ;;  %v5532_v56 = vpop.f32.mrb[87].mxu1 }
0x1296   : > { %v1389_v34 = vpop.permute.xlu0 %1388  ;;  %3058 = vrot.lane.b32.xlu1 %v7762_v11, %s5842_s12 }
0x1297   : > { %v7888_v41 = vadd.f32 %v1389_v34, %v7638_v21 }
0x1298   : > { %v1387_v23 = vpop.permute.xlu1 %1386  ;;  %3060 = vrot.lane.b32.xlu0 %v7764_v19, %s5842_s12 }
0x1299   : > { %v7893_v48 = vadd.f32 %v1387_v23, %v7636_v46 }
0x129a   : > { %v1789_v47 = vpop.permute.xlu0 %1788  ;;  %3062 = vrot.lane.b32.xlu1 %v7768_v53, %s5842_s12 }
0x129b   : > { %v1812_v58 = vadd.f32 %v1789_v47, %v7648_v17 }
0x129c   : > { %v1391_v42 = vpop.permute.xlu1 %1390  ;;  %3476 = vrot.lane.b32.xlu0 %v7800_v50, %s5842_s12 }
0x129d   : > { %v1820_v57 = vmax.f32 %v1400_v38, %v1812_v58  ;;  %v7901_v21 = vadd.f32 %v1391_v42, %v7642_v49 }
0x129e   : > { %v1793_v34 = vpop.permute.xlu0 %1792  ;;  %3478 = vrot.lane.b32.xlu1 %v7804_v7, %s5842_s12 }
0x129f   : > { %v1814_v46 = vadd.f32 %v1793_v34, %v7654_v14 }
0x12a0   : > { %v1791_v23 = vpop.permute.xlu1 %1790  ;;  %3480 = vrot.lane.b32.xlu0 %v7806_v18, %s5842_s12 }
0x12a1   : > { %v1822_v56 = vmax.f32 %v1402_v0, %v1814_v46  ;;  %v1813_v17 = vadd.f32 %v1791_v23, %v7652_v24 }
0x12a2   : > { %3482 = vrot.lane.b32.xlu1 %v7810_v4, %s5842_s12 }
0x12a3   : > { %v1821_v38 = vmax.f32 %v1401_v16, %v1813_v17 }
0x12a4   : > { %v1795_v47 = vpop.permute.xlu1 %1794  ;;  %3896 = vrot.lane.b32.xlu0 %v7832_v39, %s5842_s12 }
0x12a5   : > { %v1815_v49 = vadd.f32 %v1795_v47, %v7658_v36 }
0x12a6   : > { %3898 = vrot.lane.b32.xlu1 %v7836_v25, %s5842_s12 }
0x12a7   : > { %v1823_v14 = vmax.f32 %v1403_v54, %v1815_v49 }
0x12a8   : > { %3900 = vrot.lane.b32.xlu0 %v7838_v26, %s5842_s12 }
0x12aa   : > { %v2209_v0 = vpop.permute.xlu0 %2208  ;;  %3902 = vrot.lane.b32.xlu1 %v7842_v29, %s5842_s12 }
0x12ab   : > { %v2232_v24 = vadd.f32 %v2209_v0, %v7674_v8 }
0x12ac   : > { %v2211_v16 = vpop.permute.xlu1 %2210  ;;  %4316 = vrot.lane.b32.xlu0 %v7866_v9, %s5842_s12 }
0x12ad   : > { %v2240_v58 = vmax.f32 %v1820_v57, %v2232_v24  ;;  %v2233_v36 = vadd.f32 %v2211_v16, %v7678_v2 }
0x12ae   : > { %v2213_v42 = vpop.permute.xlu0 %2212  ;;  %4318 = vrot.lane.b32.xlu1 %v7871_v30, %s5842_s12 }
0x12af   : > { %v2241_v54 = vmax.f32 %v1821_v38, %v2233_v36  ;;  %v2234_v34 = vadd.f32 %v2213_v42, %v7680_v31 }
0x12b0   : > { %v2215_v46 = vpop.permute.xlu1 %2214  ;;  %4320 = vrot.lane.b32.xlu0 %v7873_v35, %s5842_s12 }
0x12b1   : > { %v2242_v23 = vmax.f32 %v1822_v56, %v2234_v34  ;;  %v2235_v8 = vadd.f32 %v2215_v46, %v7684_v1 }
0x12b2   : > { %4322 = vrot.lane.b32.xlu1 %v7880_v62, %s5842_s12 }
0x12b3   : > { %v2243_v57 = vmax.f32 %v1823_v14, %v2235_v8 }
0x12ba   : > { %v2629_v17 = vpop.permute.xlu0 %2628 }
0x12bb   : > { %v2652_v2 = vadd.f32 %v2629_v17, %v7698_v32 }
0x12bc   : > { %v2631_v47 = vpop.permute.xlu1 %2630 }
0x12bd   : > { %v2660_v49 = vmax.f32 %v2240_v58, %v2652_v2  ;;  %v2653_v38 = vadd.f32 %v2631_v47, %v7702_v44 }
0x12be   : > { %v2633_v0 = vpop.permute.xlu0 %2632 }
0x12bf   : > { %v2661_v31 = vmax.f32 %v2241_v54, %v2653_v38  ;;  %v2654_v24 = vadd.f32 %v2633_v0, %v7704_v13 }
0x12c0   : > { %v2635_v16 = vpop.permute.xlu1 %2634 }
0x12c1   : > { %v2662_v36 = vmax.f32 %v2242_v23, %v2654_v24  ;;  %v2655_v56 = vadd.f32 %v2635_v16, %v7708_v10 }
0x12c3   : > { %v2663_v1 = vmax.f32 %v2243_v57, %v2655_v56 }
0x12ca   : > { %v3049_v42 = vpop.permute.xlu0 %3048 }
0x12cb   : > { %v3072_v34 = vadd.f32 %v3049_v42, %v7727_v15 }
0x12cc   : > { %v3051_v14 = vpop.permute.xlu1 %3050 }
0x12cd   : > { %v3080_v46 = vmax.f32 %v2660_v49, %v3072_v34  ;;  %v3073_v32 = vadd.f32 %v3051_v14, %v7734_v28 }
0x12ce   : > { %v3053_v8 = vpop.permute.xlu0 %3052 }
0x12cf   : > { %v3081_v58 = vmax.f32 %v2661_v31, %v3073_v32  ;;  %v3074_v44 = vadd.f32 %v3053_v8, %v7736_v40 }
0x12d0   : > { %v3055_v17 = vpop.permute.xlu1 %3054 }
0x12d1   : > { %v3082_v54 = vmax.f32 %v2662_v36, %v3074_v44  ;;  %v3075_v13 = vadd.f32 %v3055_v17, %v7741_v51 }
0x12d2   : > { %v1797_v2 = vpop.permute.xlu0 %1796 }
0x12d3   : > { %v3083_v23 = vmax.f32 %v2663_v1, %v3075_v13  ;;  %v1816_v10 = vadd.f32 %v1797_v2, %v7664_v60 }
0x12d4   : > { %v1799_v57 = vpop.permute.xlu1 %1798 }
0x12d5   : > { %v1824_v47 = vmax.f32 %v7878_v45, %v1816_v10  ;;  %v1817_v15 = vadd.f32 %v1799_v57, %v7666_v12 }
0x12d7   : > { %v1825_v49 = vmax.f32 %v7893_v48, %v1817_v15 }
0x12da   : > { %v3469_v28 = vpop.permute.xlu0 %3468 }
0x12db   : > { %v3492_v38 = vadd.f32 %v3469_v28, %v7778_v37  ;;  %v8421_v28 = vld [vmem:[#allocation30_spill] sm:$0xff] }
0x12dc   : > { %v3471_v0 = vpop.permute.xlu1 %3470 }
0x12dd   : > { %v3500_v40 = vmax.f32 %v3080_v46, %v3492_v38  ;;  %v3493_v31 = vadd.f32 %v3471_v0, %v7785_v33 }
0x12de   : > { %v1801_v24 = vpop.permute.xlu0 %1800 }
0x12df   : > { %v3501_v51 = vmax.f32 %v3081_v58, %v3493_v31  ;;  %v1818_v16 = vadd.f32 %v1801_v24, %v7668_v22 }
0x12e0   : > { %v1803_v36 = vpop.permute.xlu1 %1802 }
0x12e1   : > { %v1826_v60 = vmax.f32 %v7888_v41, %v1818_v16  ;;  %v1819_v45 = vadd.f32 %v1803_v36, %v7672_v5 }
0x12e2   : > { %v3473_v56 = vpop.permute.xlu0 %3472 }
0x12e3   : > { %v1827_v12 = vmax.f32 %v7901_v21, %v1819_v45  ;;  %v3494_v48 = vadd.f32 %v3473_v56, %v7787_v61  ;;  %v8424_v45 = vld [vmem:[#allocation35_spill] sm:$0xff] }
0x12e4   : > { %v3475_v1 = vpop.permute.xlu1 %3474 }
0x12e5   : > { %v3502_v37 = vmax.f32 %v3082_v54, %v3494_v48  ;;  %v3495_v42 = vadd.f32 %v3475_v1, %v7793_v43  ;;  %v8425_v1 = vld [vmem:[#allocation31_spill] sm:$0xff] }
0x12e6   : > { %v2217_v34 = vpop.permute.xlu0 %2216 }
0x12e7   : > { %v3503_v33 = vmax.f32 %v3083_v23, %v3495_v42  ;;  %v2236_v14 = vadd.f32 %v2217_v34, %v7690_v63  ;;  %v8419_v23 = vld [vmem:[#allocation34_spill] sm:$0xff] }
0x12e8   : > { %v2219_v46 = vpop.permute.xlu1 %2218 }
0x12e9   : > { %v2244_v22 = vmax.f32 %v1824_v47, %v2236_v14  ;;  %v2237_v32 = vadd.f32 %v2219_v46, %v7692_v3  ;;  %v8420_v47 = vld [vmem:[#allocation33_spill] sm:$0xff] }
0x12ea   : > { %v3889_v41 = vpop.permute.xlu0 %3888 }
0x12eb   : > { %v2245_v8 = vmax.f32 %v1825_v49, %v2237_v32  ;;  %v3912_v5 = vadd.f32 %v3889_v41, %v7816_v52 }
0x12ec   : > { %v3891_v58 = vpop.permute.xlu1 %3890 }
0x12ed   : > { %v7955_v21 = vmax.f32 %v3500_v40, %v3912_v5  ;;  %v3913_v61 = vadd.f32 %v3891_v58, %v7820_v55  ;;  %v8422_v40 = vld [vmem:[#allocation32_spill] sm:$0xff]  ;;  %v8427_v5 = vld [vmem:[#allocation37_spill] sm:$0xff] }
0x12ee   : > { %v2221_v44 = vpop.permute.xlu0 %2220 }
0x12ef   : > { %v7958_v17 = vmax.f32 %v3501_v51, %v3913_v61  ;;  %v2238_v43 = vadd.f32 %v2221_v44, %v7694_v6  ;;  %v8423_v51 = vld [vmem:[#allocation36_spill] sm:$0xff] }
0x12f0   : > { %v2223_v54 = vpop.permute.xlu1 %2222 }
0x12f1   : > { %v2246_v63 = vmax.f32 %v1826_v60, %v2238_v43  ;;  %v2239_v13 = vadd.f32 %v2223_v54, %v7696_v20 }
0x12f2   : > { %v3893_v2 = vpop.permute.xlu0 %3892 }
0x12f3   : > { %v2247_v3 = vmax.f32 %v1827_v12, %v2239_v13  ;;  %v3914_v10 = vadd.f32 %v3893_v2, %v8419_v23 }
0x12f4   : > { %v3895_v57 = vpop.permute.xlu1 %3894 }
0x12f5   : > { %v7963_v52 = vmax.f32 %v3502_v37, %v3914_v10  ;;  %v3915_v15 = vadd.f32 %v3895_v57, %v8420_v47 }
0x12f6   : > { %v2637_v49 = vpop.permute.xlu0 %2636 }
0x12f7   : > { %v7966_v55 = vmax.f32 %v3503_v33, %v3915_v15  ;;  %v2656_v38 = vadd.f32 %v2637_v49, %v8421_v28 }
0x12f8   : > { %v2639_v0 = vpop.permute.xlu1 %2638 }
0x12f9   : > { %v2664_v6 = vmax.f32 %v2244_v22, %v2656_v38  ;;  %v2657_v31 = vadd.f32 %v2639_v0, %v8422_v40  ;;  %v8426_v22 = vld [vmem:[#allocation38_spill] sm:$0xff] }
0x12fa   : > { %v4309_v24 = vpop.permute.xlu0 %4308 }
0x12fb   : > { %v2665_v20 = vmax.f32 %v2245_v8, %v2657_v31  ;;  %v7971_v16 = vadd.f32 %v4309_v24, %v8423_v51 }
0x12fc   : > { %v4311_v36 = vpop.permute.xlu1 %4310 }
0x12fd   : > { %v4340_v60 = vmax.f32 %v7955_v21, %v7971_v16  ;;  %v7976_v56 = vadd.f32 %v4311_v36, %v8424_v45 }
0x12fe   : > { %v2641_v12 = vpop.permute.xlu0 %2640 }
0x12ff   : > { %v4341_v48 = vmax.f32 %v7958_v17, %v7976_v56  ;;  %v2658_v37 = vadd.f32 %v2641_v12, %v8425_v1  ;;  %v8435_v17 = vld [vmem:[#allocation14_spill] sm:$0xff] }
0x1300   : > { %v2643_v42 = vpop.permute.xlu1 %2642 }
0x1301   : > { %v2666_v34 = vmax.f32 %v2246_v63, %v2658_v37  ;;  %v2659_v33 = vadd.f32 %v2643_v42, %v7723_v27 }
0x1302   : > { %v4313_v14 = vpop.permute.xlu0 %4312 }
0x1303   : > { %v2667_v46 = vmax.f32 %v2247_v3, %v2659_v33  ;;  %v7983_v32 = vadd.f32 %v4313_v14, %v8426_v22 }
0x1304   : > { %v4315_v41 = vpop.permute.xlu1 %4314 }
0x1305   : > { %v4342_v8 = vmax.f32 %v7963_v52, %v7983_v32  ;;  %v7988_v58 = vadd.f32 %v4315_v41, %v8427_v5 }
0x1306   : > { %v3057_v61 = vpop.permute.xlu0 %3056 }
0x1307   : > { %v4343_v44 = vmax.f32 %v7966_v55, %v7988_v58  ;;  %v3076_v43 = vadd.f32 %v3057_v61, %v7753_v59 }
0x1308   : > { %v3059_v54 = vpop.permute.xlu1 %3058 }
0x1309   : > { %v3084_v27 = vmax.f32 %v2664_v6, %v3076_v43  ;;  %v3077_v63 = vadd.f32 %v3059_v54, %v7762_v11 }
0x130a   : > { %v3061_v13 = vpop.permute.xlu0 %3060 }
0x130b   : > { %v3085_v2 = vmax.f32 %v2665_v20, %v3077_v63  ;;  %v3078_v3 = vadd.f32 %v3061_v13, %v7764_v19 }
0x130c   : > { %v3063_v23 = vpop.permute.xlu1 %3062 }
0x130d   : > { %v3086_v10 = vmax.f32 %v2666_v34, %v3078_v3  ;;  %v3079_v57 = vadd.f32 %v3063_v23, %v7768_v53 }
0x130e   : > { %v3477_v47 = vpop.permute.xlu0 %3476 }
0x130f   : > { %v3087_v15 = vmax.f32 %v2667_v46, %v3079_v57  ;;  %v3496_v49 = vadd.f32 %v3477_v47, %v7800_v50 }
0x1310   : > { %v3479_v28 = vpop.permute.xlu1 %3478 }
0x1311   : > { %v3504_v38 = vmax.f32 %v3084_v27, %v3496_v49  ;;  %v3497_v59 = vadd.f32 %v3479_v28, %v7804_v7 }
0x1312   : > { %v3481_v0 = vpop.permute.xlu0 %3480 }
0x1313   : > { %v3505_v6 = vmax.f32 %v3085_v2, %v3497_v59  ;;  %v3498_v11 = vadd.f32 %v3481_v0, %v7806_v18 }
0x1314   : > { %v3483_v40 = vpop.permute.xlu1 %3482 }
0x1315   : > { %v3506_v31 = vmax.f32 %v3086_v10, %v3498_v11  ;;  %v3499_v19 = vadd.f32 %v3483_v40, %v7810_v4  ;;  %v8429_v11 = vld [vmem:[#allocation16_spill] sm:$0xff] }
0x1316   : > { %v3897_v24 = vpop.permute.xlu0 %3896 }
0x1317   : > { %v3507_v20 = vmax.f32 %v3087_v15, %v3499_v19  ;;  %v3916_v53 = vadd.f32 %v3897_v24, %v7832_v39  ;;  %v8431_v24 = vld [vmem:[#allocation21_spill] sm:$0xff] }
0x1318   : > { %v3899_v51 = vpop.permute.xlu1 %3898 }
0x1319   : > { %v8001_v36 = vmax.f32 %v3504_v38, %v3916_v53  ;;  %v3917_v50 = vadd.f32 %v3899_v51, %v7836_v25 }
0x131a   : > { %v3901_v45 = vpop.permute.xlu0 %3900 }
0x131b   : > { %v8004_v12 = vmax.f32 %v3505_v6, %v3917_v50  ;;  %v3918_v7 = vadd.f32 %v3901_v45, %v7838_v26  ;;  %v8428_v6 = vld [vmem:[#allocation17_spill] sm:$0xff] }
0x131c   : > { %v3903_v1 = vpop.permute.xlu1 %3902  ;;  %v8430_v40 = vsub.f32 %v8428_v6, %v8429_v11  ;;  %v8450_v6 = vld [vmem:[#allocation26_spill] sm:$0xff] }
0x131d   : > { %v8007_v18 = vmax.f32 %v3506_v31, %v3918_v7  ;;  %v3919_v37 = vadd.f32 %v3903_v1, %v7842_v29  ;;  %v8434_v1 = vld [vmem:[#allocation15_spill] sm:$0xff] }
0x131e   : > { %v4317_v4 = vpop.permute.xlu0 %4316  ;;  %v8436_v56 = vsub.f32 %v8434_v1, %v8435_v17  ;;  %v5668_v1 = vld [vmem:[%s6080_s26 + $0x18] sm:$0xff] }
0x131f   : > { %v8010_v42 = vmax.f32 %v3507_v20, %v3919_v37  ;;  %v4336_v39 = vadd.f32 %v4317_v4, %v7866_v9  ;;  %v8432_v20 = vld [vmem:[#allocation20_spill] sm:$0xff] }
0x1320   : > { %v4319_v34 = vpop.permute.xlu1 %4318  ;;  %v8433_v53 = vsub.f32 %v8431_v24, %v8432_v20 }
0x1321   : > { %v4344_v33 = vmax.f32 %v8001_v36, %v4336_v39  ;;  %v8015_v25 = vadd.f32 %v4319_v34, %v7871_v30  ;;  %v8437_v34 = vld [vmem:[#allocation19_spill] sm:$0xff] }
0x1322   : > { %v4321_v14 = vpop.permute.xlu0 %4320 }
0x1323   : > { %v4345_v26 = vmax.f32 %v8004_v12, %v8015_v25  ;;  %v8020_v46 = vadd.f32 %v4321_v14, %v7873_v35  ;;  %v5649_v35 = vld [vmem:[%s8178_s7] sm:$0xff]   ;;  %v8438_v25 = vld [vmem:[#allocation18_spill] sm:$0xff] }
0x1324   : > { %v4323_v22 = vpop.permute.xlu1 %4322  ;;  %5557 = vmatprep.subr.bf16.mxu0 %v5649_v35  ;;  %v8439_v14 = vsub.f32 %v8437_v34, %v8438_v25 }
0x1325   : > { %v4346_v29 = vmax.f32 %v8007_v18, %v8020_v46  ;;  %v8025_v41 = vadd.f32 %v4323_v22, %v7880_v62  ;;  %5558 = vmatpush3.bf16.msra.mxu0 %v5649_v35  ;;  %v8441_v35 = vld [vmem:[#allocation24_spill] sm:$0xff] }
0x1327   : > { %v4347_v9 = vmax.f32 %v8010_v42, %v8025_v41  ;;  %v5176_v41 = vld [vmem:[%s8180_s9] ss:$0 sm:$0xff] }
0x132e   : > { %v4573_v5 = vpop.f32.mrb[80].mxu0 }
0x132f   : > { %v5537_v30 = vpop.f32.mrb[81].mxu0  ;;  %4720 = vrot.lane.b32.xlu0 %v4573_v5, %s5842_s12 }
0x1330   : > { %v4576_v61 = vpop.f32.mrb[82].mxu0 }
0x1331   : > { %v5538_v43 = vpop.f32.mrb[83].mxu0  ;;  %4722 = vrot.lane.b32.xlu1 %v4576_v61, %s5842_s12 }
0x1332   : > { %v8440_v43 = vld [vmem:[#allocation25_spill] sm:$0xff] }
0x1337   : > { %v4617_v54 = vpop.f32.mrb[88].mxu1 }
0x1338   : > { %4724 = vrot.lane.b32.xlu0 %v4617_v54, %s5842_s12  ;;  %v5543_v62 = vpop.f32.mrb[89].mxu1 }
0x1339   : > { %v4620_v27 = vpop.f32.mrb[90].mxu1 }
0x133a   : > { %4726 = vrot.lane.b32.xlu1 %v4620_v27, %s5842_s12  ;;  %v5544_v63 = vpop.f32.mrb[91].mxu1 }
0x133c   : > { %v4661_v13 = vpop.f32.mrb[84].mxu0 }
0x133d   : > { %v5549_v2 = vpop.f32.mrb[85].mxu0  ;;  %4728 = vrot.lane.b32.xlu0 %v4661_v13, %s5842_s12 }
0x133e   : > { %v4664_v3 = vpop.f32.mrb[86].mxu0 }
0x133f   : > { %v5550_v23 = vpop.f32.mrb[87].mxu0  ;;  %4730 = vrot.lane.b32.xlu1 %v4664_v3, %s5842_s12 }
0x1340   : > { %v4705_v10 = vpop.f32.mrb[92].mxu1 }
0x1341   : > { %4732 = vrot.lane.b32.xlu0 %v4705_v10, %s5842_s12  ;;  %v5555_v57 = vpop.f32.mrb[93].mxu1 }
0x1342   : > { %v4708_v47 = vpop.f32.mrb[94].mxu1 }
0x1343   : > { %4734 = vrot.lane.b32.xlu1 %v4708_v47, %s5842_s12  ;;  %v5556_v15 = vpop.f32.mrb[95].mxu1 }
0x13a1   : > { %v4721_v49 = vpop.permute.xlu0 %4720 }
0x13a2   : > { %v4744_v28 = vadd.f32 %v4721_v49, %v4573_v5  ;;  %v8446_v49 = vld [vmem:[#allocation23_spill] sm:$0xff] }
0x13a3   : > { %v4723_v38 = vpop.permute.xlu1 %4722 }
0x13a4   : > { %v4752_v59 = vmax.f32 %v4340_v60, %v4744_v28  ;;  %v4745_v0 = vadd.f32 %v4723_v38, %v4576_v61  ;;  %v8447_v28 = vld [vmem:[#allocation22_spill] sm:$0xff] }
0x13a5   : > { %v8448_v38 = vsub.f32 %v8446_v49, %v8447_v28 }
0x13a6   : > { %v4768_v31 = vadd.f32 %v8430_v40, %v4752_v59  ;;  %v4753_v19 = vmax.f32 %v4341_v48, %v4745_v0  ;;  %v8449_v0 = vld [vmem:[#allocation27_spill] sm:$0xff] }
0x13a7   : > { %v8451_v11 = vsub.f32 %v8449_v0, %v8450_v6 }
0x13a8   : > { %v4769_v51 = vadd.f32 %v8433_v53, %v4753_v19  ;;  %v4776_v36 = vmax.f32 %v4768_v31, 0.0 }
0x13aa   : > { %v4777_v50 = vmax.f32 %v4769_v51, 0.0  ;;  %v4725_v45 = vpop.permute.xlu0 %4724 }
0x13ab   : > { %v4746_v12 = vadd.f32 %v4725_v45, %v4617_v54  ;;  %v8442_v54 = vsub.f32 %v8440_v43, %v8441_v35  ;;  %v5666_v45 = vld [vmem:[%s6080_s26 + $0x10] sm:$0xff]  ;;  %v5671_v43 = vld [vmem:[%s6080_s26 + $0x20] sm:$0xff] }
0x13ac   : > { %v4784_v7 = vpack.c.bf16 %v4777_v50, %v4776_v36  ;;  %v4727_v21 = vpop.permute.xlu1 %4726 }
0x13ad   : > { %v4754_v16 = vmax.f32 %v4342_v8, %v4746_v12  ;;  %v4747_v60 = vadd.f32 %v4727_v21, %v4620_v27  ;;  %v5667_v21 = vld [vmem:[%s6080_s26] sm:$0xff] }
0x13ae   : > { %5559 = vmatprep.mubr.msk.bf16.mxu0 %vm429_vm0, %v4784_v7 }
0x13af   : > { %v4770_v48 = vadd.f32 %v8436_v56, %v4754_v16  ;;  %v4755_v37 = vmax.f32 %v4343_v44, %v4747_v60  ;;  %v4729_v4 = vpop.permute.xlu0 %4728  ;;  %v8443_v44 = vld [vmem:[#allocation29_spill] sm:$0xff] }
0x13b0   : > { %v4748_v39 = vadd.f32 %v4729_v4, %v4661_v13  ;;  %v8444_v13 = vld [vmem:[#allocation28_spill] sm:$0xff]  ;;  %v5669_v56 = vld [vmem:[%s6080_s26 + $0x8] sm:$0xff] }
0x13b1   : > { %v4771_v22 = vadd.f32 %v8439_v14, %v4755_v37  ;;  %v4731_v5 = vpop.permute.xlu1 %4730  ;;  %v4778_v8 = vmax.f32 %v4770_v48, 0.0  ;;  %v8445_v2 = vsub.f32 %v8443_v44, %v8444_v13 }
0x13b2   : > { %v4756_v52 = vmax.f32 %v4344_v33, %v4748_v39  ;;  %v4749_v32 = vadd.f32 %v4731_v5, %v4664_v3 }
0x13b3   : > { %v4779_v30 = vmax.f32 %v4771_v22, 0.0  ;;  %v4733_v61 = vpop.permute.xlu0 %4732 }
0x13b4   : > { %v4772_v62 = vadd.f32 %v8442_v54, %v4756_v52  ;;  %v4757_v27 = vmax.f32 %v4345_v26, %v4749_v32  ;;  %v4750_v63 = vadd.f32 %v4733_v61, %v4705_v10 }
0x13b5   : > { %v4785_v55 = vpack.c.bf16 %v4779_v30, %v4778_v8  ;;  %v4735_v58 = vpop.permute.xlu1 %4734  ;;  %v5670_v8 = vld [vmem:[%s6080_s26 + $0x30] sm:$0xff] }
0x13b6   : > { %v4773_v23 = vadd.f32 %v8445_v2, %v4757_v27  ;;  %v4758_v33 = vmax.f32 %v4346_v29, %v4750_v63  ;;  %v4751_v3 = vadd.f32 %v4735_v58, %v4708_v47  ;;  %v4780_v57 = vmax.f32 %v4772_v62, 0.0  ;;  %v5175_v47 = vld [vmem:[%s8179_s8] ss:$0 sm:$0xff]  ;;  %v5672_v62 = vld [vmem:[%s6080_s26 + $0x38] sm:$0xff]  ;;  %v5673_v63 = vld [vmem:[%s6080_s26 + $0x28] sm:$0xff] }
0x13b7   : > { %5560 = vmatmul.mubr.msk.bf16.vlgmr.msra.gmra.mrb[88].mxu0 %vm429_vm0, %v4785_v55 }
0x13b8   : > { %v4781_v15 = vmax.f32 %v4773_v23, 0.0  ;;  %v4774_v26 = vadd.f32 %v8448_v38, %v4758_v33  ;;  %v4759_v10 = vmax.f32 %v4347_v9, %v4751_v3 }
0x13ba   : > { %v4786_v59 = vpack.c.bf16 %v4781_v15, %v4780_v57  ;;  %v4775_v40 = vadd.f32 %v8451_v11, %v4759_v10  ;;  %v4782_v18 = vmax.f32 %v4774_v26, 0.0 }
0x13bc   : > { %v4783_v46 = vmax.f32 %v4775_v40, 0.0  ;;  %5563 = vmatprep.mubr.msk.bf16.mxu0 %vm429_vm0, %v4786_v59 }
0x13be   : > { %v4787_v29 = vpack.c.bf16 %v4783_v46, %v4782_v18 }
0x13c0   : > { %5564 = vmatmul.mubr.msk.bf16.gmra.mrb[92].mxu0 %vm429_vm0, %v4787_v29 }
0x148a   : > { %v5561_v42 = vpop.f32.mrb[88].mxu0 }
0x148b   : > { %v4882_v9 = vmul.f32 %v5561_v42, %v5175_v47  ;;  %v4842_v31 = vpop.f32.mrb[89].mxu0 }
0x148c   : > { %v4880_v19 = vmul.f32 %v5175_v47, %v4842_v31  ;;  %v5562_v24 = vpop.f32.mrb[90].mxu0 }
0x148d   : > { %v4897_v20 = vadd.f32 %v5176_v41, %v4882_v9  ;;  %v4883_v53 = vmul.f32 %v5562_v24, %v5175_v47  ;;  %v4845_v51 = vpop.f32.mrb[91].mxu0 }
0x148e   : > { %v4895_v36 = vadd.f32 %v5176_v41, %v4880_v19  ;;  %v4881_v50 = vmul.f32 %v5175_v47, %v4845_v51 }
0x148f   : > { %v4905_v12 = vadd.f32 %v5666_v45, %v4897_v20  ;;  %v4898_v7 = vadd.f32 %v5176_v41, %v4883_v53 }
0x1490   : > { %v4903_v16 = vadd.f32 %v5667_v21, %v4895_v36  ;;  %v4896_v60 = vadd.f32 %v5176_v41, %v4881_v50 }
0x1491   : > { %4913 = vst.msk [vmem:[%s8096_s22 + $0x10] sm:$0xff] %vm429_vm0, %v4905_v12  ;;  %v4906_v17 = vadd.f32 %v5668_v1, %v4898_v7 }
0x1492   : > { %4911 = vst.msk [vmem:[%s8096_s22] sm:$0xff] %vm429_vm0, %v4903_v16  ;;  %v4904_v48 = vadd.f32 %v5669_v56, %v4896_v60 }
0x1493   : > { %4914 = vst.msk [vmem:[%s8096_s22 + $0x18] sm:$0xff] %vm429_vm0, %v4906_v17  ;;  %v5565_v37 = vpop.f32.mrb[92].mxu0 }
0x1494   : > { %4912 = vst.msk [vmem:[%s8096_s22 + $0x8] sm:$0xff] %vm429_vm0, %v4904_v48  ;;  %v4886_v4 = vmul.f32 %v5565_v37, %v5175_v47  ;;  %v4858_v39 = vpop.f32.mrb[93].mxu0 }
0x1495   : > { %v4884_v34 = vmul.f32 %v5175_v47, %v4858_v39  ;;  %v5566_v25 = vpop.f32.mrb[94].mxu0 }
0x1496   : > { %v4901_v14 = vadd.f32 %v5176_v41, %v4886_v4  ;;  %v4887_v22 = vmul.f32 %v5566_v25, %v5175_v47  ;;  %v4861_v5 = vpop.f32.mrb[95].mxu0 }
0x1497   : > { %v4899_v52 = vadd.f32 %v5176_v41, %v4884_v34  ;;  %v4885_v32 = vmul.f32 %v5175_v47, %v4861_v5 }
0x1498   : > { %v4909_v30 = vadd.f32 %v5670_v8, %v4901_v14  ;;  %v4902_v61 = vadd.f32 %v5176_v41, %v4887_v22 }
0x1499   : > { %v4907_v35 = vadd.f32 %v5671_v43, %v4899_v52  ;;  %v4900_v54 = vadd.f32 %v5176_v41, %v4885_v32 }
0x149a   : > { %4917 = vst.msk [vmem:[%s8096_s22 + $0x30] sm:$0xff] %vm429_vm0, %v4909_v30  ;;  %v4910_v27 = vadd.f32 %v5672_v62, %v4902_v61 }
0x149b   : > { %4915 = vst.msk [vmem:[%s8096_s22 + $0x20] sm:$0xff] %vm429_vm0, %v4907_v35  ;;  %v4908_v55 = vadd.f32 %v5673_v63, %v4900_v54 }
0x149c   : > { %4918 = vst.msk [vmem:[%s8096_s22 + $0x38] sm:$0xff] %vm429_vm0, %v4910_v27 }
0x149d   : > { %4916 = vst.msk [vmem:[%s8096_s22 + $0x28] sm:$0xff] %vm429_vm0, %v4908_v55 }
0x149e   : > { %5773 = shalt.err (!%p5770_p2)
}
0x149f   : > { %s5774_s26 = scalar_lea.hbm %s8118_s19, 1024  ;;  %s5778_s11 = scalar_lea.hbm %s8181_s10, 2048 }
0x14a0   : > { %p5775_p13 = scmp.ne.s32.totalorder %s8118_s19, %s5774_s26  ;;  %p5779_p4 = scmp.lt.u32.totalorder %s8118_s19, %s8181_s10 }
0x14a1   : > { %p5780_p5 = scmp.lt.u32.totalorder %s5778_s11, %s5774_s26  ;;  %p5782_p11 = scmp.lt.u32.totalorder %s5774_s26, %s8118_s19 }
0x14a2   : > { %p5776_p6 = pnand %p5775_p13, %p8452_p0 }
0x14a3   : > { %p5781_p8 = por %p5780_p5, %p5779_p4 }
0x14a4   : > { %p5777_p10 = pneg %p5776_p6 }
0x14a5   : > { %p5783_p1 = por %p5782_p11, %p5781_p8 }
0x14a7   : > { %p5784_p3 = pnand %p5783_p1, %p5777_p10 }
0x14a9   : > { %5787 = shalt.err (!%p5784_p3)
}
0x14aa   : > { %s5844_s21 = smov 128   ;;  %s5845_s23 = smov 8  }
0x14ab   : > { %5579 = dma.vmem_to_hbm [thread:$0]  (%p8452_p0), %s8120_s28, 1024, %s8118_s19, %s4920_s17, %s5844_s21, %s5844_s21, %s5845_s23  }
0x14ac PF: > { %s8453_s13 = sld [smem:[#allocation12_spill]]  ;;  %s8454_s25 = sld [smem:[#allocation13_spill]] }
0x14ad   : > { %p8456_p9 = scmp.ge.s32.totalorder %s5830_s16, 2 }
0x14b2   : > { %s4949_s24 = sand.u32 1, %s8453_s13   ;;  %p8455_p7 = scmp.ne.s32.totalorder %s8454_s25, 0 }
0x14b3   : > { %s4950_s26 = scalar_lea.sflag [#allocation4], %s4949_s24 }
0x14b4   : > { %p5593_p12 = pnand %p8456_p9, %p8455_p7 }
0x14b6   : > { %5813 = dma.done.wait (!%p5593_p12), %s4950_s26, 1024  }
0x14b7   : > { %5815 = vsyncadd (!%p5593_p12), %s4950_s26, 4294966272  ;;  %p24_p2 = scmp.ge.s32.totalorder %s6012_s27, 4   ;;  %s8457_s13 = smov %s5822_s14 }
0x14b8   : > { %s8458_s14 = smov %s5826_s15  ;;  %s8459_s15 = smov %s6028_s30 }
0x14b9   : > { %s8460_s16 = smov %s6012_s27  ;;  %26 = sbr.rel (!%p24_p2) target bundleno = 6 (0x6), region = 113 }
0x14c0   :  { %4955 = vsyncpa [#allocation3], 1 }
0x14c1   :  { %4957 = vsyncpa [#allocation3 + $0x1], 1 }
0x14c2   :  { %4958 = vsyncpa [#allocation6], 1 }
0x14c3   :  { %4959 = vsyncpa [#allocation4], 1 }
0x14c4   :  { %4961 = vsyncpa [#allocation4 + $0x1], 1 }

</bundles_post_ra>
